<compile_context>
chip_gen: v7x
topology: tpu7x:2x2x1
jax: 0.10.0
libtpu: 0.0.40
codegen_flags: <defaults>
</compile_context>

<pallas_src>
import functools

import jax
import jax.numpy as jnp
from jax.experimental import pallas as pl
from jax.experimental.pallas import tpu as pltpu


def _round_up(x, m):
    return (x + m - 1) // m * m


def _vae_kernel(x_ref, eps_ref,
                w1_ref, b1_ref,
                wh_ref, bh_ref,
                w3_ref, b3_ref,
                w4_ref, b4_ref,
                out_ref,
                *, n1, latent):
    # ---- encode: h1 = relu(x @ W1 + b1); cast x->bf16 in-kernel (free VPU op) ----
    x_bf = x_ref[...].astype(jnp.bfloat16)                              # [TB, n1]
    h1 = jnp.dot(x_bf, w1_ref[...], preferred_element_type=jnp.float32) + b1_ref[...]
    h1 = jnp.maximum(h1, 0.0)                                           # [TB, n2p]

    # ---- fused, lane-padded mu/logvar head: one matmul -> [TB, d_pad - n1] ----
    mulv = jnp.dot(h1.astype(jnp.bfloat16), wh_ref[...],
                   preferred_element_type=jnp.float32) + bh_ref[...]
    mu = mulv[:, :latent]
    logvar = mulv[:, latent:2 * latent]

    # ---- reparametrize (f32): z = eps * exp(0.5*logvar) + mu ----
    z = eps_ref[...] * jnp.exp(0.5 * logvar) + mu                       # [TB, latent]

    # ---- decode: sigmoid(relu(z @ W3 + b3) @ W4 + b4) ----
    h3 = jnp.dot(z.astype(jnp.bfloat16), w3_ref[...],
                 preferred_element_type=jnp.float32) + b3_ref[...]
    h3 = jnp.maximum(h3, 0.0)                                           # [TB, n2p]
    logits = jnp.dot(h3.astype(jnp.bfloat16), w4_ref[...],
                     preferred_element_type=jnp.float32) + b4_ref[...]  # [TB, n1]
    # sigmoid = 1/(1+exp(-x)); exp + approx-reciprocal both route to the EUP slot.
    recon = pl.reciprocal(1.0 + jnp.exp(-logits), approx=True)

    # ---- two full-width, lane-aligned stores: [ recon | mu | logvar | zero pad ] ----
    out_ref[:, :n1] = recon
    out_ref[:, n1:] = mulv   # padded head columns are exactly zero (zero-padded wh/bh)


def prepare_params(params, *, n1, latent):
    """One-time packing (hoisted out of the per-step forward):
    bf16 weights, fused + lane-padded mu/logvar head, hidden dim padded to 128."""
    n2 = params["w1"].shape[1]
    n2p = _round_up(n2, 128)
    d_pad = _round_up(n1 + 2 * latent, 128)
    hw = d_pad - n1                      # fused-head output width (lane multiple)

    def padw(a, rows, cols):
        return jnp.pad(a, ((0, rows - a.shape[0]), (0, cols - a.shape[1])))

    wh = jnp.concatenate([params["w21"], params["w22"]], axis=1)
    bh = jnp.concatenate([params["b21"], params["b22"]], axis=1)
    return dict(
        w1=padw(params["w1"], n1, n2p).astype(jnp.bfloat16),
        b1=padw(params["b1"], 1, n2p),
        wh=padw(wh, n2p, hw).astype(jnp.bfloat16),
        bh=padw(bh, 1, hw),
        w3=padw(params["w3"], latent, n2p).astype(jnp.bfloat16),
        b3=padw(params["b3"], 1, n2p),
        w4=padw(params["w4"], n2p, n1).astype(jnp.bfloat16),
        b4=padw(params["b4"], 1, n1),
        n1=n1, n2p=n2p, latent=latent, d_pad=d_pad,
    )


def vae_forward(x, eps, packed, *, tb=512):
    """x: [B, n1] f32, eps: [B, latent] f32, packed: output of prepare_params.
    Returns (recon [B, n1], mu [B, latent], logvar [B, latent]), all f32."""
    B, n1 = x.shape
    latent = packed["latent"]
    n2p = packed["n2p"]
    d_pad = packed["d_pad"]
    hw = d_pad - n1
    assert n1 == packed["n1"] and eps.shape == (B, latent)

    # Batch tile: as large as requested, but keep >= 2 grid steps when the batch allows it
    # so dimension_semantics=("parallel",) can shard across both v7x TensorCores.
    tb = _round_up(max(128, min(tb, _round_up(B, 128))), 128)
    bp0 = _round_up(B, 128)
    if bp0 // tb < 2 and bp0 >= 256:
        tb = _round_up(bp0 // 2, 128)
    bp = _round_up(B, tb)

    if bp != B:
        x = jnp.pad(x, ((0, bp - B), (0, 0)))
        eps = jnp.pad(eps, ((0, bp - B), (0, 0)))

    grid = (bp // tb,)

    def batch_spec(feat):
        # blocked on batch, whole feature dim per block
        return pl.BlockSpec((tb, feat), lambda i: (i, 0))

    def resident_spec(shape):
        # constant index_map -> fetched once, stays resident in VMEM across grid steps
        return pl.BlockSpec(shape, lambda i: (0, 0))

    kernel = functools.partial(_vae_kernel, n1=n1, latent=latent)

    flops = 2 * bp * (n1 * n2p + n2p * hw + latent * n2p + n2p * n1)
    transcendentals = bp * (latent + n1)              # exp(0.5*logvar) + exp in sigmoid
    bytes_accessed = (
        bp * n1 * 4 + bp * latent * 4 + bp * d_pad * 4
        + 2 * (packed["w1"].size + packed["wh"].size + packed["w3"].size + packed["w4"].size)
        + 4 * (packed["b1"].size + packed["bh"].size + packed["b3"].size + packed["b4"].size)
    )

    slab = pl.pallas_call(
        kernel,
        out_shape=jax.ShapeDtypeStruct((bp, d_pad), jnp.float32),
        grid_spec=pltpu.PrefetchScalarGridSpec(
            num_scalar_prefetch=0,
            grid=grid,
            in_specs=[
                batch_spec(n1),                    # x (f32; cast to bf16 in-kernel)
                batch_spec(latent),                # eps (f32)
                resident_spec((n1, n2p)),          # w1 (bf16)
                resident_spec((1, n2p)),           # b1
                resident_spec((n2p, hw)),          # wh (fused, lane-padded head, bf16)
                resident_spec((1, hw)),            # bh
                resident_spec((latent, n2p)),      # w3 (bf16)
                resident_spec((1, n2p)),           # b3
                resident_spec((n2p, n1)),          # w4 (bf16)
                resident_spec((1, n1)),            # b4
            ],
            out_specs=pl.BlockSpec((tb, d_pad), lambda i: (i, 0)),
        ),
        compiler_params=pltpu.CompilerParams(
            dimension_semantics=("parallel",),     # batch axis: shard across TCs on v7x
        ),
        cost_estimate=pl.CostEstimate(
            flops=flops,
            transcendentals=transcendentals,
            bytes_accessed=bytes_accessed,
        ),
    )(x, eps, packed["w1"], packed["b1"], packed["wh"], packed["bh"],
      packed["w3"], packed["b3"], packed["w4"], packed["b4"])

    # TODO(synk): if the downstream loss can consume the slab directly, skip these slices
    # to avoid an extra read/write pass over the (mem-bound) output.
    recon = slab[:B, :n1]
    mu = slab[:B, n1:n1 + latent]
    logvar = slab[:B, n1 + latent:n1 + 2 * latent]
    return recon, mu, logvar


def init_params(key, n1, n2, latent):
    """Deterministic init mirroring nn.Linear; weights stored as [in, out]."""
    def linear(k, fan_in, fan_out):
        kw, kb = jax.random.split(k)
        bound = 1.0 / jnp.sqrt(fan_in)
        w_t = jax.random.uniform(kw, (fan_in, fan_out), jnp.float32, -bound, bound)
        b = jax.random.uniform(kb, (1, fan_out), jnp.float32, -bound, bound)
        return w_t, b

    ks = jax.random.split(key, 5)
    w1, b1 = linear(ks[0], n1, n2)
    w21, b21 = linear(ks[1], n2, latent)
    w22, b22 = linear(ks[2], n2, latent)
    w3, b3 = linear(ks[3], latent, n2)
    w4, b4 = linear(ks[4], n2, n1)
    return dict(w1=w1, b1=b1, w21=w21, b21=b21, w22=w22, b22=b22,
                w3=w3, b3=b3, w4=w4, b4=b4)


if __name__ == "__main__":
    # Shapes consistent with VAE(n1, n2, latent_dimension); B chosen so the batch grid has
    # 2 steps at the enlarged tile (tb=512 -> grid=(2,), both v7x TCs busy).
    B, N1, N2, LATENT = 1024, 128, 64, 32

    key = jax.random.PRNGKey(0)
    k_x, k_eps, k_p = jax.random.split(key, 3)

    x = jax.random.normal(k_x, (B, N1), dtype=jnp.float32)
    # eps ~ N(0,1): reparametrization noise, always applied as in the PyTorch forward.
    # (RNG stream necessarily differs from torch.normal_().)
    eps = jax.random.normal(k_eps, (B, LATENT), dtype=jnp.float32)

    params = init_params(k_p, N1, N2, LATENT)
    packed = prepare_params(params, n1=N1, latent=LATENT)   # one-time packing

    recon, mu, logvar = jax.block_until_ready(vae_forward(x, eps, packed, tb=512))

    # Plain-JAX reference with the same bf16-matmul / f32-accumulate recipe.
    def dot_bf16(a, w):
        return jnp.dot(a.astype(jnp.bfloat16), w.astype(jnp.bfloat16),
                       preferred_element_type=jnp.float32)

    h1 = jnp.maximum(dot_bf16(x, params["w1"]) + params["b1"], 0.0)
    mu_ref = dot_bf16(h1, params["w21"]) + params["b21"]
    lv_ref = dot_bf16(h1, params["w22"]) + params["b22"]
    z = eps * jnp.exp(0.5 * lv_ref) + mu_ref
    h3 = jnp.maximum(dot_bf16(z, params["w3"]) + params["b3"], 0.0)
    rec_ref = jax.nn.sigmoid(dot_bf16(h3, params["w4"]) + params["b4"])

    assert recon.shape == (B, N1) and mu.shape == (B, LATENT) and logvar.shape == (B, LATENT)
    assert jnp.allclose(mu, mu_ref, atol=2e-3, rtol=2e-3)
    assert jnp.allclose(logvar, lv_ref, atol=2e-3, rtol=2e-3)
    assert jnp.allclose(recon, rec_ref, atol=2e-3, rtol=2e-3)

    print("KERNEL_OK")
</pallas_src>

<mosaic_0001>
module attributes {stable_mosaic.version = 11 : i64} {
  func.func @_vae_kernel(%arg0: i32, %arg1: memref<512x128xf32, #tpu.memory_space<vmem>>, %arg2: memref<512x32xf32, #tpu.memory_space<vmem>>, %arg3: memref<128x128xbf16, #tpu.memory_space<vmem>>, %arg4: memref<1x128xf32, #tpu.memory_space<vmem>>, %arg5: memref<128x128xbf16, #tpu.memory_space<vmem>>, %arg6: memref<1x128xf32, #tpu.memory_space<vmem>>, %arg7: memref<32x128xbf16, #tpu.memory_space<vmem>>, %arg8: memref<1x128xf32, #tpu.memory_space<vmem>>, %arg9: memref<128x128xbf16, #tpu.memory_space<vmem>>, %arg10: memref<1x128xf32, #tpu.memory_space<vmem>>, %arg11: memref<512x256xf32, #tpu.memory_space<vmem>>) attributes {dimension_semantics = [#tpu.dimension_semantics<parallel>], iteration_bounds = array<i64: 2>, scalar_prefetch = 0 : i64, scratch_operands = 0 : i64, tpu.core_type = #tpu.core_type<tc>, window_params = [{transform_indices = @transform_0, window_bounds = array<i64: 512, 128>}, {transform_indices = @transform_1, window_bounds = array<i64: 512, 32>}, {pipeline_mode = #tpu.pipeline_mode<synchronous>, transform_indices = @transform_2, window_bounds = array<i64: 128, 128>}, {pipeline_mode = #tpu.pipeline_mode<synchronous>, transform_indices = @transform_3, window_bounds = array<i64: 1, 128>}, {pipeline_mode = #tpu.pipeline_mode<synchronous>, transform_indices = @transform_4, window_bounds = array<i64: 128, 128>}, {pipeline_mode = #tpu.pipeline_mode<synchronous>, transform_indices = @transform_5, window_bounds = array<i64: 1, 128>}, {pipeline_mode = #tpu.pipeline_mode<synchronous>, transform_indices = @transform_6, window_bounds = array<i64: 32, 128>}, {pipeline_mode = #tpu.pipeline_mode<synchronous>, transform_indices = @transform_7, window_bounds = array<i64: 1, 128>}, {pipeline_mode = #tpu.pipeline_mode<synchronous>, transform_indices = @transform_8, window_bounds = array<i64: 128, 128>}, {pipeline_mode = #tpu.pipeline_mode<synchronous>, transform_indices = @transform_9, window_bounds = array<i64: 1, 128>}, {transform_indices = @transform_10, window_bounds = array<i64: 512, 256>}]} {
    %c0 = arith.constant 0 : index
    %c0_0 = arith.constant 0 : index
    %0 = vector.load %arg1[%c0, %c0_0] : memref<512x128xf32, #tpu.memory_space<vmem>>, vector<512x128xf32>
    %1 = arith.truncf %0 : vector<512x128xf32> to vector<512x128xbf16>
    %c0_1 = arith.constant 0 : index
    %c0_2 = arith.constant 0 : index
    %2 = vector.load %arg3[%c0_1, %c0_2] : memref<128x128xbf16, #tpu.memory_space<vmem>>, vector<128x128xbf16>
    %cst = arith.constant dense<0.000000e+00> : vector<512x128xf32>
    %3 = tpu.matmul %1, %2, %cst {dimension_numbers = #tpu.dot_dimension_numbers<[1], [0], [0], [1], [0, 0, 1, 1], [], []>} : vector<512x128xbf16>, vector<128x128xbf16>, vector<512x128xf32> -> vector<512x128xf32>
    %c0_3 = arith.constant 0 : index
    %c0_4 = arith.constant 0 : index
    %4 = vector.load %arg4[%c0_3, %c0_4] : memref<1x128xf32, #tpu.memory_space<vmem>>, vector<1x128xf32>
    %5 = vector.broadcast %4 : vector<1x128xf32> to vector<512x128xf32>
    %6 = arith.addf %3, %5 : vector<512x128xf32>
    %cst_5 = arith.constant 0.000000e+00 : f32
    %7 = vector.broadcast %cst_5 : f32 to vector<512x128xf32>
    %8 = arith.maximumf %6, %7 : vector<512x128xf32>
    %9 = arith.truncf %8 : vector<512x128xf32> to vector<512x128xbf16>
    %c0_6 = arith.constant 0 : index
    %c0_7 = arith.constant 0 : index
    %10 = vector.load %arg5[%c0_6, %c0_7] : memref<128x128xbf16, #tpu.memory_space<vmem>>, vector<128x128xbf16>
    %cst_8 = arith.constant dense<0.000000e+00> : vector<512x128xf32>
    %11 = tpu.matmul %9, %10, %cst_8 {dimension_numbers = #tpu.dot_dimension_numbers<[1], [0], [0], [1], [0, 0, 1, 1], [], []>} : vector<512x128xbf16>, vector<128x128xbf16>, vector<512x128xf32> -> vector<512x128xf32>
    %c0_9 = arith.constant 0 : index
    %c0_10 = arith.constant 0 : index
    %12 = vector.load %arg6[%c0_9, %c0_10] : memref<1x128xf32, #tpu.memory_space<vmem>>, vector<1x128xf32>
    %13 = vector.broadcast %12 : vector<1x128xf32> to vector<512x128xf32>
    %14 = arith.addf %11, %13 : vector<512x128xf32>
    %15 = vector.extract_strided_slice %14 {offsets = [0, 0], sizes = [512, 32], strides = [1, 1]} : vector<512x128xf32> to vector<512x32xf32>
    %16 = vector.extract_strided_slice %14 {offsets = [0, 32], sizes = [512, 32], strides = [1, 1]} : vector<512x128xf32> to vector<512x32xf32>
    %c0_11 = arith.constant 0 : index
    %c0_12 = arith.constant 0 : index
    %17 = vector.load %arg2[%c0_11, %c0_12] : memref<512x32xf32, #tpu.memory_space<vmem>>, vector<512x32xf32>
    %cst_13 = arith.constant 5.000000e-01 : f32
    %18 = vector.broadcast %cst_13 : f32 to vector<512x32xf32>
    %19 = arith.mulf %18, %16 : vector<512x32xf32>
    %20 = math.exp %19 : vector<512x32xf32>
    %21 = arith.mulf %17, %20 : vector<512x32xf32>
    %22 = arith.addf %21, %15 : vector<512x32xf32>
    %23 = arith.truncf %22 : vector<512x32xf32> to vector<512x32xbf16>
    %c0_14 = arith.constant 0 : index
    %c0_15 = arith.constant 0 : index
    %24 = vector.load %arg7[%c0_14, %c0_15] : memref<32x128xbf16, #tpu.memory_space<vmem>>, vector<32x128xbf16>
    %cst_16 = arith.constant dense<0.000000e+00> : vector<512x128xf32>
    %25 = tpu.matmul %23, %24, %cst_16 {dimension_numbers = #tpu.dot_dimension_numbers<[1], [0], [0], [1], [0, 0, 1, 1], [], []>} : vector<512x32xbf16>, vector<32x128xbf16>, vector<512x128xf32> -> vector<512x128xf32>
    %c0_17 = arith.constant 0 : index
    %c0_18 = arith.constant 0 : index
    %26 = vector.load %arg8[%c0_17, %c0_18] : memref<1x128xf32, #tpu.memory_space<vmem>>, vector<1x128xf32>
    %27 = vector.broadcast %26 : vector<1x128xf32> to vector<512x128xf32>
    %28 = arith.addf %25, %27 : vector<512x128xf32>
    %cst_19 = arith.constant 0.000000e+00 : f32
    %29 = vector.broadcast %cst_19 : f32 to vector<512x128xf32>
    %30 = arith.maximumf %28, %29 : vector<512x128xf32>
    %31 = arith.truncf %30 : vector<512x128xf32> to vector<512x128xbf16>
    %c0_20 = arith.constant 0 : index
    %c0_21 = arith.constant 0 : index
    %32 = vector.load %arg9[%c0_20, %c0_21] : memref<128x128xbf16, #tpu.memory_space<vmem>>, vector<128x128xbf16>
    %cst_22 = arith.constant dense<0.000000e+00> : vector<512x128xf32>
    %33 = tpu.matmul %31, %32, %cst_22 {dimension_numbers = #tpu.dot_dimension_numbers<[1], [0], [0], [1], [0, 0, 1, 1], [], []>} : vector<512x128xbf16>, vector<128x128xbf16>, vector<512x128xf32> -> vector<512x128xf32>
    %c0_23 = arith.constant 0 : index
    %c0_24 = arith.constant 0 : index
    %34 = vector.load %arg10[%c0_23, %c0_24] : memref<1x128xf32, #tpu.memory_space<vmem>>, vector<1x128xf32>
    %35 = vector.broadcast %34 : vector<1x128xf32> to vector<512x128xf32>
    %36 = arith.addf %33, %35 : vector<512x128xf32>
    %cst_25 = arith.constant 0.000000e+00 : f32
    %37 = vector.broadcast %cst_25 : f32 to vector<512x128xf32>
    %38 = arith.subf %37, %36 : vector<512x128xf32>
    %39 = math.exp %38 : vector<512x128xf32>
    %cst_26 = arith.constant 1.000000e+00 : f32
    %40 = vector.broadcast %cst_26 : f32 to vector<512x128xf32>
    %41 = arith.addf %40, %39 : vector<512x128xf32>
    %42 = tpu.reciprocal %41 {approx = true} : vector<512x128xf32> -> vector<512x128xf32>
    %c0_27 = arith.constant 0 : index
    %c0_28 = arith.constant 0 : index
    %43 = vector.load %arg11[%c0_27, %c0_28] : memref<512x256xf32, #tpu.memory_space<vmem>>, vector<512x128xf32>
    tpu.vector_store %arg11[%c0_27, %c0_28], %42 {strides = array<i32>} : memref<512x256xf32, #tpu.memory_space<vmem>>, vector<512x128xf32>,
    %c0_29 = arith.constant 0 : index
    %c128 = arith.constant 128 : index
    %44 = vector.load %arg11[%c0_29, %c128] : memref<512x256xf32, #tpu.memory_space<vmem>>, vector<512x128xf32>
    tpu.vector_store %arg11[%c0_29, %c128], %14 {strides = array<i32>} : memref<512x256xf32, #tpu.memory_space<vmem>>, vector<512x128xf32>,
    return
  }
  func.func @transform_0(%arg0: i32) -> (i32, i32) {
    %c0_i32 = arith.constant 0 : i32
    %c0_i32_0 = arith.constant 0 : i32
    return %arg0, %c0_i32 : i32, i32
  }
  func.func @transform_1(%arg0: i32) -> (i32, i32) {
    %c0_i32 = arith.constant 0 : i32
    %c0_i32_0 = arith.constant 0 : i32
    return %arg0, %c0_i32 : i32, i32
  }
  func.func @transform_2(%arg0: i32) -> (i32, i32) {
    %c0_i32 = arith.constant 0 : i32
    %c0_i32_0 = arith.constant 0 : i32
    %c0_i32_1 = arith.constant 0 : i32
    return %c0_i32, %c0_i32_0 : i32, i32
  }
  func.func @transform_3(%arg0: i32) -> (i32, i32) {
    %c0_i32 = arith.constant 0 : i32
    %c0_i32_0 = arith.constant 0 : i32
    %c0_i32_1 = arith.constant 0 : i32
    return %c0_i32, %c0_i32_0 : i32, i32
  }
  func.func @transform_4(%arg0: i32) -> (i32, i32) {
    %c0_i32 = arith.constant 0 : i32
    %c0_i32_0 = arith.constant 0 : i32
    %c0_i32_1 = arith.constant 0 : i32
    return %c0_i32, %c0_i32_0 : i32, i32
  }
  func.func @transform_5(%arg0: i32) -> (i32, i32) {
    %c0_i32 = arith.constant 0 : i32
    %c0_i32_0 = arith.constant 0 : i32
    %c0_i32_1 = arith.constant 0 : i32
    return %c0_i32, %c0_i32_0 : i32, i32
  }
  func.func @transform_6(%arg0: i32) -> (i32, i32) {
    %c0_i32 = arith.constant 0 : i32
    %c0_i32_0 = arith.constant 0 : i32
    %c0_i32_1 = arith.constant 0 : i32
    return %c0_i32, %c0_i32_0 : i32, i32
  }
  func.func @transform_7(%arg0: i32) -> (i32, i32) {
    %c0_i32 = arith.constant 0 : i32
    %c0_i32_0 = arith.constant 0 : i32
    %c0_i32_1 = arith.constant 0 : i32
    return %c0_i32, %c0_i32_0 : i32, i32
  }
  func.func @transform_8(%arg0: i32) -> (i32, i32) {
    %c0_i32 = arith.constant 0 : i32
    %c0_i32_0 = arith.constant 0 : i32
    %c0_i32_1 = arith.constant 0 : i32
    return %c0_i32, %c0_i32_0 : i32, i32
  }
  func.func @transform_9(%arg0: i32) -> (i32, i32) {
    %c0_i32 = arith.constant 0 : i32
    %c0_i32_0 = arith.constant 0 : i32
    %c0_i32_1 = arith.constant 0 : i32
    return %c0_i32, %c0_i32_0 : i32, i32
  }
  func.func @transform_10(%arg0: i32) -> (i32, i32) {
    %c0_i32 = arith.constant 0 : i32
    %c0_i32_0 = arith.constant 0 : i32
    return %arg0, %c0_i32 : i32, i32
  }
}

</mosaic_0001>

<bundles_post_ra>
// kernel: tpu_custom_call.1
= control target key start
LH: loop header
LB: loop body
LE: loop exit
PB: predicated region body
PF: predicated region fallthrough
CT: control target
= control target key end

     0   :  { %15 = vsyncpa [#allocation3], 0  ;;  %s5588_s0 = inlined_call_operand.vmem [shape: f32[1024,128], index: 0, kind: input, shape index: {}]   ;;  %s5589_s1 = inlined_call_operand.vmem [shape: f32[1024,32], index: 1, kind: input, shape index: {}]   ;;  %s5590_s2 = inlined_call_operand.vmem [shape: bf16[128,128], index: 2, kind: input, shape index: {}]   ;;  %s5591_s3 = inlined_call_operand.vmem [shape: f32[1,128], index: 3, kind: input, shape index: {}]   ;;  %s5592_s4 = inlined_call_operand.vmem [shape: bf16[128,128], index: 4, kind: input, shape index: {}]   ;;  %s5593_s5 = inlined_call_operand.vmem [shape: f32[1,128], index: 5, kind: input, shape index: {}]   ;;  %s5594_s6 = inlined_call_operand.vmem [shape: bf16[32,128], index: 6, kind: input, shape index: {}]   ;;  %s5595_s7 = inlined_call_operand.vmem [shape: f32[1,128], index: 7, kind: input, shape index: {}]   ;;  %s5596_s8 = inlined_call_operand.vmem [shape: bf16[128,128], index: 8, kind: input, shape index: {}]   ;;  %s5597_s9 = inlined_call_operand.vmem [shape: f32[1,128], index: 9, kind: input, shape index: {}]   ;;  %s5598_s10 = inlined_call_operand.hbm [shape: f32[1024,256], index: 10, kind: output, shape index: {}]  }
   0x1   :  { %17 = vsyncpa [#allocation3 + $0x1], 0  ;;  %s4502_s13 = smov 0   ;;  %s4504_s14 = smov 0  }
   0x2   :  { %s4506_s15 = smov 0   ;;  %s4508_s16 = smov 0  }
   0x3 LB: > { %s4523_s17 = sadd.s32 4294967295, %s4441_s16   ;;  %s3370_s18 = sadd.s32 4294967294, %s4441_s16   ;;  %s4441_s16 = sphi %s4508_s16, %s5619_s16   ;;  %s4437_s15 = sphi %s4506_s15, %s5618_s15   ;;  %s4433_s14 = sphi %s4504_s14, %s5617_s14   ;;  %s4429_s13 = sphi %s4502_s13, %s5616_s13  }
   0x4   : > { %s4527_s19 = sadd.s32 1, %s4441_s16   ;;  %s250_s20 = sadd.s32 1, %s4437_s15 }
   0x5   : > { %s247_s21 = ssub.s32 %s4441_s16, %s4527_s19  ;;  %p260_p0 = scmp.ne.s32.totalorder %s4437_s15, %s4433_s14 }
   0x6   : > { %p248_p1 = scmp.eq.s32.totalorder %s247_s21, 0  ;;  %p261_p2 = scmp.eq.s32.totalorder %s4523_s17, 1 }
   0x7   : > { %p266_p3 = scmp.ne.s32.totalorder %s4433_s14, %s4429_s13  ;;  %p267_p4 = scmp.eq.s32.totalorder %s3370_s18, 1 }
   0x8   : > { %s4538_s22 = scalar_select %p248_p1, %s4437_s15, %s250_s20  }
   0x9   : > { %p4540_p5 = por %p261_p2, %p260_p0  ;;  %p4544_p6 = por %p267_p4, %p266_p3 }
   0xa   : > { %p3373_p7 = scmp.ge.s32.totalorder %s4441_s16, 1  ;;  %p327_p8 = scmp.lt.s32.totalorder %s4441_s16, 3 }
   0xc   : > { %p328_p9 = pnand %p3373_p7, %p327_p8 }
   0xe   : > { %331 = sbr.rel (%p328_p9) target bundleno = 1241 (0x4d9), region = 60 }
  0x15   : > { %v3953_v0 = vld [vmem:[%s5590_s2] sm:$0xff]   ;;  %s3375_s27 = sshll.u32 %s4523_s17, 6  ;;  %v3954_v1 = vld [vmem:[%s5590_s2 + $0x8] sm:$0xff]   ;;  %v3955_v2 = vld [vmem:[%s5590_s2 + $0x10] sm:$0xff]   ;;  %s367_s20 = sand.u32 1, %s4433_s14   ;;  %vm1991_vm0 = vcmask 261120  }
  0x16   : > { %p371_p10 = scmp.lt.s32.totalorder %s3375_s27, 127  ;;  %3603 = vmatprep.subr.bf16.mxu0 %v3953_v0  ;;  %v3956_v3 = vld [vmem:[%s5590_s2 + $0x18] sm:$0xff]   ;;  %v3957_v7 = vld [vmem:[%s5590_s2 + $0x20] sm:$0xff]   ;;  %v3958_v8 = vld [vmem:[%s5590_s2 + $0x28] sm:$0xff]   ;;  %s3374_s25 = sshll.u32 %s367_s20, 10 }
  0x17   : > { %3604 = vmatpush3.bf16.msra.mxu0 %v3953_v0  ;;  %v3959_v9 = vld [vmem:[%s5590_s2 + $0x30] sm:$0xff]   ;;  %v3960_v10 = vld [vmem:[%s5590_s2 + $0x38] sm:$0xff]   ;;  %v3961_v16 = vld [vmem:[%s5592_s4] sm:$0xff]   ;;  %s4758_s29 = scalar_lea.vmem [#allocation2], %s3374_s25  ;;  %s5547_s26 = scalar_lea.sflag [#allocation3], %s367_s20 }
  0x18   : > { %s5621_s27 = smov (!%p371_p10, %s3375_s27), 127  ;;  %3605 = vmatprep.subr.bf16.mxu0 %v3954_v1  ;;  %v3962_v18 = vld [vmem:[%s5592_s4 + $0x8] sm:$0xff]   ;;  %3683 = vmatprep.subr.bf16.mxu1 %v3961_v16  ;;  %v3963_v22 = vld [vmem:[%s5592_s4 + $0x10] sm:$0xff]   ;;  %v3964_v24 = vld [vmem:[%s5592_s4 + $0x18] sm:$0xff]   ;;  %s3296_s11 = sshll.u32 %s4758_s29, 4  ;;  %s5541_s11 = int_to_ptr.vmem [resolvable:$true] %s3296_s11 }
  0x19   : > { %s3376_s12 = sshll.u32 %s5621_s27, 3  ;;  %3684 = vmatpush3.bf16.msra.mxu1 %v3961_v16  ;;  %v3965_v27 = vld [vmem:[%s5592_s4 + $0x20] sm:$0xff]   ;;  %v3966_v33 = vld [vmem:[%s5592_s4 + $0x28] sm:$0xff]   ;;  %s4379_s28 = scalar_lea.vmem %s5541_s11, 16384 }
  0x1a   : > { %s4568_s21 = scalar_lea.vmem %s5588_s0, %s3376_s12  ;;  %3685 = vmatprep.subr.bf16.mxu1 %v3962_v18  ;;  %s5149_s30 = scalar_lea.vmem %s5589_s1, %s3376_s12 }
  0x1b   : > { %3606 = vmatpush3.bf16.msra.mxu0 %v3954_v1  ;;  %v384_v4 = vld [vmem:[%s4568_s21] sm:$0xff]  ;;  %v385_v5 = vld [vmem:[%s4568_s21 + $0x8] sm:$0xff]  ;;  %v386_v11 = vld [vmem:[%s4568_s21 + $0x10] sm:$0xff]  ;;  %s3448_s12 = sshll.u32 %s4523_s17, 14  ;;  %p4380_p11 = scmp.ne.s32.totalorder %s5541_s11, %s4379_s28 }
  0x1c   : > { %3607 = vmatprep.subr.bf16.mxu0 %v3955_v2  ;;  %v448_v6 = vpack.c.bf16 %v385_v5, %v384_v4  ;;  %v387_v12 = vld [vmem:[%s4568_s21 + $0x18] sm:$0xff]  ;;  %v388_v13 = vld [vmem:[%s4568_s21 + $0x20] sm:$0xff]  ;;  %v389_v14 = vld [vmem:[%s4568_s21 + $0x28] sm:$0xff]  ;;  %s5539_s25 = scalar_lea.hbm %s5598_s10, %s3448_s12  ;;  %s4444_s17 = smov [#allocation2]  }
  0x1d   : > { %v449_v15 = vpack.c.bf16 %v387_v12, %v386_v11  ;;  %v450_v17 = vpack.c.bf16 %v389_v14, %v388_v13  ;;  %v390_v19 = vld [vmem:[%s4568_s21 + $0x30] sm:$0xff]  ;;  %v391_v20 = vld [vmem:[%s4568_s21 + $0x38] sm:$0xff]  ;;  %v392_v21 = vld [vmem:[%s4568_s21 + $0x40] sm:$0xff]  ;;  %3686 = vmatpush3.bf16.msra.mxu1 %v3962_v18  ;;  %p4381_p12 = pnand %p4380_p11, %p4540_p5  ;;  %s4383_s27 = sshll.u32 %s4444_s17, 4  ;;  %s4384_s27 = int_to_ptr.vmem [resolvable:$false] %s4383_s27 }
  0x1e   : > { %3619 = vmatprep.mubr.bf16.mxu0 %v448_v6  ;;  %v393_v23 = vld [vmem:[%s4568_s21 + $0x48] sm:$0xff]  ;;  %v451_v25 = vpack.c.bf16 %v391_v20, %v390_v19  ;;  %3687 = vmatprep.subr.bf16.mxu1 %v3963_v22  ;;  %v394_v28 = vld [vmem:[%s4568_s21 + $0x50] sm:$0xff]  ;;  %v395_v29 = vld [vmem:[%s4568_s21 + $0x58] sm:$0xff]  ;;  %p4386_p0 = scmp.lt.s32.totalorder %s5541_s11, %s4384_s27 }
  0x1f   : > { %3608 = vmatpush3.bf16.msra.mxu0 %v3955_v2  ;;  %v452_v26 = vpack.c.bf16 %v393_v23, %v392_v21  ;;  %v396_v30 = vld [vmem:[%s4568_s21 + $0x60] sm:$0xff]  ;;  %v397_v31 = vld [vmem:[%s4568_s21 + $0x68] sm:$0xff]  ;;  %v453_v32 = vpack.c.bf16 %v395_v29, %v394_v28  ;;  %v398_v35 = vld [vmem:[%s4568_s21 + $0x70] sm:$0xff]  ;;  %p4382_p13 = pneg %p4381_p12 }
  0x20   : > { %3609 = vmatprep.subr.bf16.mxu0 %v3956_v3  ;;  %v454_v34 = vpack.c.bf16 %v397_v31, %v396_v30  ;;  %v399_v36 = vld [vmem:[%s4568_s21 + $0x78] sm:$0xff]  ;;  %v400_v37 = vld [vmem:[%s4568_s21 + $0x80] sm:$0xff]  ;;  %v401_v38 = vld [vmem:[%s4568_s21 + $0x88] sm:$0xff] }
  0x21   : > { %3688 = vmatpush3.bf16.msra.mxu1 %v3963_v22  ;;  %v455_v39 = vpack.c.bf16 %v399_v36, %v398_v35  ;;  %v456_v40 = vpack.c.bf16 %v401_v38, %v400_v37  ;;  %v402_v41 = vld [vmem:[%s4568_s21 + $0x90] sm:$0xff]  ;;  %v403_v42 = vld [vmem:[%s4568_s21 + $0x98] sm:$0xff]  ;;  %v404_v43 = vld [vmem:[%s4568_s21 + $0xa0] sm:$0xff] }
  0x22   : > { %3689 = vmatprep.subr.bf16.mxu1 %v3964_v24  ;;  %v405_v44 = vld [vmem:[%s4568_s21 + $0xa8] sm:$0xff]  ;;  %v457_v45 = vpack.c.bf16 %v403_v42, %v402_v41  ;;  %v406_v47 = vld [vmem:[%s4568_s21 + $0xb0] sm:$0xff]  ;;  %v407_v48 = vld [vmem:[%s4568_s21 + $0xb8] sm:$0xff] }
  0x23   : > { %3610 = vmatpush3.bf16.msra.mxu0 %v3956_v3  ;;  %v458_v46 = vpack.c.bf16 %v405_v44, %v404_v43  ;;  %v408_v49 = vld [vmem:[%s4568_s21 + $0xc0] sm:$0xff]  ;;  %v409_v50 = vld [vmem:[%s4568_s21 + $0xc8] sm:$0xff]  ;;  %v459_v51 = vpack.c.bf16 %v407_v48, %v406_v47  ;;  %v410_v53 = vld [vmem:[%s4568_s21 + $0xd0] sm:$0xff] }
  0x24   : > { %3611 = vmatprep.subr.bf16.mxu0 %v3957_v7  ;;  %v460_v52 = vpack.c.bf16 %v409_v50, %v408_v49  ;;  %v411_v54 = vld [vmem:[%s4568_s21 + $0xd8] sm:$0xff]  ;;  %v412_v55 = vld [vmem:[%s4568_s21 + $0xe0] sm:$0xff]  ;;  %v413_v56 = vld [vmem:[%s4568_s21 + $0xe8] sm:$0xff] }
  0x25   : > { %3690 = vmatpush3.bf16.msra.mxu1 %v3964_v24  ;;  %v461_v57 = vpack.c.bf16 %v411_v54, %v410_v53  ;;  %v462_v58 = vpack.c.bf16 %v413_v56, %v412_v55  ;;  %v414_v59 = vld [vmem:[%s4568_s21 + $0xf0] sm:$0xff]  ;;  %v415_v60 = vld [vmem:[%s4568_s21 + $0xf8] sm:$0xff]  ;;  %v416_v61 = vld [vmem:[%s4568_s21 + $0x100] sm:$0xff] }
  0x26   : > { %3691 = vmatprep.subr.bf16.mxu1 %v3965_v27  ;;  %v417_v62 = vld [vmem:[%s4568_s21 + $0x108] sm:$0xff]  ;;  %v463_v63 = vpack.c.bf16 %v415_v60, %v414_v59  ;;  %v418_v1 = vld [vmem:[%s4568_s21 + $0x110] sm:$0xff]  ;;  %v419_v2 = vld [vmem:[%s4568_s21 + $0x118] sm:$0xff] }
  0x27   : > { %3612 = vmatpush3.bf16.msra.mxu0 %v3957_v7  ;;  %v464_v0 = vpack.c.bf16 %v417_v62, %v416_v61  ;;  %v420_v3 = vld [vmem:[%s4568_s21 + $0x120] sm:$0xff]  ;;  %v421_v4 = vld [vmem:[%s4568_s21 + $0x128] sm:$0xff]  ;;  %v465_v5 = vpack.c.bf16 %v419_v2, %v418_v1  ;;  %v422_v7 = vld [vmem:[%s4568_s21 + $0x130] sm:$0xff] }
  0x28   : > { %3613 = vmatprep.subr.bf16.mxu0 %v3958_v8  ;;  %v466_v6 = vpack.c.bf16 %v421_v4, %v420_v3  ;;  %v426_v13 = vld [vmem:[%s4568_s21 + $0x150] sm:$0xff]  ;;  %v427_v14 = vld [vmem:[%s4568_s21 + $0x158] sm:$0xff]  ;;  %v429_v16 = vld [vmem:[%s4568_s21 + $0x168] sm:$0xff] }
  0x29   : > { %3692 = vmatpush3.bf16.msra.mxu1 %v3965_v27  ;;  %v430_v19 = vld [vmem:[%s4568_s21 + $0x170] sm:$0xff]  ;;  %v431_v20 = vld [vmem:[%s4568_s21 + $0x178] sm:$0xff]  ;;  %v432_v21 = vld [vmem:[%s4568_s21 + $0x180] sm:$0xff] }
  0x2a   : > { %3693 = vmatprep.subr.bf16.mxu1 %v3966_v33  ;;  %v433_v22 = vld [vmem:[%s4568_s21 + $0x188] sm:$0xff]  ;;  %v471_v23 = vpack.c.bf16 %v431_v20, %v430_v19  ;;  %v3967_v24 = vld [vmem:[%s5592_s4 + $0x30] sm:$0xff]   ;;  %v435_v28 = vld [vmem:[%s4568_s21 + $0x198] sm:$0xff] }
  0x2b   : > { %3614 = vmatpush3.bf16.msra.mxu0 %v3958_v8  ;;  %v423_v8 = vld [vmem:[%s4568_s21 + $0x138] sm:$0xff]  ;;  %v434_v27 = vld [vmem:[%s4568_s21 + $0x190] sm:$0xff]  ;;  %v436_v29 = vld [vmem:[%s4568_s21 + $0x1a0] sm:$0xff] }
  0x2c   : > { %3615 = vmatprep.subr.bf16.mxu0 %v3959_v9  ;;  %v467_v11 = vpack.c.bf16 %v423_v8, %v422_v7  ;;  %v437_v30 = vld [vmem:[%s4568_s21 + $0x1a8] sm:$0xff]  ;;  %v473_v31 = vpack.c.bf16 %v435_v28, %v434_v27  ;;  %v440_v35 = vld [vmem:[%s4568_s21 + $0x1c0] sm:$0xff] }
  0x2d   : > { %3694 = vmatpush3.bf16.msra.mxu1 %v3966_v33  ;;  %v438_v33 = vld [vmem:[%s4568_s21 + $0x1b0] sm:$0xff]  ;;  %v441_v36 = vld [vmem:[%s4568_s21 + $0x1c8] sm:$0xff]  ;;  %v444_v41 = vld [vmem:[%s4568_s21 + $0x1e0] sm:$0xff] }
  0x2e   : > { %3695 = vmatprep.subr.bf16.mxu1 %v3967_v24  ;;  %v476_v38 = vpack.c.bf16 %v441_v36, %v440_v35  ;;  %v445_v42 = vld [vmem:[%s4568_s21 + $0x1e8] sm:$0xff]  ;;  %v4676_v48 = vld [vmem:[%s5591_s3] ss:$0 sm:$0xff] }
  0x2f   : > { %3616 = vmatpush3.bf16.msra.mxu0 %v3959_v9  ;;  %v424_v9 = vld [vmem:[%s4568_s21 + $0x140] sm:$0xff]  ;;  %v478_v44 = vpack.c.bf16 %v445_v42, %v444_v41 }
  0x30   : > { %3617 = vmatprep.subr.bf16.mxu0 %v3960_v10 }
  0x31   : > { %3696 = vmatpush3.bf16.msra.mxu1 %v3967_v24 }
  0x33   : > { %3618 = vmatpush3.bf16.msra.mxu0 %v3960_v10  ;;  %v425_v10 = vld [vmem:[%s4568_s21 + $0x148] sm:$0xff] }
  0x34   : > { %v468_v12 = vpack.c.bf16 %v425_v10, %v424_v9 }
  0x36   : > { %3620 = vmatmul.mubr.bf16.vlgmr.msra.gmra.mrb[0].mxu0 %v449_v15  ;;  %v428_v15 = vld [vmem:[%s4568_s21 + $0x160] sm:$0xff] }
  0x37   : > { %3623 = vmatprep.mubr.bf16.mxu0 %v450_v17  ;;  %v469_v17 = vpack.c.bf16 %v427_v14, %v426_v13  ;;  %v470_v18 = vpack.c.bf16 %v429_v16, %v428_v15 }
  0x3e   : > { %3624 = vmatmul.mubr.bf16.gmra.mrb[4].mxu0 %v451_v25  ;;  %v472_v25 = vpack.c.bf16 %v433_v22, %v432_v21 }
  0x3f   : > { %3627 = vmatprep.mubr.bf16.mxu0 %v452_v26  ;;  %v3968_v26 = vld [vmem:[%s5592_s4 + $0x38] sm:$0xff]  }
  0x40   : > { %3697 = vmatprep.subr.bf16.mxu1 %v3968_v26 }
  0x41   : > { %3698 = vmatpush3.bf16.msra.mxu1 %v3968_v26 }
  0x46   : > { %3628 = vmatmul.mubr.bf16.gmra.mrb[8].mxu0 %v453_v32  ;;  %v474_v32 = vpack.c.bf16 %v437_v30, %v436_v29 }
  0x47   : > { %3631 = vmatprep.mubr.bf16.mxu0 %v454_v34  ;;  %v439_v34 = vld [vmem:[%s4568_s21 + $0x1b8] sm:$0xff] }
  0x48   : > { %v475_v37 = vpack.c.bf16 %v439_v34, %v438_v33 }
  0x4e   : > { %3632 = vmatmul.mubr.bf16.gmra.mrb[12].mxu0 %v455_v39  ;;  %v442_v39 = vld [vmem:[%s4568_s21 + $0x1d0] sm:$0xff] }
  0x4f   : > { %3635 = vmatprep.mubr.bf16.mxu0 %v456_v40  ;;  %v443_v40 = vld [vmem:[%s4568_s21 + $0x1d8] sm:$0xff] }
  0x50   : > { %v477_v43 = vpack.c.bf16 %v443_v40, %v442_v39 }
  0x56   : > { %3636 = vmatmul.mubr.bf16.gmra.mrb[16].mxu0 %v457_v45  ;;  %v446_v45 = vld [vmem:[%s4568_s21 + $0x1f0] sm:$0xff] }
  0x57   : > { %3639 = vmatprep.mubr.bf16.mxu0 %v458_v46  ;;  %v447_v46 = vld [vmem:[%s4568_s21 + $0x1f8] sm:$0xff]  ;;  %s4443_s21 = smov 96  }
  0x58   : > { %v479_v47 = vpack.c.bf16 %v447_v46, %v446_v45 }
  0x5e   : > { %3640 = vmatmul.mubr.bf16.gmra.mrb[20].mxu0 %v459_v51 }
  0x5f   : > { %3643 = vmatprep.mubr.bf16.mxu0 %v460_v52 }
  0x66   : > { %3644 = vmatmul.mubr.bf16.gmra.mrb[24].mxu0 %v461_v57 }
  0x67   : > { %3647 = vmatprep.mubr.bf16.mxu0 %v462_v58 }
  0x6e   : > { %3648 = vmatmul.mubr.bf16.gmra.mrb[28].mxu0 %v463_v63 }
  0x6f   : > { %3651 = vmatprep.mubr.bf16.mxu0 %v464_v0 }
  0x76   : > { %3652 = vmatmul.mubr.bf16.gmra.mrb[32].mxu0 %v465_v5 }
  0x77   : > { %3655 = vmatprep.mubr.bf16.mxu0 %v466_v6 }
  0x7e   : > { %3656 = vmatmul.mubr.bf16.gmra.mrb[36].mxu0 %v467_v11 }
  0x7f   : > { %3659 = vmatprep.mubr.bf16.mxu0 %v468_v12 }
  0x86   : > { %3660 = vmatmul.mubr.bf16.gmra.mrb[40].mxu0 %v469_v17 }
  0x87   : > { %3663 = vmatprep.mubr.bf16.mxu0 %v470_v18 }
  0x8e   : > { %3664 = vmatmul.mubr.bf16.gmra.mrb[44].mxu0 %v471_v23 }
  0x8f   : > { %3667 = vmatprep.mubr.bf16.mxu0 %v472_v25 }
  0x96   : > { %3668 = vmatmul.mubr.bf16.gmra.mrb[48].mxu0 %v473_v31 }
  0x97   : > { %3671 = vmatprep.mubr.bf16.mxu0 %v474_v32 }
  0x9e   : > { %3672 = vmatmul.mubr.bf16.gmra.mrb[52].mxu0 %v475_v37 }
  0x9f   : > { %3675 = vmatprep.mubr.bf16.mxu0 %v476_v38 }
  0xa6   : > { %3676 = vmatmul.mubr.bf16.gmra.mrb[56].mxu0 %v477_v43 }
  0xa7   : > { %3679 = vmatprep.mubr.bf16.mxu0 %v478_v44 }
  0xae   : > { %3680 = vmatmul.mubr.bf16.gmra.mrb[60].mxu0 %v479_v47 }
 0x109   : > { %v3621_v49 = vpop.f32.mrb[0].mxu0 }
 0x10a   : > { %v594_v50 = vadd.f32 %v3621_v49, %v4676_v48  ;;  %v585_v51 = vpop.f32.mrb[1].mxu0 }
 0x10b   : > { %v586_v52 = vadd.f32 %v4676_v48, %v585_v51  ;;  %v3622_v53 = vpop.f32.mrb[2].mxu0 }
 0x10c   : > { %v597_v54 = vadd.f32 %v3622_v53, %v4676_v48  ;;  %v588_v55 = vpop.f32.mrb[3].mxu0  ;;  %v842_v57 = vmax.f32 %v594_v50, 0.0 }
 0x10d   : > { %v589_v56 = vadd.f32 %v4676_v48, %v588_v55  ;;  %v840_v59 = vmax.f32 %v586_v52, 0.0 }
 0x10e   : > { %v843_v58 = vmax.f32 %v597_v54, 0.0 }
 0x10f   : > { %v841_v60 = vmax.f32 %v589_v56, 0.0 }
 0x110   : > { %v905_v61 = vpack.c.bf16 %v843_v58, %v842_v57 }
 0x111   : > { %v3625_v62 = vpop.f32.mrb[4].mxu0  ;;  %v904_v63 = vpack.c.bf16 %v841_v60, %v840_v59 }
 0x112   : > { %v610_v0 = vadd.f32 %v3625_v62, %v4676_v48  ;;  %v601_v1 = vpop.f32.mrb[5].mxu0 }
 0x113   : > { %v602_v2 = vadd.f32 %v4676_v48, %v601_v1  ;;  %v3626_v3 = vpop.f32.mrb[6].mxu0  ;;  %3699 = vmatprep.mubr.bf16.mxu1 %v904_v63 }
 0x114   : > { %v613_v4 = vadd.f32 %v3626_v3, %v4676_v48  ;;  %v604_v5 = vpop.f32.mrb[7].mxu0  ;;  %3700 = vmatmul.mubr.bf16.vlgmr.msra.gmra.mrb[0].mxu1 %v905_v61  ;;  %v846_v7 = vmax.f32 %v610_v0, 0.0 }
 0x115   : > { %v605_v6 = vadd.f32 %v4676_v48, %v604_v5  ;;  %v844_v9 = vmax.f32 %v602_v2, 0.0 }
 0x116   : > { %v847_v8 = vmax.f32 %v613_v4, 0.0 }
 0x117   : > { %v845_v10 = vmax.f32 %v605_v6, 0.0 }
 0x118   : > { %v907_v11 = vpack.c.bf16 %v847_v8, %v846_v7 }
 0x119   : > { %v906_v12 = vpack.c.bf16 %v845_v10, %v844_v9  ;;  %v3629_v13 = vpop.f32.mrb[8].mxu0 }
 0x11a   : > { %v626_v14 = vadd.f32 %v3629_v13, %v4676_v48  ;;  %v617_v15 = vpop.f32.mrb[9].mxu0 }
 0x11b   : > { %v618_v16 = vadd.f32 %v4676_v48, %v617_v15  ;;  %v3630_v17 = vpop.f32.mrb[10].mxu0  ;;  %3703 = vmatprep.mubr.bf16.mxu1 %v906_v12 }
 0x11c   : > { %v629_v18 = vadd.f32 %v3630_v17, %v4676_v48  ;;  %v620_v19 = vpop.f32.mrb[11].mxu0  ;;  %3704 = vmatmul.mubr.bf16.gmra.mrb[4].mxu1 %v907_v11  ;;  %v850_v21 = vmax.f32 %v626_v14, 0.0 }
 0x11d   : > { %v621_v20 = vadd.f32 %v4676_v48, %v620_v19  ;;  %v848_v23 = vmax.f32 %v618_v16, 0.0 }
 0x11e   : > { %v851_v22 = vmax.f32 %v629_v18, 0.0 }
 0x11f   : > { %v849_v24 = vmax.f32 %v621_v20, 0.0 }
 0x120   : > { %v909_v25 = vpack.c.bf16 %v851_v22, %v850_v21 }
 0x121   : > { %v908_v26 = vpack.c.bf16 %v849_v24, %v848_v23  ;;  %v3633_v27 = vpop.f32.mrb[12].mxu0 }
 0x122   : > { %v642_v28 = vadd.f32 %v3633_v27, %v4676_v48  ;;  %v633_v29 = vpop.f32.mrb[13].mxu0 }
 0x123   : > { %v634_v30 = vadd.f32 %v4676_v48, %v633_v29  ;;  %v3634_v31 = vpop.f32.mrb[14].mxu0  ;;  %3707 = vmatprep.mubr.bf16.mxu1 %v908_v26 }
 0x124   : > { %v645_v32 = vadd.f32 %v3634_v31, %v4676_v48  ;;  %v636_v33 = vpop.f32.mrb[15].mxu0  ;;  %3708 = vmatmul.mubr.bf16.gmra.mrb[8].mxu1 %v909_v25  ;;  %v854_v35 = vmax.f32 %v642_v28, 0.0 }
 0x125   : > { %v637_v34 = vadd.f32 %v4676_v48, %v636_v33  ;;  %v852_v37 = vmax.f32 %v634_v30, 0.0 }
 0x126   : > { %v855_v36 = vmax.f32 %v645_v32, 0.0 }
 0x127   : > { %v853_v38 = vmax.f32 %v637_v34, 0.0 }
 0x128   : > { %v911_v39 = vpack.c.bf16 %v855_v36, %v854_v35 }
 0x129   : > { %v910_v40 = vpack.c.bf16 %v853_v38, %v852_v37  ;;  %v3637_v41 = vpop.f32.mrb[16].mxu0 }
 0x12a   : > { %v658_v42 = vadd.f32 %v3637_v41, %v4676_v48  ;;  %v649_v43 = vpop.f32.mrb[17].mxu0 }
 0x12b   : > { %v650_v44 = vadd.f32 %v4676_v48, %v649_v43  ;;  %v3638_v45 = vpop.f32.mrb[18].mxu0  ;;  %3711 = vmatprep.mubr.bf16.mxu1 %v910_v40 }
 0x12c   : > { %v661_v46 = vadd.f32 %v3638_v45, %v4676_v48  ;;  %v652_v47 = vpop.f32.mrb[19].mxu0  ;;  %3712 = vmatmul.mubr.bf16.gmra.mrb[12].mxu1 %v911_v39  ;;  %v858_v50 = vmax.f32 %v658_v42, 0.0 }
 0x12d   : > { %v653_v49 = vadd.f32 %v4676_v48, %v652_v47  ;;  %v856_v52 = vmax.f32 %v650_v44, 0.0 }
 0x12e   : > { %v859_v51 = vmax.f32 %v661_v46, 0.0 }
 0x12f   : > { %v857_v53 = vmax.f32 %v653_v49, 0.0 }
 0x130   : > { %v913_v54 = vpack.c.bf16 %v859_v51, %v858_v50 }
 0x131   : > { %v912_v55 = vpack.c.bf16 %v857_v53, %v856_v52  ;;  %v3641_v56 = vpop.f32.mrb[20].mxu0 }
 0x132   : > { %v674_v57 = vadd.f32 %v3641_v56, %v4676_v48  ;;  %v665_v58 = vpop.f32.mrb[21].mxu0 }
 0x133   : > { %v666_v59 = vadd.f32 %v4676_v48, %v665_v58  ;;  %v3642_v60 = vpop.f32.mrb[22].mxu0  ;;  %3715 = vmatprep.mubr.bf16.mxu1 %v912_v55 }
 0x134   : > { %v677_v61 = vadd.f32 %v3642_v60, %v4676_v48  ;;  %v668_v62 = vpop.f32.mrb[23].mxu0  ;;  %3716 = vmatmul.mubr.bf16.gmra.mrb[16].mxu1 %v913_v54  ;;  %v862_v0 = vmax.f32 %v674_v57, 0.0 }
 0x135   : > { %v669_v63 = vadd.f32 %v4676_v48, %v668_v62  ;;  %v860_v2 = vmax.f32 %v666_v59, 0.0 }
 0x136   : > { %v863_v1 = vmax.f32 %v677_v61, 0.0 }
 0x137   : > { %v861_v3 = vmax.f32 %v669_v63, 0.0 }
 0x138   : > { %v915_v4 = vpack.c.bf16 %v863_v1, %v862_v0 }
 0x139   : > { %v914_v5 = vpack.c.bf16 %v861_v3, %v860_v2  ;;  %v3645_v6 = vpop.f32.mrb[24].mxu0 }
 0x13a   : > { %v690_v7 = vadd.f32 %v3645_v6, %v4676_v48  ;;  %v681_v8 = vpop.f32.mrb[25].mxu0 }
 0x13b   : > { %v682_v9 = vadd.f32 %v4676_v48, %v681_v8  ;;  %v3646_v10 = vpop.f32.mrb[26].mxu0  ;;  %3719 = vmatprep.mubr.bf16.mxu1 %v914_v5 }
 0x13c   : > { %v693_v11 = vadd.f32 %v3646_v10, %v4676_v48  ;;  %v684_v12 = vpop.f32.mrb[27].mxu0  ;;  %3720 = vmatmul.mubr.bf16.gmra.mrb[20].mxu1 %v915_v4  ;;  %v866_v14 = vmax.f32 %v690_v7, 0.0 }
 0x13d   : > { %v685_v13 = vadd.f32 %v4676_v48, %v684_v12  ;;  %v864_v16 = vmax.f32 %v682_v9, 0.0 }
 0x13e   : > { %v867_v15 = vmax.f32 %v693_v11, 0.0 }
 0x13f   : > { %v865_v17 = vmax.f32 %v685_v13, 0.0 }
 0x140   : > { %v917_v18 = vpack.c.bf16 %v867_v15, %v866_v14 }
 0x141   : > { %v916_v19 = vpack.c.bf16 %v865_v17, %v864_v16  ;;  %v3649_v20 = vpop.f32.mrb[28].mxu0 }
 0x142   : > { %v706_v21 = vadd.f32 %v3649_v20, %v4676_v48  ;;  %v697_v22 = vpop.f32.mrb[29].mxu0 }
 0x143   : > { %v698_v23 = vadd.f32 %v4676_v48, %v697_v22  ;;  %v3650_v24 = vpop.f32.mrb[30].mxu0  ;;  %3723 = vmatprep.mubr.bf16.mxu1 %v916_v19 }
 0x144   : > { %v709_v25 = vadd.f32 %v3650_v24, %v4676_v48  ;;  %v700_v26 = vpop.f32.mrb[31].mxu0  ;;  %3724 = vmatmul.mubr.bf16.gmra.mrb[24].mxu1 %v917_v18  ;;  %v870_v28 = vmax.f32 %v706_v21, 0.0 }
 0x145   : > { %v701_v27 = vadd.f32 %v4676_v48, %v700_v26  ;;  %v868_v30 = vmax.f32 %v698_v23, 0.0 }
 0x146   : > { %v871_v29 = vmax.f32 %v709_v25, 0.0 }
 0x147   : > { %v869_v31 = vmax.f32 %v701_v27, 0.0 }
 0x148   : > { %v919_v32 = vpack.c.bf16 %v871_v29, %v870_v28 }
 0x149   : > { %v918_v33 = vpack.c.bf16 %v869_v31, %v868_v30  ;;  %v3653_v34 = vpop.f32.mrb[32].mxu0 }
 0x14a   : > { %v722_v35 = vadd.f32 %v3653_v34, %v4676_v48  ;;  %v713_v36 = vpop.f32.mrb[33].mxu0 }
 0x14b   : > { %v714_v37 = vadd.f32 %v4676_v48, %v713_v36  ;;  %v3654_v38 = vpop.f32.mrb[34].mxu0  ;;  %3727 = vmatprep.mubr.bf16.mxu1 %v918_v33 }
 0x14c   : > { %v725_v39 = vadd.f32 %v3654_v38, %v4676_v48  ;;  %v716_v40 = vpop.f32.mrb[35].mxu0  ;;  %3728 = vmatmul.mubr.bf16.gmra.mrb[28].mxu1 %v919_v32  ;;  %v874_v42 = vmax.f32 %v722_v35, 0.0 }
 0x14d   : > { %v717_v41 = vadd.f32 %v4676_v48, %v716_v40  ;;  %v872_v44 = vmax.f32 %v714_v37, 0.0 }
 0x14e   : > { %v875_v43 = vmax.f32 %v725_v39, 0.0 }
 0x14f   : > { %v873_v45 = vmax.f32 %v717_v41, 0.0 }
 0x150   : > { %v921_v46 = vpack.c.bf16 %v875_v43, %v874_v42 }
 0x151   : > { %v920_v47 = vpack.c.bf16 %v873_v45, %v872_v44  ;;  %v3657_v49 = vpop.f32.mrb[36].mxu0 }
 0x152   : > { %v738_v50 = vadd.f32 %v3657_v49, %v4676_v48  ;;  %v729_v51 = vpop.f32.mrb[37].mxu0 }
 0x153   : > { %v730_v52 = vadd.f32 %v4676_v48, %v729_v51  ;;  %v3658_v53 = vpop.f32.mrb[38].mxu0  ;;  %3731 = vmatprep.mubr.bf16.mxu1 %v920_v47 }
 0x154   : > { %v741_v54 = vadd.f32 %v3658_v53, %v4676_v48  ;;  %v732_v55 = vpop.f32.mrb[39].mxu0  ;;  %3732 = vmatmul.mubr.bf16.gmra.mrb[32].mxu1 %v921_v46  ;;  %v878_v57 = vmax.f32 %v738_v50, 0.0 }
 0x155   : > { %v733_v56 = vadd.f32 %v4676_v48, %v732_v55  ;;  %v876_v59 = vmax.f32 %v730_v52, 0.0 }
 0x156   : > { %v879_v58 = vmax.f32 %v741_v54, 0.0 }
 0x157   : > { %v877_v60 = vmax.f32 %v733_v56, 0.0 }
 0x158   : > { %v923_v61 = vpack.c.bf16 %v879_v58, %v878_v57 }
 0x159   : > { %v922_v62 = vpack.c.bf16 %v877_v60, %v876_v59  ;;  %v3661_v63 = vpop.f32.mrb[40].mxu0 }
 0x15a   : > { %v754_v0 = vadd.f32 %v3661_v63, %v4676_v48  ;;  %v745_v1 = vpop.f32.mrb[41].mxu0 }
 0x15b   : > { %v746_v2 = vadd.f32 %v4676_v48, %v745_v1  ;;  %v3662_v3 = vpop.f32.mrb[42].mxu0  ;;  %3735 = vmatprep.mubr.bf16.mxu1 %v922_v62 }
 0x15c   : > { %v757_v4 = vadd.f32 %v3662_v3, %v4676_v48  ;;  %v748_v5 = vpop.f32.mrb[43].mxu0  ;;  %3736 = vmatmul.mubr.bf16.gmra.mrb[36].mxu1 %v923_v61  ;;  %v882_v7 = vmax.f32 %v754_v0, 0.0 }
 0x15d   : > { %v749_v6 = vadd.f32 %v4676_v48, %v748_v5  ;;  %v880_v9 = vmax.f32 %v746_v2, 0.0 }
 0x15e   : > { %v883_v8 = vmax.f32 %v757_v4, 0.0  ;;  %v3969_v4 = vld [vmem:[%s5594_s6] sm:$0xff]  }
 0x15f   : > { %v881_v10 = vmax.f32 %v749_v6, 0.0  ;;  %3763 = vmatprep.subr.bf16.mxu0 %v3969_v4 }
 0x160   : > { %v925_v11 = vpack.c.bf16 %v883_v8, %v882_v7  ;;  %3764 = vmatpush3.bf16.msra.mxu0 %v3969_v4 }
 0x161   : > { %v924_v12 = vpack.c.bf16 %v881_v10, %v880_v9  ;;  %v3665_v13 = vpop.f32.mrb[44].mxu0 }
 0x162   : > { %v770_v14 = vadd.f32 %v3665_v13, %v4676_v48  ;;  %v761_v15 = vpop.f32.mrb[45].mxu0 }
 0x163   : > { %v762_v16 = vadd.f32 %v4676_v48, %v761_v15  ;;  %v3666_v17 = vpop.f32.mrb[46].mxu0  ;;  %3739 = vmatprep.mubr.bf16.mxu1 %v924_v12 }
 0x164   : > { %v773_v18 = vadd.f32 %v3666_v17, %v4676_v48  ;;  %v764_v19 = vpop.f32.mrb[47].mxu0  ;;  %3740 = vmatmul.mubr.bf16.gmra.mrb[40].mxu1 %v925_v11  ;;  %v886_v21 = vmax.f32 %v770_v14, 0.0 }
 0x165   : > { %v765_v20 = vadd.f32 %v4676_v48, %v764_v19  ;;  %v884_v23 = vmax.f32 %v762_v16, 0.0 }
 0x166   : > { %v887_v22 = vmax.f32 %v773_v18, 0.0 }
 0x167   : > { %v885_v24 = vmax.f32 %v765_v20, 0.0 }
 0x168   : > { %v927_v25 = vpack.c.bf16 %v887_v22, %v886_v21  ;;  %v3970_v21 = vld [vmem:[%s5594_s6 + $0x8] sm:$0xff]  }
 0x169   : > { %v926_v26 = vpack.c.bf16 %v885_v24, %v884_v23  ;;  %v3669_v27 = vpop.f32.mrb[48].mxu0  ;;  %3765 = vmatprep.subr.bf16.mxu0 %v3970_v21 }
 0x16a   : > { %v786_v28 = vadd.f32 %v3669_v27, %v4676_v48  ;;  %v777_v29 = vpop.f32.mrb[49].mxu0  ;;  %3766 = vmatpush3.bf16.msra.mxu0 %v3970_v21 }
 0x16b   : > { %v778_v30 = vadd.f32 %v4676_v48, %v777_v29  ;;  %v3670_v31 = vpop.f32.mrb[50].mxu0  ;;  %3743 = vmatprep.mubr.bf16.mxu1 %v926_v26 }
 0x16c   : > { %v789_v32 = vadd.f32 %v3670_v31, %v4676_v48  ;;  %v780_v33 = vpop.f32.mrb[51].mxu0  ;;  %3744 = vmatmul.mubr.bf16.gmra.mrb[44].mxu1 %v927_v25  ;;  %v890_v35 = vmax.f32 %v786_v28, 0.0 }
 0x16d   : > { %v781_v34 = vadd.f32 %v4676_v48, %v780_v33  ;;  %v888_v37 = vmax.f32 %v778_v30, 0.0 }
 0x16e   : > { %v891_v36 = vmax.f32 %v789_v32, 0.0 }
 0x16f   : > { %v889_v38 = vmax.f32 %v781_v34, 0.0 }
 0x170   : > { %v929_v39 = vpack.c.bf16 %v891_v36, %v890_v35 }
 0x171   : > { %v928_v40 = vpack.c.bf16 %v889_v38, %v888_v37  ;;  %v3673_v41 = vpop.f32.mrb[52].mxu0 }
 0x172   : > { %v802_v42 = vadd.f32 %v3673_v41, %v4676_v48  ;;  %v793_v43 = vpop.f32.mrb[53].mxu0 }
 0x173   : > { %v794_v44 = vadd.f32 %v4676_v48, %v793_v43  ;;  %v3674_v45 = vpop.f32.mrb[54].mxu0  ;;  %3747 = vmatprep.mubr.bf16.mxu1 %v928_v40 }
 0x174   : > { %v805_v46 = vadd.f32 %v3674_v45, %v4676_v48  ;;  %v796_v47 = vpop.f32.mrb[55].mxu0  ;;  %3748 = vmatmul.mubr.bf16.gmra.mrb[48].mxu1 %v929_v39  ;;  %v894_v50 = vmax.f32 %v802_v42, 0.0 }
 0x175   : > { %v797_v49 = vadd.f32 %v4676_v48, %v796_v47  ;;  %v892_v52 = vmax.f32 %v794_v44, 0.0 }
 0x176   : > { %v895_v51 = vmax.f32 %v805_v46, 0.0 }
 0x177   : > { %v893_v53 = vmax.f32 %v797_v49, 0.0 }
 0x178   : > { %v931_v54 = vpack.c.bf16 %v895_v51, %v894_v50 }
 0x179   : > { %v930_v55 = vpack.c.bf16 %v893_v53, %v892_v52  ;;  %v3677_v56 = vpop.f32.mrb[56].mxu0 }
 0x17a   : > { %v818_v57 = vadd.f32 %v3677_v56, %v4676_v48  ;;  %v809_v58 = vpop.f32.mrb[57].mxu0 }
 0x17b   : > { %v810_v59 = vadd.f32 %v4676_v48, %v809_v58  ;;  %v3678_v60 = vpop.f32.mrb[58].mxu0  ;;  %3751 = vmatprep.mubr.bf16.mxu1 %v930_v55 }
 0x17c   : > { %v821_v61 = vadd.f32 %v3678_v60, %v4676_v48  ;;  %v812_v62 = vpop.f32.mrb[59].mxu0  ;;  %3752 = vmatmul.mubr.bf16.gmra.mrb[52].mxu1 %v931_v54  ;;  %v898_v0 = vmax.f32 %v818_v57, 0.0 }
 0x17d   : > { %v813_v63 = vadd.f32 %v4676_v48, %v812_v62  ;;  %v896_v2 = vmax.f32 %v810_v59, 0.0 }
 0x17e   : > { %v899_v1 = vmax.f32 %v821_v61, 0.0 }
 0x17f   : > { %v897_v3 = vmax.f32 %v813_v63, 0.0 }
 0x180   : > { %v933_v5 = vpack.c.bf16 %v899_v1, %v898_v0 }
 0x181   : > { %v932_v6 = vpack.c.bf16 %v897_v3, %v896_v2  ;;  %v3681_v7 = vpop.f32.mrb[60].mxu0 }
 0x182   : > { %v834_v8 = vadd.f32 %v3681_v7, %v4676_v48  ;;  %v825_v9 = vpop.f32.mrb[61].mxu0 }
 0x183   : > { %v826_v10 = vadd.f32 %v4676_v48, %v825_v9  ;;  %v3682_v11 = vpop.f32.mrb[62].mxu0  ;;  %3755 = vmatprep.mubr.bf16.mxu1 %v932_v6 }
 0x184   : > { %v837_v12 = vadd.f32 %v3682_v11, %v4676_v48  ;;  %v828_v13 = vpop.f32.mrb[63].mxu0  ;;  %3756 = vmatmul.mubr.bf16.gmra.mrb[56].mxu1 %v933_v5  ;;  %v902_v15 = vmax.f32 %v834_v8, 0.0 }
 0x185   : > { %v829_v14 = vadd.f32 %v4676_v48, %v828_v13  ;;  %v900_v17 = vmax.f32 %v826_v10, 0.0  ;;  %v4754_v48 = vld [vmem:[%s5593_s5] ss:$0 sm:$0xff] }
 0x186   : > { %v903_v16 = vmax.f32 %v837_v12, 0.0 }
 0x187   : > { %v901_v18 = vmax.f32 %v829_v14, 0.0 }
 0x188   : > { %v935_v19 = vpack.c.bf16 %v903_v16, %v902_v15 }
 0x189   : > { %v934_v20 = vpack.c.bf16 %v901_v18, %v900_v17 }
 0x18b   : > { %3759 = vmatprep.mubr.bf16.mxu1 %v934_v20 }
 0x18c   : > { %3760 = vmatmul.mubr.bf16.gmra.mrb[60].mxu1 %v935_v19 }
 0x1e7   : > { %v3701_v22 = vpop.f32.mrb[0].mxu1 }
 0x1e8   : > { %v1050_v23 = vadd.f32 %v3701_v22, %v4754_v48  ;;  %v1041_v24 = vpop.f32.mrb[1].mxu1 }
 0x1e9   : > { %v1042_v25 = vadd.f32 %v4754_v48, %v1041_v24  ;;  %v3702_v26 = vpop.f32.mrb[2].mxu1 }
 0x1ea   : > { %v1362_v27 = vmul.f32 0.5, %v1050_v23  ;;  %3219 = vst [vmem:[%s4758_s29 + $0x28] sm:$0xff] %v1050_v23  ;;  %v1053_v28 = vadd.f32 %v3702_v26, %v4754_v48  ;;  %v1044_v29 = vpop.f32.mrb[3].mxu1 }
 0x1eb   : > { %v1360_v30 = vmul.f32 0.5, %v1042_v25  ;;  %3217 = vst [vmem:[%s4758_s29 + $0x8] sm:$0xff] %v1042_v25  ;;  %v1045_v31 = vadd.f32 %v4754_v48, %v1044_v29 }
 0x1ec   : > { %v1428_v32 = vmul.f32 1.442695, %v1362_v27  ;;  %v1363_v33 = vmul.f32 0.5, %v1053_v28  ;;  %3220 = vst [vmem:[%s4758_s29 + $0x38] sm:$0xff] %v1053_v28 }
 0x1ed   : > { %v1424_v34 = vmul.f32 1.442695, %v1360_v30  ;;  %v1361_v35 = vmul.f32 0.5, %v1045_v31  ;;  %3218 = vst [vmem:[%s4758_s29 + $0x18] sm:$0xff] %v1045_v31 }
 0x1ee   : > { %3979 = vpow2.f32 %v1428_v32  ;;  %v1430_v36 = vmul.f32 1.442695, %v1363_v33 }
 0x1ef   : > { %3981 = vpow2.f32 %v1424_v34  ;;  %v1426_v37 = vmul.f32 1.442695, %v1361_v35  ;;  %v3705_v38 = vpop.f32.mrb[4].mxu1 }
 0x1f0   : > { %v1066_v39 = vadd.f32 %v3705_v38, %v4754_v48  ;;  %v1057_v40 = vpop.f32.mrb[5].mxu1  ;;  %3983 = vpow2.f32 %v1430_v36 }
 0x1f1   : > { %v1058_v41 = vadd.f32 %v4754_v48, %v1057_v40  ;;  %v3706_v42 = vpop.f32.mrb[6].mxu1  ;;  %3985 = vpow2.f32 %v1426_v37 }
 0x1f2   : > { %3223 = vst [vmem:[%s4758_s29 + $0x68] sm:$0xff] %v1066_v39  ;;  %v1069_v43 = vadd.f32 %v3706_v42, %v4754_v48  ;;  %v1060_v44 = vpop.f32.mrb[7].mxu1  ;;  %v1366_v45 = vmul.f32 0.5, %v1066_v39 }
 0x1f3   : > { %v1364_v46 = vmul.f32 0.5, %v1058_v41  ;;  %3221 = vst [vmem:[%s4758_s29 + $0x48] sm:$0xff] %v1058_v41  ;;  %v1061_v47 = vadd.f32 %v4754_v48, %v1060_v44 }
 0x1f4   : > { %3224 = vst [vmem:[%s4758_s29 + $0x78] sm:$0xff] %v1069_v43  ;;  %v1367_v50 = vmul.f32 0.5, %v1069_v43  ;;  %v1436_v52 = vmul.f32 1.442695, %v1366_v45 }
 0x1f5   : > { %v1432_v49 = vmul.f32 1.442695, %v1364_v46  ;;  %v1365_v51 = vmul.f32 0.5, %v1061_v47  ;;  %3222 = vst [vmem:[%s4758_s29 + $0x58] sm:$0xff] %v1061_v47 }
 0x1f6   : > { %v1438_v59 = vmul.f32 1.442695, %v1367_v50 }
 0x1f7   : > { %3987 = vpow2.f32 %v1432_v49  ;;  %v1434_v53 = vmul.f32 1.442695, %v1365_v51  ;;  %v3709_v54 = vpop.f32.mrb[8].mxu1 }
 0x1f8   : > { %v3980_v55 = vpop.eup %3979  ;;  %v1082_v56 = vadd.f32 %v3709_v54, %v4754_v48  ;;  %v1073_v57 = vpop.f32.mrb[9].mxu1 }
 0x1f9   : > { %v3982_v58 = vpop.eup %3981  ;;  %3989 = vpow2.f32 %v1434_v53  ;;  %v1074_v60 = vadd.f32 %v4754_v48, %v1073_v57  ;;  %1620 = vrot.lane.b32.xlu1 %v3980_v55, %s4443_s21  ;;  %v3710_v61 = vpop.f32.mrb[10].mxu1 }
 0x1fa   : > { %3227 = vst [vmem:[%s4758_s29 + $0xa8] sm:$0xff] %v1082_v56  ;;  %v1085_v62 = vadd.f32 %v3710_v61, %v4754_v48  ;;  %v1076_v63 = vpop.f32.mrb[11].mxu1  ;;  %1616 = vrot.lane.b32.xlu0 %v3982_v58, %s4443_s21  ;;  %3991 = vpow2.f32 %v1436_v52  ;;  %v1370_v0 = vmul.f32 0.5, %v1082_v56  ;;  %v3984_v3 = vpop.eup %3983 }
 0x1fb   : > { %v1368_v1 = vmul.f32 0.5, %v1074_v60  ;;  %3225 = vst [vmem:[%s4758_s29 + $0x88] sm:$0xff] %v1074_v60  ;;  %v4782_v2 = vadd.f32 %v4754_v48, %v1076_v63  ;;  %v3986_v4 = vpop.eup %3985  ;;  %3993 = vpow2.f32 %v1438_v59 }
 0x1fc   : > { %3228 = vst [vmem:[%s4758_s29 + $0xb8] sm:$0xff] %v1085_v62  ;;  %v1371_v6 = vmul.f32 0.5, %v1085_v62  ;;  %v1444_v8 = vmul.f32 1.442695, %v1370_v0 }
 0x1fd   : > { %v1440_v5 = vmul.f32 1.442695, %v1368_v1  ;;  %v1369_v7 = vmul.f32 0.5, %v4782_v2  ;;  %3226 = vst [vmem:[%s4758_s29 + $0x98] sm:$0xff] %v4782_v2  ;;  %1622 = vrot.lane.b32.xlu1 %v3984_v3, %s4443_s21 }
 0x1fe   : > { %1618 = vrot.lane.b32.xlu0 %v3986_v4, %s4443_s21  ;;  %v1446_v14 = vmul.f32 1.442695, %v1371_v6 }
 0x1ff   : > { %3995 = vpow2.f32 %v1440_v5  ;;  %v1442_v9 = vmul.f32 1.442695, %v1369_v7  ;;  %v3713_v10 = vpop.f32.mrb[12].mxu1 }
 0x200   : > { %v1098_v11 = vadd.f32 %v3713_v10, %v4754_v48  ;;  %v1089_v12 = vpop.f32.mrb[13].mxu1 }
 0x201   : > { %v3988_v13 = vpop.eup %3987  ;;  %3997 = vpow2.f32 %v1442_v9  ;;  %v1090_v15 = vadd.f32 %v4754_v48, %v1089_v12  ;;  %v3714_v16 = vpop.f32.mrb[14].mxu1 }
 0x202   : > { %3231 = vst [vmem:[%s4758_s29 + $0xe8] sm:$0xff] %v1098_v11  ;;  %v1101_v17 = vadd.f32 %v3714_v16, %v4754_v48  ;;  %v1092_v18 = vpop.f32.mrb[15].mxu1  ;;  %1624 = vrot.lane.b32.xlu0 %v3988_v13, %s4443_s21  ;;  %3999 = vpow2.f32 %v1444_v8  ;;  %v1374_v20 = vmul.f32 0.5, %v1098_v11 }
 0x203   : > { %v3990_v19 = vpop.eup %3989  ;;  %v1372_v21 = vmul.f32 0.5, %v1090_v15  ;;  %3229 = vst [vmem:[%s4758_s29 + $0xc8] sm:$0xff] %v1090_v15  ;;  %v4797_v22 = vadd.f32 %v4754_v48, %v1092_v18  ;;  %4001 = vpow2.f32 %v1446_v14 }
 0x204   : > { %3232 = vst [vmem:[%s4758_s29 + $0xf8] sm:$0xff] %v1101_v17  ;;  %1626 = vrot.lane.b32.xlu1 %v3990_v19, %s4443_s21  ;;  %v3992_v23 = vpop.eup %3991  ;;  %v1375_v25 = vmul.f32 0.5, %v1101_v17  ;;  %v1452_v28 = vmul.f32 1.442695, %v1374_v20 }
 0x205   : > { %v1448_v24 = vmul.f32 1.442695, %v1372_v21  ;;  %v1373_v26 = vmul.f32 0.5, %v4797_v22  ;;  %3230 = vst [vmem:[%s4758_s29 + $0xd8] sm:$0xff] %v4797_v22  ;;  %v3994_v27 = vpop.eup %3993 }
 0x206   : > { %1628 = vrot.lane.b32.xlu0 %v3992_v23, %s4443_s21  ;;  %v1454_v34 = vmul.f32 1.442695, %v1375_v25 }
 0x207   : > { %4003 = vpow2.f32 %v1448_v24  ;;  %v1450_v29 = vmul.f32 1.442695, %v1373_v26  ;;  %v3717_v30 = vpop.f32.mrb[16].mxu1 }
 0x208   : > { %v1114_v31 = vadd.f32 %v3717_v30, %v4754_v48  ;;  %v1105_v32 = vpop.f32.mrb[17].mxu1  ;;  %1630 = vrot.lane.b32.xlu1 %v3994_v27, %s4443_s21 }
 0x209   : > { %v3996_v33 = vpop.eup %3995  ;;  %4005 = vpow2.f32 %v1450_v29  ;;  %v4808_v35 = vadd.f32 %v4754_v48, %v1105_v32  ;;  %v3718_v36 = vpop.f32.mrb[18].mxu1 }
 0x20a   : > { %3235 = vst [vmem:[%s4758_s29 + $0x128] sm:$0xff] %v1114_v31  ;;  %v4812_v37 = vadd.f32 %v3718_v36, %v4754_v48  ;;  %v1108_v38 = vpop.f32.mrb[19].mxu1  ;;  %1632 = vrot.lane.b32.xlu0 %v3996_v33, %s4443_s21  ;;  %4007 = vpow2.f32 %v1452_v28  ;;  %v1378_v40 = vmul.f32 0.5, %v1114_v31 }
 0x20b   : > { %v3998_v39 = vpop.eup %3997  ;;  %v1376_v41 = vmul.f32 0.5, %v4808_v35  ;;  %3233 = vst [vmem:[%s4758_s29 + $0x108] sm:$0xff] %v4808_v35  ;;  %v4819_v42 = vadd.f32 %v4754_v48, %v1108_v38  ;;  %4009 = vpow2.f32 %v1454_v34 }
 0x20c   : > { %3236 = vst [vmem:[%s4758_s29 + $0x138] sm:$0xff] %v4812_v37  ;;  %1634 = vrot.lane.b32.xlu1 %v3998_v39, %s4443_s21  ;;  %v4000_v43 = vpop.eup %3999  ;;  %v1379_v45 = vmul.f32 0.5, %v4812_v37  ;;  %v1460_v49 = vmul.f32 1.442695, %v1378_v40 }
 0x20d   : > { %v1456_v44 = vmul.f32 1.442695, %v1376_v41  ;;  %v1377_v46 = vmul.f32 0.5, %v4819_v42  ;;  %3234 = vst [vmem:[%s4758_s29 + $0x118] sm:$0xff] %v4819_v42  ;;  %v4002_v47 = vpop.eup %4001 }
 0x20e   : > { %1636 = vrot.lane.b32.xlu0 %v4000_v43, %s4443_s21  ;;  %v1462_v55 = vmul.f32 1.442695, %v1379_v45 }
 0x20f   : > { %4011 = vpow2.f32 %v1456_v44  ;;  %v1458_v50 = vmul.f32 1.442695, %v1377_v46  ;;  %v3721_v51 = vpop.f32.mrb[20].mxu1 }
 0x210   : > { %v4830_v52 = vadd.f32 %v3721_v51, %v4754_v48  ;;  %v1121_v53 = vpop.f32.mrb[21].mxu1  ;;  %1638 = vrot.lane.b32.xlu1 %v4002_v47, %s4443_s21 }
 0x211   : > { %v4004_v54 = vpop.eup %4003  ;;  %4013 = vpow2.f32 %v1458_v50  ;;  %v4834_v56 = vadd.f32 %v4754_v48, %v1121_v53  ;;  %v3722_v57 = vpop.f32.mrb[22].mxu1 }
 0x212   : > { %3239 = vst [vmem:[%s4758_s29 + $0x168] sm:$0xff] %v4830_v52  ;;  %v4839_v58 = vadd.f32 %v3722_v57, %v4754_v48  ;;  %v1124_v59 = vpop.f32.mrb[23].mxu1  ;;  %1640 = vrot.lane.b32.xlu0 %v4004_v54, %s4443_s21  ;;  %4015 = vpow2.f32 %v1460_v49  ;;  %v1382_v61 = vmul.f32 0.5, %v4830_v52 }
 0x213   : > { %v4006_v60 = vpop.eup %4005  ;;  %v1380_v62 = vmul.f32 0.5, %v4834_v56  ;;  %3237 = vst [vmem:[%s4758_s29 + $0x148] sm:$0xff] %v4834_v56  ;;  %v4847_v63 = vadd.f32 %v4754_v48, %v1124_v59  ;;  %4017 = vpow2.f32 %v1462_v55 }
 0x214   : > { %3240 = vst [vmem:[%s4758_s29 + $0x178] sm:$0xff] %v4839_v58  ;;  %1642 = vrot.lane.b32.xlu1 %v4006_v60, %s4443_s21  ;;  %v4008_v0 = vpop.eup %4007  ;;  %v1383_v3 = vmul.f32 0.5, %v4839_v58  ;;  %v1468_v6 = vmul.f32 1.442695, %v1382_v61 }
 0x215   : > { %v1464_v1 = vmul.f32 1.442695, %v1380_v62  ;;  %v1381_v4 = vmul.f32 0.5, %v4847_v63  ;;  %3238 = vst [vmem:[%s4758_s29 + $0x158] sm:$0xff] %v4847_v63  ;;  %v4010_v5 = vpop.eup %4009 }
 0x216   : > { %1644 = vrot.lane.b32.xlu0 %v4008_v0, %s4443_s21  ;;  %v1470_v12 = vmul.f32 1.442695, %v1383_v3 }
 0x217   : > { %4019 = vpow2.f32 %v1464_v1  ;;  %v1466_v7 = vmul.f32 1.442695, %v1381_v4  ;;  %v3725_v8 = vpop.f32.mrb[24].mxu1 }
 0x218   : > { %v4858_v9 = vadd.f32 %v3725_v8, %v4754_v48  ;;  %v1137_v10 = vpop.f32.mrb[25].mxu1  ;;  %1646 = vrot.lane.b32.xlu1 %v4010_v5, %s4443_s21 }
 0x219   : > { %v4012_v11 = vpop.eup %4011  ;;  %4021 = vpow2.f32 %v1466_v7  ;;  %v4862_v13 = vadd.f32 %v4754_v48, %v1137_v10  ;;  %v3726_v14 = vpop.f32.mrb[26].mxu1 }
 0x21a   : > { %3243 = vst [vmem:[%s4758_s29 + $0x1a8] sm:$0xff] %v4858_v9  ;;  %v4867_v15 = vadd.f32 %v3726_v14, %v4754_v48  ;;  %v1140_v16 = vpop.f32.mrb[27].mxu1  ;;  %1648 = vrot.lane.b32.xlu0 %v4012_v11, %s4443_s21  ;;  %4023 = vpow2.f32 %v1468_v6  ;;  %v1386_v18 = vmul.f32 0.5, %v4858_v9 }
 0x21b   : > { %v4014_v17 = vpop.eup %4013  ;;  %v1384_v19 = vmul.f32 0.5, %v4862_v13  ;;  %3241 = vst [vmem:[%s4758_s29 + $0x188] sm:$0xff] %v4862_v13  ;;  %v4875_v20 = vadd.f32 %v4754_v48, %v1140_v16  ;;  %4025 = vpow2.f32 %v1470_v12 }
 0x21c   : > { %3244 = vst [vmem:[%s4758_s29 + $0x1b8] sm:$0xff] %v4867_v15  ;;  %1650 = vrot.lane.b32.xlu1 %v4014_v17, %s4443_s21  ;;  %v4016_v21 = vpop.eup %4015  ;;  %v1387_v24 = vmul.f32 0.5, %v4867_v15  ;;  %v1476_v27 = vmul.f32 1.442695, %v1386_v18 }
 0x21d   : > { %v1472_v23 = vmul.f32 1.442695, %v1384_v19  ;;  %v1385_v25 = vmul.f32 0.5, %v4875_v20  ;;  %3242 = vst [vmem:[%s4758_s29 + $0x198] sm:$0xff] %v4875_v20  ;;  %v4018_v26 = vpop.eup %4017 }
 0x21e   : > { %1652 = vrot.lane.b32.xlu0 %v4016_v21, %s4443_s21  ;;  %v1478_v33 = vmul.f32 1.442695, %v1387_v24 }
 0x21f   : > { %4027 = vpow2.f32 %v1472_v23  ;;  %v1474_v28 = vmul.f32 1.442695, %v1385_v25  ;;  %v3729_v29 = vpop.f32.mrb[28].mxu1 }
 0x220   : > { %v4886_v30 = vadd.f32 %v3729_v29, %v4754_v48  ;;  %v1153_v31 = vpop.f32.mrb[29].mxu1  ;;  %1654 = vrot.lane.b32.xlu1 %v4018_v26, %s4443_s21 }
 0x221   : > { %v4020_v32 = vpop.eup %4019  ;;  %4029 = vpow2.f32 %v1474_v28  ;;  %v4890_v34 = vadd.f32 %v4754_v48, %v1153_v31  ;;  %v3730_v36 = vpop.f32.mrb[30].mxu1 }
 0x222   : > { %3247 = vst [vmem:[%s4758_s29 + $0x1e8] sm:$0xff] %v4886_v30  ;;  %v4895_v38 = vadd.f32 %v3730_v36, %v4754_v48  ;;  %v1156_v39 = vpop.f32.mrb[31].mxu1  ;;  %1656 = vrot.lane.b32.xlu0 %v4020_v32, %s4443_s21  ;;  %4031 = vpow2.f32 %v1476_v27  ;;  %v1390_v41 = vmul.f32 0.5, %v4886_v30 }
 0x223   : > { %v4022_v40 = vpop.eup %4021  ;;  %v1388_v43 = vmul.f32 0.5, %v4890_v34  ;;  %3245 = vst [vmem:[%s4758_s29 + $0x1c8] sm:$0xff] %v4890_v34  ;;  %v4903_v44 = vadd.f32 %v4754_v48, %v1156_v39  ;;  %4033 = vpow2.f32 %v1478_v33 }
 0x224   : > { %3248 = vst [vmem:[%s4758_s29 + $0x1f8] sm:$0xff] %v4895_v38  ;;  %1658 = vrot.lane.b32.xlu1 %v4022_v40, %s4443_s21  ;;  %v4024_v45 = vpop.eup %4023  ;;  %v1391_v47 = vmul.f32 0.5, %v4895_v38  ;;  %v1484_v51 = vmul.f32 1.442695, %v1390_v41 }
 0x225   : > { %v1480_v46 = vmul.f32 1.442695, %v1388_v43  ;;  %v1389_v49 = vmul.f32 0.5, %v4903_v44  ;;  %3246 = vst [vmem:[%s4758_s29 + $0x1d8] sm:$0xff] %v4903_v44  ;;  %v4026_v50 = vpop.eup %4025 }
 0x226   : > { %1660 = vrot.lane.b32.xlu0 %v4024_v45, %s4443_s21  ;;  %v1486_v60 = vmul.f32 1.442695, %v1391_v47 }
 0x227   : > { %4035 = vpow2.f32 %v1480_v46  ;;  %v1482_v53 = vmul.f32 1.442695, %v1389_v49  ;;  %v3733_v54 = vpop.f32.mrb[32].mxu1 }
 0x228   : > { %v4914_v55 = vadd.f32 %v3733_v54, %v4754_v48  ;;  %v1169_v57 = vpop.f32.mrb[33].mxu1  ;;  %1662 = vrot.lane.b32.xlu1 %v4026_v50, %s4443_s21 }
 0x229   : > { %v4028_v59 = vpop.eup %4027  ;;  %4037 = vpow2.f32 %v1482_v53  ;;  %v4918_v61 = vadd.f32 %v4754_v48, %v1169_v57  ;;  %v3734_v62 = vpop.f32.mrb[34].mxu1 }
 0x22a   : > { %3251 = vst [vmem:[%s4758_s29 + $0x228] sm:$0xff] %v4914_v55  ;;  %v4923_v0 = vadd.f32 %v3734_v62, %v4754_v48  ;;  %v1172_v1 = vpop.f32.mrb[35].mxu1  ;;  %1664 = vrot.lane.b32.xlu0 %v4028_v59, %s4443_s21  ;;  %4039 = vpow2.f32 %v1484_v51  ;;  %v1394_v4 = vmul.f32 0.5, %v4914_v55 }
 0x22b   : > { %v4030_v3 = vpop.eup %4029  ;;  %v1392_v5 = vmul.f32 0.5, %v4918_v61  ;;  %3249 = vst [vmem:[%s4758_s29 + $0x208] sm:$0xff] %v4918_v61  ;;  %v4931_v6 = vadd.f32 %v4754_v48, %v1172_v1  ;;  %4041 = vpow2.f32 %v1486_v60 }
 0x22c   : > { %3252 = vst [vmem:[%s4758_s29 + $0x238] sm:$0xff] %v4923_v0  ;;  %1666 = vrot.lane.b32.xlu1 %v4030_v3, %s4443_s21  ;;  %v4032_v7 = vpop.eup %4031  ;;  %v1395_v10 = vmul.f32 0.5, %v4923_v0  ;;  %v1492_v14 = vmul.f32 1.442695, %v1394_v4 }
 0x22d   : > { %v1488_v8 = vmul.f32 1.442695, %v1392_v5  ;;  %v1393_v11 = vmul.f32 0.5, %v4931_v6  ;;  %3250 = vst [vmem:[%s4758_s29 + $0x218] sm:$0xff] %v4931_v6  ;;  %v4034_v12 = vpop.eup %4033 }
 0x22e   : > { %1668 = vrot.lane.b32.xlu0 %v4032_v7, %s4443_s21  ;;  %v1494_v23 = vmul.f32 1.442695, %v1395_v10 }
 0x22f   : > { %4043 = vpow2.f32 %v1488_v8  ;;  %v1490_v16 = vmul.f32 1.442695, %v1393_v11  ;;  %v3737_v17 = vpop.f32.mrb[36].mxu1 }
 0x230   : > { %v4942_v18 = vadd.f32 %v3737_v17, %v4754_v48  ;;  %v1185_v19 = vpop.f32.mrb[37].mxu1  ;;  %1670 = vrot.lane.b32.xlu1 %v4034_v12, %s4443_s21 }
 0x231   : > { %v4036_v21 = vpop.eup %4035  ;;  %4045 = vpow2.f32 %v1490_v16  ;;  %v4946_v24 = vadd.f32 %v4754_v48, %v1185_v19  ;;  %v3738_v25 = vpop.f32.mrb[38].mxu1 }
 0x232   : > { %3255 = vst [vmem:[%s4758_s29 + $0x268] sm:$0xff] %v4942_v18  ;;  %v4951_v26 = vadd.f32 %v3738_v25, %v4754_v48  ;;  %v1188_v27 = vpop.f32.mrb[39].mxu1  ;;  %1672 = vrot.lane.b32.xlu0 %v4036_v21, %s4443_s21  ;;  %4047 = vpow2.f32 %v1492_v14  ;;  %v1398_v29 = vmul.f32 0.5, %v4942_v18 }
 0x233   : > { %v4038_v28 = vpop.eup %4037  ;;  %v1396_v31 = vmul.f32 0.5, %v4946_v24  ;;  %3253 = vst [vmem:[%s4758_s29 + $0x248] sm:$0xff] %v4946_v24  ;;  %v4959_v32 = vadd.f32 %v4754_v48, %v1188_v27  ;;  %4049 = vpow2.f32 %v1494_v23 }
 0x234   : > { %3256 = vst [vmem:[%s4758_s29 + $0x278] sm:$0xff] %v4951_v26  ;;  %1674 = vrot.lane.b32.xlu1 %v4038_v28, %s4443_s21  ;;  %v4040_v33 = vpop.eup %4039  ;;  %v1399_v39 = vmul.f32 0.5, %v4951_v26  ;;  %v1500_v43 = vmul.f32 1.442695, %v1398_v29 }
 0x235   : > { %v1496_v36 = vmul.f32 1.442695, %v1396_v31  ;;  %v1397_v40 = vmul.f32 0.5, %v4959_v32  ;;  %3254 = vst [vmem:[%s4758_s29 + $0x258] sm:$0xff] %v4959_v32  ;;  %v4042_v41 = vpop.eup %4041 }
 0x236   : > { %1676 = vrot.lane.b32.xlu0 %v4040_v33, %s4443_s21  ;;  %v1502_v51 = vmul.f32 1.442695, %v1399_v39 }
 0x237   : > { %4051 = vpow2.f32 %v1496_v36  ;;  %v1498_v45 = vmul.f32 1.442695, %v1397_v40  ;;  %v3741_v46 = vpop.f32.mrb[40].mxu1 }
 0x238   : > { %v4970_v47 = vadd.f32 %v3741_v46, %v4754_v48  ;;  %v1201_v49 = vpop.f32.mrb[41].mxu1  ;;  %1678 = vrot.lane.b32.xlu1 %v4042_v41, %s4443_s21 }
 0x239   : > { %v4044_v50 = vpop.eup %4043  ;;  %4053 = vpow2.f32 %v1498_v45  ;;  %v4974_v53 = vadd.f32 %v4754_v48, %v1201_v49  ;;  %v3742_v54 = vpop.f32.mrb[42].mxu1 }
 0x23a   : > { %3259 = vst [vmem:[%s4758_s29 + $0x2a8] sm:$0xff] %v4970_v47  ;;  %v4979_v57 = vadd.f32 %v3742_v54, %v4754_v48  ;;  %v1204_v59 = vpop.f32.mrb[43].mxu1  ;;  %1680 = vrot.lane.b32.xlu0 %v4044_v50, %s4443_s21  ;;  %4055 = vpow2.f32 %v1500_v43  ;;  %v1402_v62 = vmul.f32 0.5, %v4970_v47 }
 0x23b   : > { %v4046_v60 = vpop.eup %4045  ;;  %v1400_v1 = vmul.f32 0.5, %v4974_v53  ;;  %3257 = vst [vmem:[%s4758_s29 + $0x288] sm:$0xff] %v4974_v53  ;;  %v4987_v3 = vadd.f32 %v4754_v48, %v1204_v59  ;;  %4057 = vpow2.f32 %v1502_v51 }
 0x23c   : > { %3260 = vst [vmem:[%s4758_s29 + $0x2b8] sm:$0xff] %v4979_v57  ;;  %1682 = vrot.lane.b32.xlu1 %v4046_v60, %s4443_s21  ;;  %v4048_v4 = vpop.eup %4047  ;;  %v1403_v7 = vmul.f32 0.5, %v4979_v57  ;;  %v1508_v11 = vmul.f32 1.442695, %v1402_v62 }
 0x23d   : > { %v1504_v5 = vmul.f32 1.442695, %v1400_v1  ;;  %v1401_v8 = vmul.f32 0.5, %v4987_v3  ;;  %3258 = vst [vmem:[%s4758_s29 + $0x298] sm:$0xff] %v4987_v3  ;;  %v4050_v10 = vpop.eup %4049 }
 0x23e   : > { %1684 = vrot.lane.b32.xlu0 %v4048_v4, %s4443_s21  ;;  %v1510_v21 = vmul.f32 1.442695, %v1403_v7 }
 0x23f   : > { %4059 = vpow2.f32 %v1504_v5  ;;  %v1506_v12 = vmul.f32 1.442695, %v1401_v8  ;;  %v3745_v14 = vpop.f32.mrb[44].mxu1 }
 0x240   : > { %v4998_v16 = vadd.f32 %v3745_v14, %v4754_v48  ;;  %v1217_v17 = vpop.f32.mrb[45].mxu1  ;;  %1686 = vrot.lane.b32.xlu1 %v4050_v10, %s4443_s21 }
 0x241   : > { %v4052_v19 = vpop.eup %4051  ;;  %4061 = vpow2.f32 %v1506_v12  ;;  %v5002_v23 = vadd.f32 %v4754_v48, %v1217_v17  ;;  %v3746_v25 = vpop.f32.mrb[46].mxu1 }
 0x242   : > { %3263 = vst [vmem:[%s4758_s29 + $0x2e8] sm:$0xff] %v4998_v16  ;;  %v5007_v27 = vadd.f32 %v3746_v25, %v4754_v48  ;;  %v1220_v28 = vpop.f32.mrb[47].mxu1  ;;  %1688 = vrot.lane.b32.xlu0 %v4052_v19, %s4443_s21  ;;  %4063 = vpow2.f32 %v1508_v11  ;;  %v1406_v31 = vmul.f32 0.5, %v4998_v16 }
 0x243   : > { %v4054_v29 = vpop.eup %4053  ;;  %v1404_v33 = vmul.f32 0.5, %v5002_v23  ;;  %3261 = vst [vmem:[%s4758_s29 + $0x2c8] sm:$0xff] %v5002_v23  ;;  %v5015_v36 = vadd.f32 %v4754_v48, %v1220_v28  ;;  %4065 = vpow2.f32 %v1510_v21 }
 0x244   : > { %3264 = vst [vmem:[%s4758_s29 + $0x2f8] sm:$0xff] %v5007_v27  ;;  %1690 = vrot.lane.b32.xlu1 %v4054_v29, %s4443_s21  ;;  %v4056_v39 = vpop.eup %4055  ;;  %v1407_v41 = vmul.f32 0.5, %v5007_v27  ;;  %v1516_v46 = vmul.f32 1.442695, %v1406_v31 }
 0x245   : > { %v1512_v40 = vmul.f32 1.442695, %v1404_v33  ;;  %v1405_v43 = vmul.f32 0.5, %v5015_v36  ;;  %3262 = vst [vmem:[%s4758_s29 + $0x2d8] sm:$0xff] %v5015_v36  ;;  %v4058_v45 = vpop.eup %4057 }
 0x246   : > { %1692 = vrot.lane.b32.xlu0 %v4056_v39, %s4443_s21  ;;  %v1518_v60 = vmul.f32 1.442695, %v1407_v41 }
 0x247   : > { %4067 = vpow2.f32 %v1512_v40  ;;  %v1514_v49 = vmul.f32 1.442695, %v1405_v43  ;;  %v3749_v50 = vpop.f32.mrb[48].mxu1 }
 0x248   : > { %v5026_v51 = vadd.f32 %v3749_v50, %v4754_v48  ;;  %v1233_v54 = vpop.f32.mrb[49].mxu1  ;;  %1694 = vrot.lane.b32.xlu1 %v4058_v45, %s4443_s21 }
 0x249   : > { %v4060_v59 = vpop.eup %4059  ;;  %4069 = vpow2.f32 %v1514_v49  ;;  %v5030_v62 = vadd.f32 %v4754_v48, %v1233_v54  ;;  %v3750_v1 = vpop.f32.mrb[50].mxu1 }
 0x24a   : > { %3267 = vst [vmem:[%s4758_s29 + $0x328] sm:$0xff] %v5026_v51  ;;  %v5035_v4 = vadd.f32 %v3750_v1, %v4754_v48  ;;  %v1236_v5 = vpop.f32.mrb[51].mxu1  ;;  %1696 = vrot.lane.b32.xlu0 %v4060_v59, %s4443_s21  ;;  %4071 = vpow2.f32 %v1516_v46  ;;  %v1410_v8 = vmul.f32 0.5, %v5026_v51 }
 0x24b   : > { %v4062_v7 = vpop.eup %4061  ;;  %v1408_v10 = vmul.f32 0.5, %v5030_v62  ;;  %3265 = vst [vmem:[%s4758_s29 + $0x308] sm:$0xff] %v5030_v62  ;;  %v5043_v11 = vadd.f32 %v4754_v48, %v1236_v5  ;;  %4073 = vpow2.f32 %v1518_v60 }
 0x24c   : > { %3268 = vst [vmem:[%s4758_s29 + $0x338] sm:$0xff] %v5035_v4  ;;  %1698 = vrot.lane.b32.xlu1 %v4062_v7, %s4443_s21  ;;  %v4064_v12 = vpop.eup %4063  ;;  %v1411_v17 = vmul.f32 0.5, %v5035_v4  ;;  %v1524_v25 = vmul.f32 1.442695, %v1410_v8 }
 0x24d   : > { %v1520_v14 = vmul.f32 1.442695, %v1408_v10  ;;  %v1409_v19 = vmul.f32 0.5, %v5043_v11  ;;  %3266 = vst [vmem:[%s4758_s29 + $0x318] sm:$0xff] %v5043_v11  ;;  %v4066_v21 = vpop.eup %4065 }
 0x24e   : > { %1700 = vrot.lane.b32.xlu0 %v4064_v12, %s4443_s21  ;;  %v1526_v40 = vmul.f32 1.442695, %v1411_v17  ;;  %v3971_v17 = vld [vmem:[%s5596_s8] sm:$0xff]  }
 0x24f   : > { %4075 = vpow2.f32 %v1520_v14  ;;  %v1522_v28 = vmul.f32 1.442695, %v1409_v19  ;;  %v3753_v29 = vpop.f32.mrb[52].mxu1  ;;  %3831 = vmatprep.subr.bf16.mxu1 %v3971_v17 }
 0x250   : > { %v5054_v31 = vadd.f32 %v3753_v29, %v4754_v48  ;;  %v1249_v33 = vpop.f32.mrb[53].mxu1  ;;  %1702 = vrot.lane.b32.xlu1 %v4066_v21, %s4443_s21  ;;  %3832 = vmatpush3.bf16.msra.mxu1 %v3971_v17 }
 0x251   : > { %v4068_v39 = vpop.eup %4067  ;;  %4077 = vpow2.f32 %v1522_v28  ;;  %v5058_v41 = vadd.f32 %v4754_v48, %v1249_v33  ;;  %v3754_v43 = vpop.f32.mrb[54].mxu1 }
 0x252   : > { %3271 = vst [vmem:[%s4758_s29 + $0x368] sm:$0xff] %v5054_v31  ;;  %v5063_v45 = vadd.f32 %v3754_v43, %v4754_v48  ;;  %v1252_v46 = vpop.f32.mrb[55].mxu1  ;;  %1704 = vrot.lane.b32.xlu0 %v4068_v39, %s4443_s21  ;;  %4079 = vpow2.f32 %v1524_v25  ;;  %v1414_v50 = vmul.f32 0.5, %v5054_v31 }
 0x253   : > { %v4070_v49 = vpop.eup %4069  ;;  %v1412_v54 = vmul.f32 0.5, %v5058_v41  ;;  %3269 = vst [vmem:[%s4758_s29 + $0x348] sm:$0xff] %v5058_v41  ;;  %v5071_v59 = vadd.f32 %v4754_v48, %v1252_v46  ;;  %4081 = vpow2.f32 %v1526_v40 }
 0x254   : > { %3272 = vst [vmem:[%s4758_s29 + $0x378] sm:$0xff] %v5063_v45  ;;  %1706 = vrot.lane.b32.xlu1 %v4070_v49, %s4443_s21  ;;  %v4072_v60 = vpop.eup %4071  ;;  %v1415_v5 = vmul.f32 0.5, %v5063_v45  ;;  %v1532_v10 = vmul.f32 1.442695, %v1414_v50 }
 0x255   : > { %v1528_v1 = vmul.f32 1.442695, %v1412_v54  ;;  %v1413_v7 = vmul.f32 0.5, %v5071_v59  ;;  %3270 = vst [vmem:[%s4758_s29 + $0x358] sm:$0xff] %v5071_v59  ;;  %v4074_v8 = vpop.eup %4073 }
 0x256   : > { %1708 = vrot.lane.b32.xlu0 %v4072_v60, %s4443_s21  ;;  %v1534_v28 = vmul.f32 1.442695, %v1415_v5 }
 0x257   : > { %4083 = vpow2.f32 %v1528_v1  ;;  %v1530_v12 = vmul.f32 1.442695, %v1413_v7  ;;  %v3757_v14 = vpop.f32.mrb[56].mxu1 }
 0x258   : > { %v5085_v19 = vadd.f32 %v3757_v14, %v4754_v48  ;;  %v1265_v21 = vpop.f32.mrb[57].mxu1  ;;  %1710 = vrot.lane.b32.xlu1 %v4074_v8, %s4443_s21 }
 0x259   : > { %v4076_v25 = vpop.eup %4075  ;;  %4085 = vpow2.f32 %v1530_v12  ;;  %v5089_v29 = vadd.f32 %v4754_v48, %v1265_v21  ;;  %v3758_v33 = vpop.f32.mrb[58].mxu1 }
 0x25a   : > { %3275 = vst [vmem:[%s4758_s29 + $0x3a8] sm:$0xff] %v5085_v19  ;;  %v5094_v39 = vadd.f32 %v3758_v33, %v4754_v48  ;;  %v1268_v40 = vpop.f32.mrb[59].mxu1  ;;  %1712 = vrot.lane.b32.xlu0 %v4076_v25, %s4443_s21  ;;  %4087 = vpow2.f32 %v1532_v10  ;;  %v1418_v46 = vmul.f32 0.5, %v5085_v19 }
 0x25b   : > { %v4078_v43 = vpop.eup %4077  ;;  %v1416_v49 = vmul.f32 0.5, %v5089_v29  ;;  %3273 = vst [vmem:[%s4758_s29 + $0x388] sm:$0xff] %v5089_v29  ;;  %v5102_v50 = vadd.f32 %v4754_v48, %v1268_v40  ;;  %4089 = vpow2.f32 %v1534_v28 }
 0x25c   : > { %5606 = vst [vmem:[#allocation5_spill] sm:$0xff] %v5094_v39  ;;  %3276 = vst [vmem:[%s4758_s29 + $0x3b8] sm:$0xff] %v5094_v39  ;;  %1714 = vrot.lane.b32.xlu1 %v4078_v43, %s4443_s21  ;;  %v4080_v54 = vpop.eup %4079  ;;  %v1419_v1 = vmul.f32 0.5, %v5094_v39  ;;  %v1540_v8 = vmul.f32 1.442695, %v1418_v46  ;;  %v4369_v39 = vld [vmem:[%s4758_s29 + $0x68] sm:$0xff] }
 0x25d   : > { %v1536_v60 = vmul.f32 1.442695, %v1416_v49  ;;  %v1417_v5 = vmul.f32 0.5, %v5102_v50  ;;  %3274 = vst [vmem:[%s4758_s29 + $0x398] sm:$0xff] %v5102_v50  ;;  %v4082_v7 = vpop.eup %4081 }
 0x25e   : > { %1716 = vrot.lane.b32.xlu0 %v4080_v54, %s4443_s21  ;;  %v1542_v25 = vmul.f32 1.442695, %v1419_v1 }
 0x25f   : > { %4091 = vpow2.f32 %v1536_v60  ;;  %v1538_v10 = vmul.f32 1.442695, %v1417_v5  ;;  %v3761_v12 = vpop.f32.mrb[60].mxu1 }
 0x260   : > { %v5113_v14 = vadd.f32 %v3761_v12, %v4754_v48  ;;  %v1281_v17 = vpop.f32.mrb[61].mxu1  ;;  %1718 = vrot.lane.b32.xlu1 %v4082_v7, %s4443_s21 }
 0x261   : > { %v4084_v21 = vpop.eup %4083  ;;  %4093 = vpow2.f32 %v1538_v10  ;;  %v5117_v28 = vadd.f32 %v4754_v48, %v1281_v17  ;;  %v3762_v33 = vpop.f32.mrb[62].mxu1  ;;  %v3972_v17 = vld [vmem:[%s5596_s8 + $0x8] sm:$0xff]  }
 0x262   : > { %5607 = vst [vmem:[#allocation6_spill] sm:$0xff] %v5113_v14  ;;  %3279 = vst [vmem:[%s4758_s29 + $0x3e8] sm:$0xff] %v5113_v14  ;;  %v5122_v40 = vadd.f32 %v3762_v33, %v4754_v48  ;;  %v1284_v43 = vpop.f32.mrb[63].mxu1  ;;  %1720 = vrot.lane.b32.xlu0 %v4084_v21, %s4443_s21  ;;  %4095 = vpow2.f32 %v1540_v8  ;;  %v1422_v49 = vmul.f32 0.5, %v5113_v14  ;;  %3833 = vmatprep.subr.bf16.mxu1 %v3972_v17 }
 0x263   : > { %5608 = vst [vmem:[#allocation7_spill] sm:$0xff] %v5117_v28  ;;  %v4086_v46 = vpop.eup %4085  ;;  %v1420_v54 = vmul.f32 0.5, %v5117_v28  ;;  %3277 = vst [vmem:[%s4758_s29 + $0x3c8] sm:$0xff] %v5117_v28  ;;  %v5130_v60 = vadd.f32 %v4754_v48, %v1284_v43  ;;  %4097 = vpow2.f32 %v1542_v25  ;;  %3834 = vmatpush3.bf16.msra.mxu1 %v3972_v17  ;;  %v1301_v28 = vld [vmem:[%s5149_s30 + $0x28] sm:$0xff] }
 0x264   : > { %5609 = vst [vmem:[#allocation8_spill] sm:$0xff] %v5122_v40  ;;  %3280 = vst [vmem:[%s4758_s29 + $0x3f8] sm:$0xff] %v5122_v40  ;;  %1722 = vrot.lane.b32.xlu1 %v4086_v46, %s4443_s21  ;;  %v4088_v1 = vpop.eup %4087  ;;  %v1423_v7 = vmul.f32 0.5, %v5122_v40  ;;  %v1548_v12 = vmul.f32 1.442695, %v1422_v49  ;;  %v1296_v46 = vld [vmem:[%s5149_s30] sm:$0xff] }
 0x265   : > { %5610 = vst [vmem:[#allocation9_spill] sm:$0xff] %v5130_v60  ;;  %v1544_v5 = vmul.f32 1.442695, %v1420_v54  ;;  %v1421_v8 = vmul.f32 0.5, %v5130_v60  ;;  %3278 = vst [vmem:[%s4758_s29 + $0x3d8] sm:$0xff] %v5130_v60  ;;  %v4090_v10 = vpop.eup %4089  ;;  %v3973_v40 = vld [vmem:[%s5596_s8 + $0x10] sm:$0xff]  }
 0x266   : > { %1724 = vrot.lane.b32.xlu0 %v4088_v1, %s4443_s21  ;;  %v1550_v25 = vmul.f32 1.442695, %v1423_v7  ;;  %v1298_v1 = vld [vmem:[%s5149_s30 + $0x10] sm:$0xff]  ;;  %v1297_v7 = vld [vmem:[%s5149_s30 + $0x8] sm:$0xff]  ;;  %3835 = vmatprep.subr.bf16.mxu1 %v3973_v40 }
 0x267   : > { %4099 = vpow2.f32 %v1544_v5  ;;  %v1546_v48 = vmul.f32 1.442695, %v1421_v8  ;;  %v1299_v5 = vld [vmem:[%s5149_s30 + $0x18] sm:$0xff]  ;;  %3836 = vmatpush3.bf16.msra.mxu1 %v3973_v40 }
 0x268   : > { %1726 = vrot.lane.b32.xlu1 %v4090_v10, %s4443_s21  ;;  %v1303_v40 = vld [vmem:[%s5149_s30 + $0x38] sm:$0xff] }
 0x269   : > { %v4092_v21 = vpop.eup %4091  ;;  %4101 = vpow2.f32 %v1546_v48 }
 0x26a   : > { %1728 = vrot.lane.b32.xlu0 %v4092_v21, %s4443_s21  ;;  %4103 = vpow2.f32 %v1548_v12 }
 0x26b   : > { %v4094_v33 = vpop.eup %4093  ;;  %v1621_v43 = vpop.permute.xlu1 %1620  ;;  %4105 = vpow2.f32 %v1550_v25 }
 0x26c   : > { %1730 = vrot.lane.b32.xlu1 %v4094_v33, %s4443_s21  ;;  %v1617_v49 = vpop.permute.xlu0 %1616  ;;  %v4096_v54 = vpop.eup %4095  ;;  %v1810_v12 = vmul.f32 %v1621_v43, %v1298_v1  ;;  %v1300_v43 = vld [vmem:[%s5149_s30 + $0x20] sm:$0xff] }
 0x26d   : > { %v4098_v8 = vpop.eup %4097  ;;  %v1808_v10 = vmul.f32 %v1617_v49, %v1296_v46  ;;  %v4363_v46 = vld [vmem:[%s4758_s29 + $0x38] sm:$0xff] }
 0x26e   : > { %1732 = vrot.lane.b32.xlu0 %v4096_v54, %s4443_s21  ;;  %v3974_v54 = vld [vmem:[%s5596_s8 + $0x18] sm:$0xff]  }
 0x26f   : > { %v1623_v48 = vpop.permute.xlu1 %1622  ;;  %3837 = vmatprep.subr.bf16.mxu1 %v3974_v54 }
 0x270   : > { %v1811_v17 = vmul.f32 %v1623_v48, %v1299_v5  ;;  %1734 = vrot.lane.b32.xlu1 %v4098_v8, %s4443_s21  ;;  %v1619_v21 = vpop.permute.xlu0 %1618  ;;  %v4364_v5 = vld [vmem:[%s4758_s29 + $0x8] sm:$0xff]  ;;  %v4365_v48 = vld [vmem:[%s4758_s29 + $0x18] sm:$0xff]  ;;  %3838 = vmatpush3.bf16.msra.mxu1 %v3974_v54 }
 0x271   : > { %v4100_v33 = vpop.eup %4099  ;;  %v1809_v25 = vmul.f32 %v1619_v21, %v1297_v7  ;;  %v1872_v8 = vadd.f32 %v4364_v5, %v1808_v10  ;;  %v4366_v7 = vld [vmem:[%s4758_s29 + $0x28] sm:$0xff] }
 0x272   : > { %v1875_v49 = vadd.f32 %v4363_v46, %v1811_v17  ;;  %1736 = vrot.lane.b32.xlu0 %v4100_v33, %s4443_s21  ;;  %v1874_v21 = vadd.f32 %v4366_v7, %v1810_v12  ;;  %v3975_v12 = vld [vmem:[%s5596_s8 + $0x20] sm:$0xff]  }
 0x273   : > { %v4102_v1 = vpop.eup %4101  ;;  %v1873_v14 = vadd.f32 %v4365_v48, %v1809_v25  ;;  %v1302_v25 = vld [vmem:[%s5149_s30 + $0x30] sm:$0xff]  ;;  %3839 = vmatprep.subr.bf16.mxu1 %v3975_v12 }
 0x274   : > { %1738 = vrot.lane.b32.xlu1 %v4102_v1, %s4443_s21  ;;  %v1625_v60 = vpop.permute.xlu0 %1624  ;;  %v4104_v17 = vpop.eup %4103  ;;  %v1937_v10 = vpack.c.bf16 %v1875_v49, %v1874_v21  ;;  %3840 = vmatpush3.bf16.msra.mxu1 %v3975_v12 }
 0x275   : > { %v1936_v33 = vpack.c.bf16 %v1873_v14, %v1872_v8  ;;  %v1812_v46 = vmul.f32 %v1625_v60, %v1300_v43  ;;  %v4106_v1 = vpop.eup %4105  ;;  %v4367_v60 = vld [vmem:[%s4758_s29 + $0x48] sm:$0xff]  ;;  %v4368_v43 = vld [vmem:[%s4758_s29 + $0x58] sm:$0xff] }
 0x276   : > { %v1627_v5 = vpop.permute.xlu1 %1626  ;;  %1740 = vrot.lane.b32.xlu0 %v4104_v17, %s4443_s21  ;;  %v3976_v17 = vld [vmem:[%s5596_s8 + $0x28] sm:$0xff]  }
 0x277   : > { %v1813_v48 = vmul.f32 %v1627_v5, %v1301_v28  ;;  %3767 = vmatprep.mubr.msk.bf16.mxu0 %vm1991_vm0, %v1936_v33  ;;  %v1876_v49 = vadd.f32 %v4367_v60, %v1812_v46  ;;  %v1304_v28 = vld [vmem:[%s5149_s30 + $0x40] sm:$0xff]  ;;  %v4370_v60 = vld [vmem:[%s4758_s29 + $0x78] sm:$0xff]  ;;  %3841 = vmatprep.subr.bf16.mxu1 %v3976_v17 }
 0x278   : > { %1742 = vrot.lane.b32.xlu1 %v4106_v1, %s4443_s21  ;;  %3768 = vmatmul.mubr.msk.bf16.vlgmr.msra.gmra.mrb[64].mxu0 %vm1991_vm0, %v1937_v10  ;;  %v1629_v14 = vpop.permute.xlu0 %1628  ;;  %v1305_v1 = vld [vmem:[%s5149_s30 + $0x48] sm:$0xff]  ;;  %s4385_s21 = scalar_lea.vmem %s4384_s27, 32768 }
 0x279   : > { %v1877_v8 = vadd.f32 %v4368_v43, %v1813_v48  ;;  %v1814_v7 = vmul.f32 %v1629_v14, %v1302_v25  ;;  %v1306_v14 = vld [vmem:[%s5149_s30 + $0x50] sm:$0xff]  ;;  %3842 = vmatpush3.bf16.msra.mxu1 %v3976_v17  ;;  %p4387_p1 = scmp.lt.s32.totalorder %s4385_s21, %s4379_s28 }
 0x27a   : > { %v1631_v21 = vpop.permute.xlu1 %1630 }
 0x27b   : > { %v1938_v33 = vpack.c.bf16 %v1877_v8, %v1876_v49  ;;  %v1815_v10 = vmul.f32 %v1631_v21, %v1303_v40  ;;  %v1878_v46 = vadd.f32 %v4369_v39, %v1814_v7  ;;  %v3977_v40 = vld [vmem:[%s5596_s8 + $0x30] sm:$0xff]   ;;  %v1307_v39 = vld [vmem:[%s5149_s30 + $0x58] sm:$0xff]  ;;  %v4371_v7 = vld [vmem:[%s4758_s29 + $0x88] sm:$0xff]  ;;  %p4388_p2 = por %p4387_p1, %p4386_p0 }
 0x27c   : > { %v1633_v5 = vpop.permute.xlu0 %1632  ;;  %3843 = vmatprep.subr.bf16.mxu1 %v3977_v40 }
 0x27d   : > { %v1879_v48 = vadd.f32 %v4370_v60, %v1815_v10  ;;  %v1816_v25 = vmul.f32 %v1633_v5, %v1304_v28  ;;  %3771 = vmatprep.mubr.msk.bf16.mxu0 %vm1991_vm0, %v1938_v33  ;;  %v1308_v10 = vld [vmem:[%s5149_s30 + $0x60] sm:$0xff]  ;;  %v3978_v5 = vld [vmem:[%s5596_s8 + $0x38] sm:$0xff]   ;;  %3844 = vmatpush3.bf16.msra.mxu1 %v3977_v40  ;;  %p4389_p3 = pnand %p4388_p2, %p4382_p13 }
 0x27e   : > { %v1635_v54 = vpop.permute.xlu1 %1634  ;;  %3845 = vmatprep.subr.bf16.mxu1 %v3978_v5 }
 0x27f   : > { %v1939_v49 = vpack.c.bf16 %v1879_v48, %v1878_v46  ;;  %v1817_v43 = vmul.f32 %v1635_v54, %v1305_v1  ;;  %v1880_v21 = vadd.f32 %v4371_v7, %v1816_v25  ;;  %v1309_v48 = vld [vmem:[%s5149_s30 + $0x68] sm:$0xff]  ;;  %v4373_v54 = vld [vmem:[%s4758_s29 + $0xb8] sm:$0xff] }
 0x280   : > { %v1637_v8 = vpop.permute.xlu0 %1636  ;;  %v4372_v25 = vld [vmem:[%s4758_s29 + $0xa8] sm:$0xff] }
 0x281   : > { %v1881_v28 = vadd.f32 %v1817_v43, %v4782_v2  ;;  %v1818_v12 = vmul.f32 %v1637_v8, %v1306_v14  ;;  %3772 = vmatmul.mubr.msk.bf16.gmra.mrb[68].mxu0 %vm1991_vm0, %v1939_v49  ;;  %v1310_v43 = vld [vmem:[%s5149_s30 + $0x70] sm:$0xff]  ;;  %3846 = vmatpush3.bf16.msra.mxu1 %v3978_v5 }
 0x282   : > { %v1639_v33 = vpop.permute.xlu1 %1638 }
 0x283   : > { %v1940_v1 = vpack.c.bf16 %v1881_v28, %v1880_v21  ;;  %v1819_v46 = vmul.f32 %v1639_v33, %v1307_v39  ;;  %v1882_v2 = vadd.f32 %v4372_v25, %v1818_v12  ;;  %v1311_v21 = vld [vmem:[%s5149_s30 + $0x78] sm:$0xff]  ;;  %v4374_v28 = vld [vmem:[%s4758_s29 + $0xc8] sm:$0xff] }
 0x284   : > { %v1641_v60 = vpop.permute.xlu0 %1640 }
 0x285   : > { %v1883_v14 = vadd.f32 %v4373_v54, %v1819_v46  ;;  %v1820_v49 = vmul.f32 %v1641_v60, %v1308_v10  ;;  %3775 = vmatprep.mubr.msk.bf16.mxu0 %vm1991_vm0, %v1940_v1  ;;  %v1312_v10 = vld [vmem:[%s5149_s30 + $0x80] sm:$0xff] }
 0x286   : > { %v1643_v17 = vpop.permute.xlu1 %1642 }
 0x287   : > { %v1941_v8 = vpack.c.bf16 %v1883_v14, %v1882_v2  ;;  %v1821_v39 = vmul.f32 %v1643_v17, %v1309_v48  ;;  %v1884_v33 = vadd.f32 %v4374_v28, %v1820_v49  ;;  %v1313_v2 = vld [vmem:[%s5149_s30 + $0x88] sm:$0xff]  ;;  %v4376_v14 = vld [vmem:[%s4758_s29 + $0xf8] sm:$0xff] }
 0x288   : > { %v1645_v7 = vpop.permute.xlu0 %1644  ;;  %v4375_v48 = vld [vmem:[%s4758_s29 + $0xe8] sm:$0xff] }
 0x289   : > { %v1885_v12 = vadd.f32 %v1821_v39, %v4797_v22  ;;  %v1822_v46 = vmul.f32 %v1645_v7, %v1310_v43  ;;  %3776 = vmatmul.mubr.msk.bf16.gmra.mrb[72].mxu0 %vm1991_vm0, %v1941_v8  ;;  %v1314_v43 = vld [vmem:[%s5149_s30 + $0x90] sm:$0xff]  ;;  %v1315_v7 = vld [vmem:[%s5149_s30 + $0x98] sm:$0xff] }
 0x28a   : > { %v1647_v40 = vpop.permute.xlu1 %1646 }
 0x28b   : > { %v1942_v1 = vpack.c.bf16 %v1885_v12, %v1884_v33  ;;  %v1823_v60 = vmul.f32 %v1647_v40, %v1311_v21  ;;  %v1886_v54 = vadd.f32 %v4375_v48, %v1822_v46  ;;  %v1316_v46 = vld [vmem:[%s5149_s30 + $0xa0] sm:$0xff] }
 0x28c   : > { %v1649_v25 = vpop.permute.xlu0 %1648 }
 0x28d   : > { %v1887_v17 = vadd.f32 %v4376_v14, %v1823_v60  ;;  %v1824_v49 = vmul.f32 %v1649_v25, %v1312_v10  ;;  %3779 = vmatprep.mubr.msk.bf16.mxu0 %vm1991_vm0, %v1942_v1  ;;  %v1317_v60 = vld [vmem:[%s5149_s30 + $0xa8] sm:$0xff] }
 0x28e   : > { %v1651_v22 = vpop.permute.xlu1 %1650  ;;  %v4377_v25 = vld [vmem:[%s4758_s29 + $0x128] sm:$0xff] }
 0x28f   : > { %v1943_v5 = vpack.c.bf16 %v1887_v17, %v1886_v54  ;;  %v1825_v8 = vmul.f32 %v1651_v22, %v1313_v2  ;;  %v1888_v21 = vadd.f32 %v1824_v49, %v4808_v35  ;;  %v1319_v22 = vld [vmem:[%s5149_s30 + $0xb8] sm:$0xff] }
 0x290   : > { %v1653_v39 = vpop.permute.xlu0 %1652 }
 0x291   : > { %v1889_v28 = vadd.f32 %v1825_v8, %v4819_v42  ;;  %v1826_v33 = vmul.f32 %v1653_v39, %v1314_v43  ;;  %3780 = vmatmul.mubr.msk.bf16.gmra.mrb[76].mxu0 %vm1991_vm0, %v1943_v5  ;;  %v1318_v42 = vld [vmem:[%s5149_s30 + $0xb0] sm:$0xff]  ;;  %v1320_v39 = vld [vmem:[%s5149_s30 + $0xc0] sm:$0xff] }
 0x292   : > { %v1655_v12 = vpop.permute.xlu1 %1654 }
 0x293   : > { %v1944_v40 = vpack.c.bf16 %v1889_v28, %v1888_v21  ;;  %v1827_v10 = vmul.f32 %v1655_v12, %v1315_v7  ;;  %v1890_v2 = vadd.f32 %v4377_v25, %v1826_v33  ;;  %v1321_v33 = vld [vmem:[%s5149_s30 + $0xc8] sm:$0xff]  ;;  %v1323_v25 = vld [vmem:[%s5149_s30 + $0xd8] sm:$0xff] }
 0x294   : > { %v1657_v1 = vpop.permute.xlu0 %1656 }
 0x295   : > { %v1891_v48 = vadd.f32 %v1827_v10, %v4812_v37  ;;  %v1828_v54 = vmul.f32 %v1657_v1, %v1316_v46  ;;  %3783 = vmatprep.mubr.msk.bf16.mxu0 %vm1991_vm0, %v1944_v40 }
 0x296   : > { %v1659_v35 = vpop.permute.xlu1 %1658 }
 0x297   : > { %v1945_v14 = vpack.c.bf16 %v1891_v48, %v1890_v2  ;;  %v1829_v17 = vmul.f32 %v1659_v35, %v1317_v60  ;;  %v1892_v43 = vadd.f32 %v1828_v54, %v4834_v56 }
 0x298   : > { %v1661_v49 = vpop.permute.xlu0 %1660 }
 0x299   : > { %v1893_v5 = vadd.f32 %v1829_v17, %v4847_v63  ;;  %v1830_v8 = vmul.f32 %v1661_v49, %v1318_v42  ;;  %3784 = vmatmul.mubr.msk.bf16.gmra.mrb[80].mxu0 %vm1991_vm0, %v1945_v14  ;;  %v1322_v63 = vld [vmem:[%s5149_s30 + $0xd0] sm:$0xff]  ;;  %v1325_v17 = vld [vmem:[%s5149_s30 + $0xe8] sm:$0xff] }
 0x29a   : > { %v1663_v37 = vpop.permute.xlu1 %1662 }
 0x29b   : > { %v1946_v7 = vpack.c.bf16 %v1893_v5, %v1892_v43  ;;  %v1831_v21 = vmul.f32 %v1663_v37, %v1319_v22  ;;  %v1894_v12 = vadd.f32 %v1830_v8, %v4830_v52 }
 0x29c   : > { %v1665_v28 = vpop.permute.xlu0 %1664 }
 0x29d   : > { %v1895_v46 = vadd.f32 %v1831_v21, %v4839_v58  ;;  %v1832_v40 = vmul.f32 %v1665_v28, %v1320_v39  ;;  %3787 = vmatprep.mubr.msk.bf16.mxu0 %vm1991_vm0, %v1946_v7  ;;  %v1324_v58 = vld [vmem:[%s5149_s30 + $0xe0] sm:$0xff]  ;;  %v1327_v39 = vld [vmem:[%s5149_s30 + $0xf8] sm:$0xff] }
 0x29e   : > { %v1667_v56 = vpop.permute.xlu1 %1666 }
 0x29f   : > { %v1947_v10 = vpack.c.bf16 %v1895_v46, %v1894_v12  ;;  %v1833_v1 = vmul.f32 %v1667_v56, %v1321_v33  ;;  %v1896_v2 = vadd.f32 %v1832_v40, %v4862_v13  ;;  %v1329_v40 = vld [vmem:[%s5149_s30 + $0x108] sm:$0xff] }
 0x2a0   : > { %v1669_v60 = vpop.permute.xlu0 %1668 }
 0x2a1   : > { %v1897_v48 = vadd.f32 %v1833_v1, %v4875_v20  ;;  %v1834_v54 = vmul.f32 %v1669_v60, %v1322_v63  ;;  %3788 = vmatmul.mubr.msk.bf16.gmra.mrb[84].mxu0 %vm1991_vm0, %v1947_v10  ;;  %v1326_v20 = vld [vmem:[%s5149_s30 + $0xf0] sm:$0xff] }
 0x2a2   : > { %v1671_v52 = vpop.permute.xlu1 %1670 }
 0x2a3   : > { %v1948_v35 = vpack.c.bf16 %v1897_v48, %v1896_v2  ;;  %v1835_v42 = vmul.f32 %v1671_v52, %v1323_v25  ;;  %v1898_v49 = vadd.f32 %v1834_v54, %v4858_v9  ;;  %v1331_v2 = vld [vmem:[%s5149_s30 + $0x118] sm:$0xff] }
 0x2a4   : > { %v1673_v14 = vpop.permute.xlu0 %1672 }
 0x2a5   : > { %v1899_v22 = vadd.f32 %v1835_v42, %v4867_v15  ;;  %v1836_v43 = vmul.f32 %v1673_v14, %v1324_v58  ;;  %3791 = vmatprep.mubr.msk.bf16.mxu0 %vm1991_vm0, %v1948_v35  ;;  %v1328_v15 = vld [vmem:[%s5149_s30 + $0x100] sm:$0xff]  ;;  %v1333_v14 = vld [vmem:[%s5149_s30 + $0x128] sm:$0xff] }
 0x2a6   : > { %v1675_v13 = vpop.permute.xlu1 %1674 }
 0x2a7   : > { %v1949_v5 = vpack.c.bf16 %v1899_v22, %v1898_v49  ;;  %v1837_v8 = vmul.f32 %v1675_v13, %v1325_v17  ;;  %v1900_v7 = vadd.f32 %v1836_v43, %v4890_v34 }
 0x2a8   : > { %v1677_v37 = vpop.permute.xlu0 %1676 }
 0x2a9   : > { %v1901_v21 = vadd.f32 %v1837_v8, %v4903_v44  ;;  %v1838_v28 = vmul.f32 %v1677_v37, %v1326_v20  ;;  %3792 = vmatmul.mubr.msk.bf16.gmra.mrb[88].mxu0 %vm1991_vm0, %v1949_v5  ;;  %v1330_v44 = vld [vmem:[%s5149_s30 + $0x110] sm:$0xff]  ;;  %v1335_v5 = vld [vmem:[%s5149_s30 + $0x138] sm:$0xff] }
 0x2aa   : > { %v1679_v9 = vpop.permute.xlu1 %1678 }
 0x2ab   : > { %v1950_v33 = vpack.c.bf16 %v1901_v21, %v1900_v7  ;;  %v1839_v12 = vmul.f32 %v1679_v9, %v1327_v39  ;;  %v1902_v56 = vadd.f32 %v1838_v28, %v4886_v30  ;;  %v1337_v9 = vld [vmem:[%s5149_s30 + $0x148] sm:$0xff] }
 0x2ac   : > { %v1681_v46 = vpop.permute.xlu0 %1680 }
 0x2ad   : > { %v1903_v63 = vadd.f32 %v1839_v12, %v4895_v38  ;;  %v1840_v10 = vmul.f32 %v1681_v46, %v1328_v15  ;;  %3795 = vmatprep.mubr.msk.bf16.mxu0 %vm1991_vm0, %v1950_v33  ;;  %v1332_v38 = vld [vmem:[%s5149_s30 + $0x120] sm:$0xff] }
 0x2ae   : > { %v1683_v34 = vpop.permute.xlu1 %1682 }
 0x2af   : > { %v1951_v1 = vpack.c.bf16 %v1903_v63, %v1902_v56  ;;  %v1841_v60 = vmul.f32 %v1683_v34, %v1329_v40  ;;  %v1904_v48 = vadd.f32 %v1840_v10, %v4918_v61  ;;  %v1339_v63 = vld [vmem:[%s5149_s30 + $0x158] sm:$0xff] }
 0x2b0   : > { %v1685_v25 = vpop.permute.xlu0 %1684 }
 0x2b1   : > { %v1905_v54 = vadd.f32 %v1841_v60, %v4931_v6  ;;  %v1842_v52 = vmul.f32 %v1685_v25, %v1330_v44  ;;  %3796 = vmatmul.mubr.msk.bf16.gmra.mrb[92].mxu0 %vm1991_vm0, %v1951_v1  ;;  %v1334_v6 = vld [vmem:[%s5149_s30 + $0x130] sm:$0xff] }
 0x2b2   : > { %v1687_v30 = vpop.permute.xlu1 %1686 }
 0x2b3   : > { %v1952_v58 = vpack.c.bf16 %v1905_v54, %v1904_v48  ;;  %v1843_v35 = vmul.f32 %v1687_v30, %v1331_v2  ;;  %v1906_v17 = vadd.f32 %v1842_v52, %v4914_v55  ;;  %v1341_v2 = vld [vmem:[%s5149_s30 + $0x168] sm:$0xff] }
 0x2b4   : > { %v1689_v42 = vpop.permute.xlu0 %1688 }
 0x2b5   : > { %v1907_v49 = vadd.f32 %v1843_v35, %v4923_v0  ;;  %v1844_v22 = vmul.f32 %v1689_v42, %v1332_v38  ;;  %3799 = vmatprep.mubr.msk.bf16.mxu0 %vm1991_vm0, %v1952_v58  ;;  %v1336_v0 = vld [vmem:[%s5149_s30 + $0x140] sm:$0xff]  ;;  %v1343_v35 = vld [vmem:[%s5149_s30 + $0x178] sm:$0xff] }
 0x2b6   : > { %v1691_v61 = vpop.permute.xlu1 %1690 }
 0x2b7   : > { %v1953_v43 = vpack.c.bf16 %v1907_v49, %v1906_v17  ;;  %v1845_v13 = vmul.f32 %v1691_v61, %v1333_v14  ;;  %v1908_v8 = vadd.f32 %v1844_v22, %v4946_v24 }
 0x2b8   : > { %v1693_v20 = vpop.permute.xlu0 %1692 }
 0x2b9   : > { %v1909_v37 = vadd.f32 %v1845_v13, %v4959_v32  ;;  %v1846_v39 = vmul.f32 %v1693_v20, %v1334_v6  ;;  %3800 = vmatmul.mubr.msk.bf16.gmra.mrb[96].mxu0 %vm1991_vm0, %v1953_v43  ;;  %v1338_v32 = vld [vmem:[%s5149_s30 + $0x150] sm:$0xff]  ;;  %v1345_v6 = vld [vmem:[%s5149_s30 + $0x188] sm:$0xff] }
 0x2ba   : > { %v1695_v55 = vpop.permute.xlu1 %1694 }
 0x2bb   : > { %v1954_v7 = vpack.c.bf16 %v1909_v37, %v1908_v8  ;;  %v1847_v21 = vmul.f32 %v1695_v55, %v1335_v5  ;;  %v1910_v15 = vadd.f32 %v1846_v39, %v4942_v18  ;;  %v1347_v39 = vld [vmem:[%s5149_s30 + $0x198] sm:$0xff] }
 0x2bc   : > { %v1697_v28 = vpop.permute.xlu0 %1696 }
 0x2bd   : > { %v1911_v33 = vadd.f32 %v1847_v21, %v4951_v26  ;;  %v1848_v12 = vmul.f32 %v1697_v28, %v1336_v0  ;;  %3803 = vmatprep.mubr.msk.bf16.mxu0 %vm1991_vm0, %v1954_v7  ;;  %v1340_v26 = vld [vmem:[%s5149_s30 + $0x160] sm:$0xff] }
 0x2be   : > { %v1699_v24 = vpop.permute.xlu1 %1698 }
 0x2bf   : > { %v1955_v46 = vpack.c.bf16 %v1911_v33, %v1910_v15  ;;  %v1849_v40 = vmul.f32 %v1699_v24, %v1337_v9  ;;  %v1912_v10 = vadd.f32 %v1848_v12, %v4974_v53  ;;  %v1349_v15 = vld [vmem:[%s5149_s30 + $0x1a8] sm:$0xff] }
 0x2c0   : > { %v1701_v56 = vpop.permute.xlu0 %1700 }
 0x2c1   : > { %v1913_v34 = vadd.f32 %v1849_v40, %v4987_v3  ;;  %v1850_v44 = vmul.f32 %v1701_v56, %v1338_v32  ;;  %3804 = vmatmul.mubr.msk.bf16.gmra.mrb[100].mxu0 %vm1991_vm0, %v1955_v46  ;;  %v1342_v3 = vld [vmem:[%s5149_s30 + $0x170] sm:$0xff]  ;;  %v1351_v56 = vld [vmem:[%s5149_s30 + $0x1b8] sm:$0xff] }
 0x2c2   : > { %v1703_v18 = vpop.permute.xlu1 %1702 }
 0x2c3   : > { %v1956_v1 = vpack.c.bf16 %v1913_v34, %v1912_v10  ;;  %v1851_v60 = vmul.f32 %v1703_v18, %v1339_v63  ;;  %v1914_v48 = vadd.f32 %v1850_v44, %v4970_v47 }
 0x2c4   : > { %v1705_v25 = vpop.permute.xlu0 %1704 }
 0x2c5   : > { %v1915_v54 = vadd.f32 %v1851_v60, %v4979_v57  ;;  %v1852_v52 = vmul.f32 %v1705_v25, %v1340_v26  ;;  %3807 = vmatprep.mubr.msk.bf16.mxu0 %vm1991_vm0, %v1956_v1  ;;  %v1344_v57 = vld [vmem:[%s5149_s30 + $0x180] sm:$0xff]  ;;  %v1353_v1 = vld [vmem:[%s5149_s30 + $0x1c8] sm:$0xff] }
 0x2c6   : > { %v1707_v53 = vpop.permute.xlu1 %1706 }
 0x2c7   : > { %v1957_v30 = vpack.c.bf16 %v1915_v54, %v1914_v48  ;;  %v1853_v38 = vmul.f32 %v1707_v53, %v1341_v2  ;;  %v1916_v42 = vadd.f32 %v1852_v52, %v5002_v23  ;;  %v1355_v53 = vld [vmem:[%s5149_s30 + $0x1d8] sm:$0xff] }
 0x2c8   : > { %v1709_v58 = vpop.permute.xlu0 %1708 }
 0x2c9   : > { %v1917_v14 = vadd.f32 %v1853_v38, %v5015_v36  ;;  %v1854_v17 = vmul.f32 %v1709_v58, %v1342_v3  ;;  %3808 = vmatmul.mubr.msk.bf16.gmra.mrb[104].mxu0 %vm1991_vm0, %v1957_v30  ;;  %v1346_v36 = vld [vmem:[%s5149_s30 + $0x190] sm:$0xff] }
 0x2ca   : > { %v1711_v47 = vpop.permute.xlu1 %1710 }
 0x2cb   : > { %v1958_v49 = vpack.c.bf16 %v1917_v14, %v1916_v42  ;;  %v1855_v22 = vmul.f32 %v1711_v47, %v1343_v35  ;;  %v1918_v43 = vadd.f32 %v1854_v17, %v4998_v16  ;;  %v1357_v14 = vld [vmem:[%s5149_s30 + $0x1e8] sm:$0xff]  ;;  %v5611_v47 = vld [vmem:[#allocation5_spill] sm:$0xff] }
 0x2cc   : > { %v1713_v61 = vpop.permute.xlu0 %1712 }
 0x2cd   : > { %v1919_v13 = vadd.f32 %v1855_v22, %v5007_v27  ;;  %v1856_v20 = vmul.f32 %v1713_v61, %v1344_v57  ;;  %3811 = vmatprep.mubr.msk.bf16.mxu0 %vm1991_vm0, %v1958_v49  ;;  %v1348_v27 = vld [vmem:[%s5149_s30 + $0x1a0] sm:$0xff]  ;;  %v1358_v22 = vld [vmem:[%s5149_s30 + $0x1f0] sm:$0xff] }
 0x2ce   : > { %v1715_v23 = vpop.permute.xlu1 %1714 }
 0x2cf   : > { %v1959_v5 = vpack.c.bf16 %v1919_v13, %v1918_v43  ;;  %v1857_v8 = vmul.f32 %v1715_v23, %v1345_v6  ;;  %v1920_v55 = vadd.f32 %v1856_v20, %v5030_v62  ;;  %v1359_v43 = vld [vmem:[%s5149_s30 + $0x1f8] sm:$0xff]  ;;  %v5612_v13 = vld [vmem:[#allocation7_spill] sm:$0xff]  ;;  %v5613_v23 = vld [vmem:[#allocation9_spill] sm:$0xff] }
 0x2d0   : > { %v1717_v37 = vpop.permute.xlu0 %1716 }
 0x2d1   : > { %v1921_v0 = vadd.f32 %v1857_v8, %v5043_v11  ;;  %v1858_v7 = vmul.f32 %v1717_v37, %v1346_v36  ;;  %3812 = vmatmul.mubr.msk.bf16.gmra.mrb[108].mxu0 %vm1991_vm0, %v1959_v5  ;;  %v1350_v11 = vld [vmem:[%s5149_s30 + $0x1b0] sm:$0xff] }
 0x2d2   : > { %v1719_v16 = vpop.permute.xlu1 %1718 }
 0x2d3   : > { %v1960_v21 = vpack.c.bf16 %v1921_v0, %v1920_v55  ;;  %v1859_v28 = vmul.f32 %v1719_v16, %v1347_v39  ;;  %v1922_v33 = vadd.f32 %v1858_v7, %v5026_v51  ;;  %v5614_v39 = vld [vmem:[#allocation6_spill] sm:$0xff]  ;;  %v5615_v0 = vld [vmem:[#allocation8_spill] sm:$0xff] }
 0x2d4   : > { %v1721_v9 = vpop.permute.xlu0 %1720 }
 0x2d5   : > { %v1923_v12 = vadd.f32 %v1859_v28, %v5035_v4  ;;  %v1860_v24 = vmul.f32 %v1721_v9, %v1348_v27  ;;  %3815 = vmatprep.mubr.msk.bf16.mxu0 %vm1991_vm0, %v1960_v21  ;;  %v1352_v4 = vld [vmem:[%s5149_s30 + $0x1c0] sm:$0xff] }
 0x2d6   : > { %v1723_v62 = vpop.permute.xlu1 %1722  ;;  %v5340_v27 = vld [vmem:[%s5595_s7] ss:$0 sm:$0xff] }
 0x2d7   : > { %v1961_v32 = vpack.c.bf16 %v1923_v12, %v1922_v33  ;;  %v1861_v46 = vmul.f32 %v1723_v62, %v1349_v15  ;;  %v1924_v63 = vadd.f32 %v1860_v24, %v5058_v41 }
 0x2d8   : > { %v1725_v40 = vpop.permute.xlu0 %1724 }
 0x2d9   : > { %v1925_v10 = vadd.f32 %v1861_v46, %v5071_v59  ;;  %v1862_v34 = vmul.f32 %v1725_v40, %v1350_v11  ;;  %3816 = vmatmul.mubr.msk.bf16.gmra.mrb[112].mxu0 %vm1991_vm0, %v1961_v32  ;;  %v1354_v59 = vld [vmem:[%s5149_s30 + $0x1d0] sm:$0xff] }
 0x2da   : > { %v1727_v51 = vpop.permute.xlu1 %1726 }
 0x2db   : > { %v1962_v44 = vpack.c.bf16 %v1925_v10, %v1924_v63  ;;  %v1863_v18 = vmul.f32 %v1727_v51, %v1351_v56  ;;  %v1926_v60 = vadd.f32 %v1862_v34, %v5054_v31 }
 0x2dc   : > { %v1729_v26 = vpop.permute.xlu0 %1728 }
 0x2dd   : > { %v1927_v25 = vadd.f32 %v1863_v18, %v5063_v45  ;;  %v1864_v2 = vmul.f32 %v1729_v26, %v1352_v4  ;;  %3819 = vmatprep.mubr.msk.bf16.mxu0 %vm1991_vm0, %v1962_v44  ;;  %v1356_v45 = vld [vmem:[%s5149_s30 + $0x1e0] sm:$0xff] }
 0x2de   : > { %v1731_v41 = vpop.permute.xlu1 %1730 }
 0x2df   : > { %v1963_v48 = vpack.c.bf16 %v1927_v25, %v1926_v60  ;;  %v1865_v54 = vmul.f32 %v1731_v41, %v1353_v1  ;;  %v1928_v3 = vadd.f32 %v1864_v2, %v5089_v29 }
 0x2e0   : > { %v1733_v52 = vpop.permute.xlu0 %1732 }
 0x2e1   : > { %v1929_v30 = vadd.f32 %v1865_v54, %v5102_v50  ;;  %v1866_v38 = vmul.f32 %v1733_v52, %v1354_v59  ;;  %3820 = vmatmul.mubr.msk.bf16.gmra.mrb[116].mxu0 %vm1991_vm0, %v1963_v48 }
 0x2e2   : > { %v1735_v31 = vpop.permute.xlu1 %1734 }
 0x2e3   : > { %v1964_v58 = vpack.c.bf16 %v1929_v30, %v1928_v3  ;;  %v1867_v35 = vmul.f32 %v1735_v31, %v1355_v53  ;;  %v1930_v17 = vadd.f32 %v1866_v38, %v5085_v19 }
 0x2e4   : > { %v1737_v42 = vpop.permute.xlu0 %1736 }
 0x2e5   : > { %v1931_v57 = vadd.f32 %v1867_v35, %v5611_v47  ;;  %v1868_v49 = vmul.f32 %v1737_v42, %v1356_v45  ;;  %3823 = vmatprep.mubr.msk.bf16.mxu0 %vm1991_vm0, %v1964_v58 }
 0x2e6   : > { %v1739_v29 = vpop.permute.xlu1 %1738 }
 0x2e7   : > { %v1965_v50 = vpack.c.bf16 %v1931_v57, %v1930_v17  ;;  %v1869_v61 = vmul.f32 %v1739_v29, %v1357_v14  ;;  %v1932_v20 = vadd.f32 %v1868_v49, %v5612_v13 }
 0x2e8   : > { %v1741_v6 = vpop.permute.xlu0 %1740 }
 0x2e9   : > { %v1933_v36 = vadd.f32 %v1869_v61, %v5613_v23  ;;  %v1870_v5 = vmul.f32 %v1741_v6, %v1358_v22  ;;  %3824 = vmatmul.mubr.msk.bf16.gmra.mrb[120].mxu0 %vm1991_vm0, %v1965_v50 }
 0x2ea   : > { %v1743_v8 = vpop.permute.xlu1 %1742 }
 0x2eb   : > { %v1966_v19 = vpack.c.bf16 %v1933_v36, %v1932_v20  ;;  %v1871_v37 = vmul.f32 %v1743_v8, %v1359_v43  ;;  %v1934_v55 = vadd.f32 %v1870_v5, %v5614_v39 }
 0x2ed   : > { %v1935_v7 = vadd.f32 %v1871_v37, %v5615_v0  ;;  %3827 = vmatprep.mubr.msk.bf16.mxu0 %vm1991_vm0, %v1966_v19 }
 0x2ef   : > { %v1967_v16 = vpack.c.bf16 %v1935_v7, %v1934_v55 }
 0x2f1   : > { %3828 = vmatmul.mubr.msk.bf16.gmra.mrb[124].mxu0 %vm1991_vm0, %v1967_v16 }
 0x34b   : > { %v3769_v21 = vpop.f32.mrb[64].mxu0 }
 0x34c   : > { %v2131_v28 = vadd.f32 %v3769_v21, %v5340_v27  ;;  %v2122_v9 = vpop.f32.mrb[65].mxu0 }
 0x34d   : > { %v2123_v15 = vadd.f32 %v5340_v27, %v2122_v9  ;;  %v3770_v33 = vpop.f32.mrb[66].mxu0 }
 0x34e   : > { %v2134_v12 = vadd.f32 %v3770_v33, %v5340_v27  ;;  %v2125_v24 = vpop.f32.mrb[67].mxu0  ;;  %v2379_v11 = vmax.f32 %v2131_v28, 0.0 }
 0x34f   : > { %v2126_v62 = vadd.f32 %v5340_v27, %v2125_v24  ;;  %v2377_v46 = vmax.f32 %v2123_v15, 0.0 }
 0x350   : > { %v2380_v32 = vmax.f32 %v2134_v12, 0.0 }
 0x351   : > { %v2378_v40 = vmax.f32 %v2126_v62, 0.0 }
 0x352   : > { %v2442_v56 = vpack.c.bf16 %v2380_v32, %v2379_v11 }
 0x353   : > { %v2441_v63 = vpack.c.bf16 %v2378_v40, %v2377_v46 }
 0x354   : > { %v3773_v10 = vpop.f32.mrb[68].mxu0 }
 0x355   : > { %v2147_v34 = vadd.f32 %v3773_v10, %v5340_v27  ;;  %v2138_v51 = vpop.f32.mrb[69].mxu0  ;;  %3847 = vmatprep.mubr.bf16.mxu1 %v2441_v63 }
 0x356   : > { %v2139_v4 = vadd.f32 %v5340_v27, %v2138_v51  ;;  %v3774_v44 = vpop.f32.mrb[70].mxu0  ;;  %3848 = vmatmul.mubr.bf16.vlgmr.msra.gmra.mrb[64].mxu1 %v2442_v56 }
 0x357   : > { %v2150_v18 = vadd.f32 %v3774_v44, %v5340_v27  ;;  %v2141_v26 = vpop.f32.mrb[71].mxu0  ;;  %v2383_v60 = vmax.f32 %v2147_v34, 0.0 }
 0x358   : > { %v2142_v1 = vadd.f32 %v5340_v27, %v2141_v26  ;;  %v2381_v2 = vmax.f32 %v2139_v4, 0.0 }
 0x359   : > { %v2384_v25 = vmax.f32 %v2150_v18, 0.0 }
 0x35a   : > { %v2382_v41 = vmax.f32 %v2142_v1, 0.0 }
 0x35b   : > { %v2444_v59 = vpack.c.bf16 %v2384_v25, %v2383_v60 }
 0x35c   : > { %v2443_v48 = vpack.c.bf16 %v2382_v41, %v2381_v2  ;;  %v3777_v54 = vpop.f32.mrb[72].mxu0 }
 0x35d   : > { %v2163_v52 = vadd.f32 %v3777_v54, %v5340_v27  ;;  %v2154_v53 = vpop.f32.mrb[73].mxu0 }
 0x35e   : > { %v2155_v3 = vadd.f32 %v5340_v27, %v2154_v53  ;;  %v3778_v30 = vpop.f32.mrb[74].mxu0  ;;  %3851 = vmatprep.mubr.bf16.mxu1 %v2443_v48 }
 0x35f   : > { %v2166_v38 = vadd.f32 %v3778_v30, %v5340_v27  ;;  %v2157_v31 = vpop.f32.mrb[75].mxu0  ;;  %3852 = vmatmul.mubr.bf16.gmra.mrb[68].mxu1 %v2444_v59  ;;  %v2387_v58 = vmax.f32 %v2163_v52, 0.0 }
 0x360   : > { %v2158_v45 = vadd.f32 %v5340_v27, %v2157_v31  ;;  %v2385_v42 = vmax.f32 %v2155_v3, 0.0 }
 0x361   : > { %v2388_v35 = vmax.f32 %v2166_v38, 0.0 }
 0x362   : > { %v2386_v14 = vmax.f32 %v2158_v45, 0.0 }
 0x363   : > { %v2446_v17 = vpack.c.bf16 %v2388_v35, %v2387_v58 }
 0x364   : > { %v2445_v47 = vpack.c.bf16 %v2386_v14, %v2385_v42  ;;  %v3781_v57 = vpop.f32.mrb[76].mxu0 }
 0x365   : > { %v2179_v49 = vadd.f32 %v3781_v57, %v5340_v27  ;;  %v2170_v29 = vpop.f32.mrb[77].mxu0 }
 0x366   : > { %v2171_v22 = vadd.f32 %v5340_v27, %v2170_v29  ;;  %v3782_v50 = vpop.f32.mrb[78].mxu0  ;;  %3855 = vmatprep.mubr.bf16.mxu1 %v2445_v47 }
 0x367   : > { %v2182_v61 = vadd.f32 %v3782_v50, %v5340_v27  ;;  %v2173_v6 = vpop.f32.mrb[79].mxu0  ;;  %3856 = vmatmul.mubr.bf16.gmra.mrb[72].mxu1 %v2446_v17  ;;  %v2391_v13 = vmax.f32 %v2179_v49, 0.0 }
 0x368   : > { %v2174_v43 = vadd.f32 %v5340_v27, %v2173_v6  ;;  %v2389_v23 = vmax.f32 %v2171_v22, 0.0 }
 0x369   : > { %v2392_v20 = vmax.f32 %v2182_v61, 0.0 }
 0x36a   : > { %v2390_v36 = vmax.f32 %v2174_v43, 0.0 }
 0x36b   : > { %v2448_v5 = vpack.c.bf16 %v2392_v20, %v2391_v13 }
 0x36c   : > { %v2447_v8 = vpack.c.bf16 %v2390_v36, %v2389_v23  ;;  %v3785_v19 = vpop.f32.mrb[80].mxu0 }
 0x36d   : > { %v2195_v37 = vadd.f32 %v3785_v19, %v5340_v27  ;;  %v2186_v39 = vpop.f32.mrb[81].mxu0 }
 0x36e   : > { %v2187_v55 = vadd.f32 %v5340_v27, %v2186_v39  ;;  %v3786_v0 = vpop.f32.mrb[82].mxu0  ;;  %3859 = vmatprep.mubr.bf16.mxu1 %v2447_v8 }
 0x36f   : > { %v2198_v7 = vadd.f32 %v3786_v0, %v5340_v27  ;;  %v2189_v16 = vpop.f32.mrb[83].mxu0  ;;  %3860 = vmatmul.mubr.bf16.gmra.mrb[76].mxu1 %v2448_v5  ;;  %v2395_v28 = vmax.f32 %v2195_v37, 0.0 }
 0x370   : > { %v2190_v21 = vadd.f32 %v5340_v27, %v2189_v16  ;;  %v2393_v15 = vmax.f32 %v2187_v55, 0.0 }
 0x371   : > { %v2396_v9 = vmax.f32 %v2198_v7, 0.0 }
 0x372   : > { %v2394_v33 = vmax.f32 %v2190_v21, 0.0 }
 0x373   : > { %v2450_v12 = vpack.c.bf16 %v2396_v9, %v2395_v28 }
 0x374   : > { %v2449_v24 = vpack.c.bf16 %v2394_v33, %v2393_v15  ;;  %v3789_v62 = vpop.f32.mrb[84].mxu0 }
 0x375   : > { %v2211_v11 = vadd.f32 %v3789_v62, %v5340_v27  ;;  %v2202_v32 = vpop.f32.mrb[85].mxu0 }
 0x376   : > { %v2203_v46 = vadd.f32 %v5340_v27, %v2202_v32  ;;  %v3790_v40 = vpop.f32.mrb[86].mxu0  ;;  %3863 = vmatprep.mubr.bf16.mxu1 %v2449_v24 }
 0x377   : > { %v2214_v56 = vadd.f32 %v3790_v40, %v5340_v27  ;;  %v2205_v63 = vpop.f32.mrb[87].mxu0  ;;  %3864 = vmatmul.mubr.bf16.gmra.mrb[80].mxu1 %v2450_v12  ;;  %v2399_v34 = vmax.f32 %v2211_v11, 0.0 }
 0x378   : > { %v2206_v10 = vadd.f32 %v5340_v27, %v2205_v63  ;;  %v2397_v4 = vmax.f32 %v2203_v46, 0.0 }
 0x379   : > { %v2400_v51 = vmax.f32 %v2214_v56, 0.0 }
 0x37a   : > { %v2398_v44 = vmax.f32 %v2206_v10, 0.0 }
 0x37b   : > { %v2452_v18 = vpack.c.bf16 %v2400_v51, %v2399_v34 }
 0x37c   : > { %v2451_v26 = vpack.c.bf16 %v2398_v44, %v2397_v4  ;;  %v3793_v1 = vpop.f32.mrb[88].mxu0 }
 0x37d   : > { %v2227_v60 = vadd.f32 %v3793_v1, %v5340_v27  ;;  %v2218_v25 = vpop.f32.mrb[89].mxu0 }
 0x37e   : > { %v2219_v2 = vadd.f32 %v5340_v27, %v2218_v25  ;;  %v3794_v41 = vpop.f32.mrb[90].mxu0  ;;  %3867 = vmatprep.mubr.bf16.mxu1 %v2451_v26 }
 0x37f   : > { %v2230_v59 = vadd.f32 %v3794_v41, %v5340_v27  ;;  %v2221_v48 = vpop.f32.mrb[91].mxu0  ;;  %3868 = vmatmul.mubr.bf16.gmra.mrb[84].mxu1 %v2452_v18  ;;  %v2403_v52 = vmax.f32 %v2227_v60, 0.0 }
 0x380   : > { %v2222_v54 = vadd.f32 %v5340_v27, %v2221_v48  ;;  %v2401_v3 = vmax.f32 %v2219_v2, 0.0 }
 0x381   : > { %v2404_v53 = vmax.f32 %v2230_v59, 0.0 }
 0x382   : > { %v2402_v30 = vmax.f32 %v2222_v54, 0.0 }
 0x383   : > { %v2454_v38 = vpack.c.bf16 %v2404_v53, %v2403_v52 }
 0x384   : > { %v2453_v31 = vpack.c.bf16 %v2402_v30, %v2401_v3  ;;  %v3797_v45 = vpop.f32.mrb[92].mxu0 }
 0x385   : > { %v2243_v58 = vadd.f32 %v3797_v45, %v5340_v27  ;;  %v2234_v35 = vpop.f32.mrb[93].mxu0 }
 0x386   : > { %v2235_v42 = vadd.f32 %v5340_v27, %v2234_v35  ;;  %v3798_v14 = vpop.f32.mrb[94].mxu0  ;;  %3871 = vmatprep.mubr.bf16.mxu1 %v2453_v31 }
 0x387   : > { %v2246_v17 = vadd.f32 %v3798_v14, %v5340_v27  ;;  %v2237_v47 = vpop.f32.mrb[95].mxu0  ;;  %3872 = vmatmul.mubr.bf16.gmra.mrb[88].mxu1 %v2454_v38  ;;  %v2407_v49 = vmax.f32 %v2243_v58, 0.0 }
 0x388   : > { %v2238_v57 = vadd.f32 %v5340_v27, %v2237_v47  ;;  %v2405_v22 = vmax.f32 %v2235_v42, 0.0 }
 0x389   : > { %v2408_v29 = vmax.f32 %v2246_v17, 0.0 }
 0x38a   : > { %v2406_v50 = vmax.f32 %v2238_v57, 0.0 }
 0x38b   : > { %v2456_v61 = vpack.c.bf16 %v2408_v29, %v2407_v49 }
 0x38c   : > { %v2455_v6 = vpack.c.bf16 %v2406_v50, %v2405_v22  ;;  %v3801_v43 = vpop.f32.mrb[96].mxu0 }
 0x38d   : > { %v2259_v13 = vadd.f32 %v3801_v43, %v5340_v27  ;;  %v2250_v20 = vpop.f32.mrb[97].mxu0 }
 0x38e   : > { %v2251_v23 = vadd.f32 %v5340_v27, %v2250_v20  ;;  %v3802_v36 = vpop.f32.mrb[98].mxu0  ;;  %3875 = vmatprep.mubr.bf16.mxu1 %v2455_v6 }
 0x38f   : > { %v2262_v5 = vadd.f32 %v3802_v36, %v5340_v27  ;;  %v2253_v8 = vpop.f32.mrb[99].mxu0  ;;  %3876 = vmatmul.mubr.bf16.gmra.mrb[92].mxu1 %v2456_v61  ;;  %v2411_v37 = vmax.f32 %v2259_v13, 0.0 }
 0x390   : > { %v2254_v19 = vadd.f32 %v5340_v27, %v2253_v8  ;;  %v2409_v55 = vmax.f32 %v2251_v23, 0.0 }
 0x391   : > { %v2412_v39 = vmax.f32 %v2262_v5, 0.0 }
 0x392   : > { %v2410_v0 = vmax.f32 %v2254_v19, 0.0 }
 0x393   : > { %v2458_v7 = vpack.c.bf16 %v2412_v39, %v2411_v37 }
 0x394   : > { %v2457_v16 = vpack.c.bf16 %v2410_v0, %v2409_v55  ;;  %v3805_v21 = vpop.f32.mrb[100].mxu0 }
 0x395   : > { %v2275_v28 = vadd.f32 %v3805_v21, %v5340_v27  ;;  %v2266_v9 = vpop.f32.mrb[101].mxu0 }
 0x396   : > { %v2267_v15 = vadd.f32 %v5340_v27, %v2266_v9  ;;  %v3806_v33 = vpop.f32.mrb[102].mxu0  ;;  %3879 = vmatprep.mubr.bf16.mxu1 %v2457_v16 }
 0x397   : > { %v2278_v12 = vadd.f32 %v3806_v33, %v5340_v27  ;;  %v2269_v24 = vpop.f32.mrb[103].mxu0  ;;  %3880 = vmatmul.mubr.bf16.gmra.mrb[96].mxu1 %v2458_v7  ;;  %v2415_v11 = vmax.f32 %v2275_v28, 0.0 }
 0x398   : > { %v2270_v62 = vadd.f32 %v5340_v27, %v2269_v24  ;;  %v2413_v46 = vmax.f32 %v2267_v15, 0.0 }
 0x399   : > { %v2416_v32 = vmax.f32 %v2278_v12, 0.0 }
 0x39a   : > { %v2414_v40 = vmax.f32 %v2270_v62, 0.0 }
 0x39b   : > { %v2460_v56 = vpack.c.bf16 %v2416_v32, %v2415_v11 }
 0x39c   : > { %v2459_v63 = vpack.c.bf16 %v2414_v40, %v2413_v46  ;;  %v3809_v10 = vpop.f32.mrb[104].mxu0 }
 0x39d   : > { %v2291_v34 = vadd.f32 %v3809_v10, %v5340_v27  ;;  %v2282_v51 = vpop.f32.mrb[105].mxu0 }
 0x39e   : > { %v2283_v4 = vadd.f32 %v5340_v27, %v2282_v51  ;;  %v3810_v44 = vpop.f32.mrb[106].mxu0  ;;  %3883 = vmatprep.mubr.bf16.mxu1 %v2459_v63 }
 0x39f   : > { %v2294_v18 = vadd.f32 %v3810_v44, %v5340_v27  ;;  %v2285_v26 = vpop.f32.mrb[107].mxu0  ;;  %3884 = vmatmul.mubr.bf16.gmra.mrb[100].mxu1 %v2460_v56  ;;  %v2419_v60 = vmax.f32 %v2291_v34, 0.0 }
 0x3a0   : > { %v2286_v1 = vadd.f32 %v5340_v27, %v2285_v26  ;;  %v2417_v2 = vmax.f32 %v2283_v4, 0.0 }
 0x3a1   : > { %v2420_v25 = vmax.f32 %v2294_v18, 0.0 }
 0x3a2   : > { %v2418_v41 = vmax.f32 %v2286_v1, 0.0 }
 0x3a3   : > { %v2462_v59 = vpack.c.bf16 %v2420_v25, %v2419_v60 }
 0x3a4   : > { %v2461_v48 = vpack.c.bf16 %v2418_v41, %v2417_v2  ;;  %v3813_v54 = vpop.f32.mrb[108].mxu0 }
 0x3a5   : > { %v2307_v52 = vadd.f32 %v3813_v54, %v5340_v27  ;;  %v2298_v53 = vpop.f32.mrb[109].mxu0 }
 0x3a6   : > { %v2299_v3 = vadd.f32 %v5340_v27, %v2298_v53  ;;  %v3814_v30 = vpop.f32.mrb[110].mxu0  ;;  %3887 = vmatprep.mubr.bf16.mxu1 %v2461_v48 }
 0x3a7   : > { %v2310_v38 = vadd.f32 %v3814_v30, %v5340_v27  ;;  %v2301_v31 = vpop.f32.mrb[111].mxu0  ;;  %3888 = vmatmul.mubr.bf16.gmra.mrb[104].mxu1 %v2462_v59  ;;  %v2423_v58 = vmax.f32 %v2307_v52, 0.0 }
 0x3a8   : > { %v2302_v45 = vadd.f32 %v5340_v27, %v2301_v31  ;;  %v2421_v42 = vmax.f32 %v2299_v3, 0.0 }
 0x3a9   : > { %v2424_v35 = vmax.f32 %v2310_v38, 0.0 }
 0x3aa   : > { %v2422_v14 = vmax.f32 %v2302_v45, 0.0  ;;  %v5409_v45 = vld [vmem:[%s5597_s9] ss:$0 sm:$0xff] }
 0x3ab   : > { %v2464_v17 = vpack.c.bf16 %v2424_v35, %v2423_v58 }
 0x3ac   : > { %v2463_v47 = vpack.c.bf16 %v2422_v14, %v2421_v42  ;;  %v3817_v57 = vpop.f32.mrb[112].mxu0 }
 0x3ad   : > { %v2323_v49 = vadd.f32 %v3817_v57, %v5340_v27  ;;  %v2314_v29 = vpop.f32.mrb[113].mxu0 }
 0x3ae   : > { %v2315_v22 = vadd.f32 %v5340_v27, %v2314_v29  ;;  %v3818_v50 = vpop.f32.mrb[114].mxu0  ;;  %3891 = vmatprep.mubr.bf16.mxu1 %v2463_v47 }
 0x3af   : > { %v2326_v61 = vadd.f32 %v3818_v50, %v5340_v27  ;;  %v2317_v6 = vpop.f32.mrb[115].mxu0  ;;  %3892 = vmatmul.mubr.bf16.gmra.mrb[108].mxu1 %v2464_v17  ;;  %v2427_v13 = vmax.f32 %v2323_v49, 0.0 }
 0x3b0   : > { %v2318_v43 = vadd.f32 %v5340_v27, %v2317_v6  ;;  %v2425_v23 = vmax.f32 %v2315_v22, 0.0 }
 0x3b1   : > { %v2428_v20 = vmax.f32 %v2326_v61, 0.0 }
 0x3b2   : > { %v2426_v36 = vmax.f32 %v2318_v43, 0.0 }
 0x3b3   : > { %v2466_v5 = vpack.c.bf16 %v2428_v20, %v2427_v13 }
 0x3b4   : > { %v2465_v8 = vpack.c.bf16 %v2426_v36, %v2425_v23  ;;  %v3821_v19 = vpop.f32.mrb[116].mxu0 }
 0x3b5   : > { %v2339_v37 = vadd.f32 %v3821_v19, %v5340_v27  ;;  %v2330_v39 = vpop.f32.mrb[117].mxu0 }
 0x3b6   : > { %v2331_v55 = vadd.f32 %v5340_v27, %v2330_v39  ;;  %v3822_v0 = vpop.f32.mrb[118].mxu0  ;;  %3895 = vmatprep.mubr.bf16.mxu1 %v2465_v8 }
 0x3b7   : > { %v2342_v7 = vadd.f32 %v3822_v0, %v5340_v27  ;;  %v2333_v16 = vpop.f32.mrb[119].mxu0  ;;  %3896 = vmatmul.mubr.bf16.gmra.mrb[112].mxu1 %v2466_v5  ;;  %v2431_v28 = vmax.f32 %v2339_v37, 0.0 }
 0x3b8   : > { %v2334_v21 = vadd.f32 %v5340_v27, %v2333_v16  ;;  %v2429_v15 = vmax.f32 %v2331_v55, 0.0 }
 0x3b9   : > { %v2432_v9 = vmax.f32 %v2342_v7, 0.0 }
 0x3ba   : > { %v2430_v33 = vmax.f32 %v2334_v21, 0.0 }
 0x3bb   : > { %v2468_v12 = vpack.c.bf16 %v2432_v9, %v2431_v28 }
 0x3bc   : > { %v2467_v24 = vpack.c.bf16 %v2430_v33, %v2429_v15  ;;  %v3825_v62 = vpop.f32.mrb[120].mxu0 }
 0x3bd   : > { %v2355_v11 = vadd.f32 %v3825_v62, %v5340_v27  ;;  %v2346_v32 = vpop.f32.mrb[121].mxu0 }
 0x3be   : > { %v2347_v46 = vadd.f32 %v5340_v27, %v2346_v32  ;;  %v3826_v40 = vpop.f32.mrb[122].mxu0  ;;  %3899 = vmatprep.mubr.bf16.mxu1 %v2467_v24 }
 0x3bf   : > { %v2358_v56 = vadd.f32 %v3826_v40, %v5340_v27  ;;  %v2349_v63 = vpop.f32.mrb[123].mxu0  ;;  %3900 = vmatmul.mubr.bf16.gmra.mrb[116].mxu1 %v2468_v12  ;;  %v2435_v34 = vmax.f32 %v2355_v11, 0.0 }
 0x3c0   : > { %v2350_v10 = vadd.f32 %v5340_v27, %v2349_v63  ;;  %v2433_v4 = vmax.f32 %v2347_v46, 0.0 }
 0x3c1   : > { %v2436_v51 = vmax.f32 %v2358_v56, 0.0 }
 0x3c2   : > { %v2434_v44 = vmax.f32 %v2350_v10, 0.0 }
 0x3c3   : > { %v2470_v18 = vpack.c.bf16 %v2436_v51, %v2435_v34 }
 0x3c4   : > { %v2469_v26 = vpack.c.bf16 %v2434_v44, %v2433_v4  ;;  %v3829_v1 = vpop.f32.mrb[124].mxu0 }
 0x3c5   : > { %v2371_v60 = vadd.f32 %v3829_v1, %v5340_v27  ;;  %v2362_v25 = vpop.f32.mrb[125].mxu0 }
 0x3c6   : > { %v2363_v2 = vadd.f32 %v5340_v27, %v2362_v25  ;;  %v3830_v41 = vpop.f32.mrb[126].mxu0  ;;  %3903 = vmatprep.mubr.bf16.mxu1 %v2469_v26 }
 0x3c7   : > { %v2374_v59 = vadd.f32 %v3830_v41, %v5340_v27  ;;  %v2365_v48 = vpop.f32.mrb[127].mxu0  ;;  %3904 = vmatmul.mubr.bf16.gmra.mrb[120].mxu1 %v2470_v18  ;;  %v2439_v52 = vmax.f32 %v2371_v60, 0.0 }
 0x3c8   : > { %v2366_v54 = vadd.f32 %v5340_v27, %v2365_v48  ;;  %v2437_v3 = vmax.f32 %v2363_v2, 0.0 }
 0x3c9   : > { %v2440_v53 = vmax.f32 %v2374_v59, 0.0 }
 0x3ca   : > { %v2438_v30 = vmax.f32 %v2366_v54, 0.0 }
 0x3cb   : > { %v2472_v38 = vpack.c.bf16 %v2440_v53, %v2439_v52 }
 0x3cc   : > { %v2471_v31 = vpack.c.bf16 %v2438_v30, %v2437_v3 }
 0x3ce   : > { %3907 = vmatprep.mubr.bf16.mxu1 %v2471_v31 }
 0x3cf   : > { %3908 = vmatmul.mubr.bf16.gmra.mrb[124].mxu1 %v2472_v38 }
 0x429   : > { %v3849_v58 = vpop.f32.mrb[64].mxu1 }
 0x42a   : > { %v2587_v35 = vadd.f32 %v3849_v58, %v5409_v45  ;;  %v2578_v42 = vpop.f32.mrb[65].mxu1 }
 0x42b   : > { %v2579_v14 = vadd.f32 %v5409_v45, %v2578_v42  ;;  %v3850_v27 = vpop.f32.mrb[66].mxu1 }
 0x42c   : > { %v2835_v17 = vsub.f32 0.0, %v2587_v35  ;;  %v2590_v47 = vadd.f32 %v3850_v27, %v5409_v45  ;;  %v2581_v57 = vpop.f32.mrb[67].mxu1 }
 0x42d   : > { %v2833_v49 = vsub.f32 0.0, %v2579_v14  ;;  %v2582_v29 = vadd.f32 %v5409_v45, %v2581_v57 }
 0x42e   : > { %v2901_v22 = vmul.f32 1.442695, %v2835_v17  ;;  %v2836_v50 = vsub.f32 0.0, %v2590_v47 }
 0x42f   : > { %v2897_v61 = vmul.f32 1.442695, %v2833_v49  ;;  %v2834_v6 = vsub.f32 0.0, %v2582_v29 }
 0x430   : > { %4107 = vpow2.f32 %v2901_v22  ;;  %v2903_v43 = vmul.f32 1.442695, %v2836_v50 }
 0x431   : > { %4109 = vpow2.f32 %v2897_v61  ;;  %v2899_v13 = vmul.f32 1.442695, %v2834_v6 }
 0x432   : > { %4111 = vpow2.f32 %v2903_v43  ;;  %v3853_v20 = vpop.f32.mrb[68].mxu1 }
 0x433   : > { %4113 = vpow2.f32 %v2899_v13  ;;  %v2603_v23 = vadd.f32 %v3853_v20, %v5409_v45  ;;  %v2594_v36 = vpop.f32.mrb[69].mxu1 }
 0x434   : > { %v2595_v5 = vadd.f32 %v5409_v45, %v2594_v36  ;;  %v3854_v8 = vpop.f32.mrb[70].mxu1 }
 0x435   : > { %v2839_v19 = vsub.f32 0.0, %v2603_v23  ;;  %v2606_v37 = vadd.f32 %v3854_v8, %v5409_v45  ;;  %v2597_v39 = vpop.f32.mrb[71].mxu1 }
 0x436   : > { %v2837_v55 = vsub.f32 0.0, %v2595_v5  ;;  %v2598_v0 = vadd.f32 %v5409_v45, %v2597_v39 }
 0x437   : > { %v2909_v7 = vmul.f32 1.442695, %v2839_v19  ;;  %v2840_v16 = vsub.f32 0.0, %v2606_v37 }
 0x438   : > { %v2905_v21 = vmul.f32 1.442695, %v2837_v55  ;;  %v2838_v28 = vsub.f32 0.0, %v2598_v0 }
 0x439   : > { %4115 = vpow2.f32 %v2909_v7  ;;  %v2911_v9 = vmul.f32 1.442695, %v2840_v16 }
 0x43a   : > { %v4108_v15 = vpop.eup %4107  ;;  %4117 = vpow2.f32 %v2905_v21  ;;  %v2907_v33 = vmul.f32 1.442695, %v2838_v28  ;;  %v3857_v12 = vpop.f32.mrb[72].mxu1 }
 0x43b   : > { %v4110_v24 = vpop.eup %4109  ;;  %v3027_v62 = vadd.f32 1.0, %v4108_v15  ;;  %4119 = vpow2.f32 %v2911_v9  ;;  %v2619_v11 = vadd.f32 %v3857_v12, %v5409_v45  ;;  %v2610_v32 = vpop.f32.mrb[73].mxu1 }
 0x43c   : > { %v4112_v46 = vpop.eup %4111  ;;  %v3025_v40 = vadd.f32 1.0, %v4110_v24  ;;  %4121 = vpow2.f32 %v2907_v33  ;;  %v2611_v56 = vadd.f32 %v5409_v45, %v2610_v32  ;;  %v3858_v63 = vpop.f32.mrb[74].mxu1 }
 0x43d   : > { %v4114_v10 = vpop.eup %4113  ;;  %4123 = vrcp.f32 %v3027_v62  ;;  %v3028_v34 = vadd.f32 1.0, %v4112_v46  ;;  %v2843_v51 = vsub.f32 0.0, %v2619_v11  ;;  %v2622_v4 = vadd.f32 %v3858_v63, %v5409_v45  ;;  %v2613_v44 = vpop.f32.mrb[75].mxu1 }
 0x43e   : > { %4125 = vrcp.f32 %v3025_v40  ;;  %v3026_v18 = vadd.f32 1.0, %v4114_v10  ;;  %v2841_v26 = vsub.f32 0.0, %v2611_v56  ;;  %v2614_v1 = vadd.f32 %v5409_v45, %v2613_v44 }
 0x43f   : > { %4127 = vrcp.f32 %v3028_v34  ;;  %v2917_v60 = vmul.f32 1.442695, %v2843_v51  ;;  %v2844_v25 = vsub.f32 0.0, %v2622_v4 }
 0x440   : > { %4129 = vrcp.f32 %v3026_v18  ;;  %v2913_v2 = vmul.f32 1.442695, %v2841_v26  ;;  %v2842_v41 = vsub.f32 0.0, %v2614_v1 }
 0x441   : > { %4131 = vpow2.f32 %v2917_v60  ;;  %v2919_v59 = vmul.f32 1.442695, %v2844_v25 }
 0x442   : > { %4133 = vpow2.f32 %v2913_v2  ;;  %v2915_v48 = vmul.f32 1.442695, %v2842_v41  ;;  %v3861_v54 = vpop.f32.mrb[76].mxu1 }
 0x443   : > { %v4116_v52 = vpop.eup %4115  ;;  %4135 = vpow2.f32 %v2919_v59  ;;  %v2635_v53 = vadd.f32 %v3861_v54, %v5409_v45  ;;  %v2626_v3 = vpop.f32.mrb[77].mxu1 }
 0x444   : > { %v4118_v30 = vpop.eup %4117  ;;  %v3031_v38 = vadd.f32 1.0, %v4116_v52  ;;  %4137 = vpow2.f32 %v2915_v48  ;;  %v2627_v31 = vadd.f32 %v5409_v45, %v2626_v3  ;;  %v3862_v58 = vpop.f32.mrb[78].mxu1 }
 0x445   : > { %v4120_v35 = vpop.eup %4119  ;;  %v3029_v42 = vadd.f32 1.0, %v4118_v30  ;;  %v2847_v14 = vsub.f32 0.0, %v2635_v53  ;;  %v2638_v27 = vadd.f32 %v3862_v58, %v5409_v45  ;;  %v2629_v17 = vpop.f32.mrb[79].mxu1 }
 0x446   : > { %v4122_v47 = vpop.eup %4121  ;;  %4139 = vrcp.f32 %v3031_v38  ;;  %v3032_v57 = vadd.f32 1.0, %v4120_v35  ;;  %v2845_v49 = vsub.f32 0.0, %v2627_v31  ;;  %v2630_v29 = vadd.f32 %v5409_v45, %v2629_v17 }
 0x447   : > { %v4124_v22 = vpop.eup %4123  ;;  %4141 = vrcp.f32 %v3029_v42  ;;  %v3030_v50 = vadd.f32 1.0, %v4122_v47  ;;  %v2925_v61 = vmul.f32 1.442695, %v2847_v14  ;;  %v2848_v6 = vsub.f32 0.0, %v2638_v27 }
 0x448   : > { %v4126_v43 = vpop.eup %4125  ;;  %3155 = vst [vmem:[%s4758_s29 + $0x20] sm:$0xff] %v4124_v22  ;;  %4143 = vrcp.f32 %v3032_v57  ;;  %v2921_v13 = vmul.f32 1.442695, %v2845_v49  ;;  %v2846_v20 = vsub.f32 0.0, %v2630_v29 }
 0x449   : > { %v4128_v23 = vpop.eup %4127  ;;  %3153 = vst [vmem:[%s4758_s29] sm:$0xff] %v4126_v43  ;;  %4145 = vrcp.f32 %v3030_v50  ;;  %v2927_v36 = vmul.f32 1.442695, %v2848_v6 }
 0x44a   : > { %v4130_v5 = vpop.eup %4129  ;;  %3156 = vst [vmem:[%s4758_s29 + $0x30] sm:$0xff] %v4128_v23  ;;  %4147 = vpow2.f32 %v2925_v61  ;;  %v2923_v8 = vmul.f32 1.442695, %v2846_v20  ;;  %v3865_v19 = vpop.f32.mrb[80].mxu1 }
 0x44b   : > { %v4132_v37 = vpop.eup %4131  ;;  %3154 = vst [vmem:[%s4758_s29 + $0x10] sm:$0xff] %v4130_v5  ;;  %4149 = vpow2.f32 %v2921_v13  ;;  %v2651_v39 = vadd.f32 %v3865_v19, %v5409_v45  ;;  %v2642_v55 = vpop.f32.mrb[81].mxu1 }
 0x44c   : > { %v4134_v0 = vpop.eup %4133  ;;  %v3035_v7 = vadd.f32 1.0, %v4132_v37  ;;  %4151 = vpow2.f32 %v2927_v36  ;;  %v2643_v16 = vadd.f32 %v5409_v45, %v2642_v55  ;;  %v3866_v21 = vpop.f32.mrb[82].mxu1 }
 0x44d   : > { %v4136_v28 = vpop.eup %4135  ;;  %v3033_v9 = vadd.f32 1.0, %v4134_v0  ;;  %4153 = vpow2.f32 %v2923_v8  ;;  %v2851_v15 = vsub.f32 0.0, %v2651_v39  ;;  %v2654_v33 = vadd.f32 %v3866_v21, %v5409_v45  ;;  %v2645_v12 = vpop.f32.mrb[83].mxu1 }
 0x44e   : > { %v4138_v24 = vpop.eup %4137  ;;  %4155 = vrcp.f32 %v3035_v7  ;;  %v3036_v62 = vadd.f32 1.0, %v4136_v28  ;;  %v2849_v11 = vsub.f32 0.0, %v2643_v16  ;;  %v2646_v32 = vadd.f32 %v5409_v45, %v2645_v12 }
 0x44f   : > { %4157 = vrcp.f32 %v3033_v9  ;;  %v3034_v46 = vadd.f32 1.0, %v4138_v24  ;;  %v2933_v40 = vmul.f32 1.442695, %v2851_v15  ;;  %v2852_v56 = vsub.f32 0.0, %v2654_v33 }
 0x450   : > { %v4140_v63 = vpop.eup %4139  ;;  %4159 = vrcp.f32 %v3036_v62  ;;  %v2929_v10 = vmul.f32 1.442695, %v2849_v11  ;;  %v2850_v34 = vsub.f32 0.0, %v2646_v32 }
 0x451   : > { %v4142_v51 = vpop.eup %4141  ;;  %3159 = vst [vmem:[%s4758_s29 + $0x60] sm:$0xff] %v4140_v63  ;;  %4161 = vrcp.f32 %v3034_v46  ;;  %v2935_v4 = vmul.f32 1.442695, %v2852_v56 }
 0x452   : > { %v4144_v44 = vpop.eup %4143  ;;  %3157 = vst [vmem:[%s4758_s29 + $0x40] sm:$0xff] %v4142_v51  ;;  %4163 = vpow2.f32 %v2933_v40  ;;  %v2931_v18 = vmul.f32 1.442695, %v2850_v34  ;;  %v3869_v26 = vpop.f32.mrb[84].mxu1 }
 0x453   : > { %v4146_v1 = vpop.eup %4145  ;;  %3160 = vst [vmem:[%s4758_s29 + $0x70] sm:$0xff] %v4144_v44  ;;  %4165 = vpow2.f32 %v2929_v10  ;;  %v2667_v60 = vadd.f32 %v3869_v26, %v5409_v45  ;;  %v2658_v25 = vpop.f32.mrb[85].mxu1 }
 0x454   : > { %v4148_v2 = vpop.eup %4147  ;;  %3158 = vst [vmem:[%s4758_s29 + $0x50] sm:$0xff] %v4146_v1  ;;  %4167 = vpow2.f32 %v2935_v4  ;;  %v2659_v41 = vadd.f32 %v5409_v45, %v2658_v25  ;;  %v3870_v59 = vpop.f32.mrb[86].mxu1 }
 0x455   : > { %v4150_v48 = vpop.eup %4149  ;;  %v3039_v54 = vadd.f32 1.0, %v4148_v2  ;;  %4169 = vpow2.f32 %v2931_v18  ;;  %v2855_v52 = vsub.f32 0.0, %v2667_v60  ;;  %v2670_v53 = vadd.f32 %v3870_v59, %v5409_v45  ;;  %v2661_v3 = vpop.f32.mrb[87].mxu1 }
 0x456   : > { %v4152_v30 = vpop.eup %4151  ;;  %v3037_v38 = vadd.f32 1.0, %v4150_v48  ;;  %v2853_v31 = vsub.f32 0.0, %v2659_v41  ;;  %v2662_v58 = vadd.f32 %v5409_v45, %v2661_v3 }
 0x457   : > { %v4154_v35 = vpop.eup %4153  ;;  %4171 = vrcp.f32 %v3039_v54  ;;  %v3040_v42 = vadd.f32 1.0, %v4152_v30  ;;  %v2941_v14 = vmul.f32 1.442695, %v2855_v52  ;;  %v2856_v27 = vsub.f32 0.0, %v2670_v53 }
 0x458   : > { %v4156_v17 = vpop.eup %4155  ;;  %4173 = vrcp.f32 %v3037_v38  ;;  %v3038_v47 = vadd.f32 1.0, %v4154_v35  ;;  %v2937_v57 = vmul.f32 1.442695, %v2853_v31  ;;  %v2854_v49 = vsub.f32 0.0, %v2662_v58 }
 0x459   : > { %v4158_v29 = vpop.eup %4157  ;;  %3163 = vst [vmem:[%s4758_s29 + $0xa0] sm:$0xff] %v4156_v17  ;;  %4175 = vrcp.f32 %v3040_v42  ;;  %v2943_v22 = vmul.f32 1.442695, %v2856_v27 }
 0x45a   : > { %v4160_v50 = vpop.eup %4159  ;;  %3161 = vst [vmem:[%s4758_s29 + $0x80] sm:$0xff] %v4158_v29  ;;  %4177 = vrcp.f32 %v3038_v47  ;;  %v2939_v61 = vmul.f32 1.442695, %v2854_v49  ;;  %v3873_v6 = vpop.f32.mrb[88].mxu1 }
 0x45b   : > { %v4162_v43 = vpop.eup %4161  ;;  %3164 = vst [vmem:[%s4758_s29 + $0xb0] sm:$0xff] %v4160_v50  ;;  %4179 = vpow2.f32 %v2941_v14  ;;  %v2683_v13 = vadd.f32 %v3873_v6, %v5409_v45  ;;  %v2674_v20 = vpop.f32.mrb[89].mxu1 }
 0x45c   : > { %v4164_v23 = vpop.eup %4163  ;;  %3162 = vst [vmem:[%s4758_s29 + $0x90] sm:$0xff] %v4162_v43  ;;  %4181 = vpow2.f32 %v2937_v57  ;;  %v2675_v36 = vadd.f32 %v5409_v45, %v2674_v20  ;;  %v3874_v5 = vpop.f32.mrb[90].mxu1 }
 0x45d   : > { %v4166_v8 = vpop.eup %4165  ;;  %v3043_v19 = vadd.f32 1.0, %v4164_v23  ;;  %4183 = vpow2.f32 %v2943_v22  ;;  %v2859_v37 = vsub.f32 0.0, %v2683_v13  ;;  %v2686_v39 = vadd.f32 %v3874_v5, %v5409_v45  ;;  %v2677_v55 = vpop.f32.mrb[91].mxu1 }
 0x45e   : > { %v4168_v0 = vpop.eup %4167  ;;  %v3041_v7 = vadd.f32 1.0, %v4166_v8  ;;  %4185 = vpow2.f32 %v2939_v61  ;;  %v2857_v16 = vsub.f32 0.0, %v2675_v36  ;;  %v2678_v21 = vadd.f32 %v5409_v45, %v2677_v55 }
 0x45f   : > { %v4170_v28 = vpop.eup %4169  ;;  %4187 = vrcp.f32 %v3043_v19  ;;  %v3044_v9 = vadd.f32 1.0, %v4168_v0  ;;  %v2949_v15 = vmul.f32 1.442695, %v2859_v37  ;;  %v2860_v33 = vsub.f32 0.0, %v2686_v39 }
 0x460   : > { %4189 = vrcp.f32 %v3041_v7  ;;  %v3042_v12 = vadd.f32 1.0, %v4170_v28  ;;  %v2945_v24 = vmul.f32 1.442695, %v2857_v16  ;;  %v2858_v62 = vsub.f32 0.0, %v2678_v21 }
 0x461   : > { %v4172_v11 = vpop.eup %4171  ;;  %4191 = vrcp.f32 %v3044_v9  ;;  %v2951_v32 = vmul.f32 1.442695, %v2860_v33 }
 0x462   : > { %v4174_v46 = vpop.eup %4173  ;;  %3167 = vst [vmem:[%s4758_s29 + $0xe0] sm:$0xff] %v4172_v11  ;;  %4193 = vrcp.f32 %v3042_v12  ;;  %v2947_v40 = vmul.f32 1.442695, %v2858_v62  ;;  %v3877_v56 = vpop.f32.mrb[92].mxu1 }
 0x463   : > { %v4176_v63 = vpop.eup %4175  ;;  %3165 = vst [vmem:[%s4758_s29 + $0xc0] sm:$0xff] %v4174_v46  ;;  %4195 = vpow2.f32 %v2949_v15  ;;  %v2699_v10 = vadd.f32 %v3877_v56, %v5409_v45  ;;  %v2690_v34 = vpop.f32.mrb[93].mxu1 }
 0x464   : > { %v4178_v51 = vpop.eup %4177  ;;  %3168 = vst [vmem:[%s4758_s29 + $0xf0] sm:$0xff] %v4176_v63  ;;  %4197 = vpow2.f32 %v2945_v24  ;;  %v2691_v4 = vadd.f32 %v5409_v45, %v2690_v34  ;;  %v3878_v44 = vpop.f32.mrb[94].mxu1 }
 0x465   : > { %v4180_v18 = vpop.eup %4179  ;;  %3166 = vst [vmem:[%s4758_s29 + $0xd0] sm:$0xff] %v4178_v51  ;;  %4199 = vpow2.f32 %v2951_v32  ;;  %v2863_v26 = vsub.f32 0.0, %v2699_v10  ;;  %v2702_v1 = vadd.f32 %v3878_v44, %v5409_v45  ;;  %v2693_v60 = vpop.f32.mrb[95].mxu1 }
 0x466   : > { %v4182_v25 = vpop.eup %4181  ;;  %v3047_v2 = vadd.f32 1.0, %v4180_v18  ;;  %4201 = vpow2.f32 %v2947_v40  ;;  %v2861_v41 = vsub.f32 0.0, %v2691_v4  ;;  %v2694_v59 = vadd.f32 %v5409_v45, %v2693_v60 }
 0x467   : > { %v4184_v48 = vpop.eup %4183  ;;  %v3045_v54 = vadd.f32 1.0, %v4182_v25  ;;  %v2864_v52 = vsub.f32 0.0, %v2702_v1  ;;  %v2957_v30 = vmul.f32 1.442695, %v2863_v26 }
 0x468   : > { %v4186_v53 = vpop.eup %4185  ;;  %4203 = vrcp.f32 %v3047_v2  ;;  %v3048_v3 = vadd.f32 1.0, %v4184_v48  ;;  %v2862_v38 = vsub.f32 0.0, %v2694_v59  ;;  %v2953_v35 = vmul.f32 1.442695, %v2861_v41 }
 0x469   : > { %v4188_v31 = vpop.eup %4187  ;;  %4205 = vrcp.f32 %v3045_v54  ;;  %v3046_v58 = vadd.f32 1.0, %v4186_v53  ;;  %v2959_v14 = vmul.f32 1.442695, %v2864_v52 }
 0x46a   : > { %v4190_v42 = vpop.eup %4189  ;;  %3171 = vst [vmem:[%s4758_s29 + $0x120] sm:$0xff] %v4188_v31  ;;  %4207 = vrcp.f32 %v3048_v3  ;;  %v3881_v27 = vpop.f32.mrb[96].mxu1  ;;  %v2955_v47 = vmul.f32 1.442695, %v2862_v38 }
 0x46b   : > { %v4192_v17 = vpop.eup %4191  ;;  %3169 = vst [vmem:[%s4758_s29 + $0x100] sm:$0xff] %v4190_v42  ;;  %4209 = vrcp.f32 %v3046_v58  ;;  %v2715_v57 = vadd.f32 %v3881_v27, %v5409_v45  ;;  %v2706_v49 = vpop.f32.mrb[97].mxu1 }
 0x46c   : > { %v4194_v29 = vpop.eup %4193  ;;  %3172 = vst [vmem:[%s4758_s29 + $0x130] sm:$0xff] %v4192_v17  ;;  %4211 = vpow2.f32 %v2957_v30  ;;  %v2707_v22 = vadd.f32 %v5409_v45, %v2706_v49  ;;  %v3882_v50 = vpop.f32.mrb[98].mxu1 }
 0x46d   : > { %v4196_v61 = vpop.eup %4195  ;;  %3170 = vst [vmem:[%s4758_s29 + $0x110] sm:$0xff] %v4194_v29  ;;  %4213 = vpow2.f32 %v2953_v35  ;;  %v2867_v6 = vsub.f32 0.0, %v2715_v57  ;;  %v2718_v43 = vadd.f32 %v3882_v50, %v5409_v45  ;;  %v2709_v13 = vpop.f32.mrb[99].mxu1 }
 0x46e   : > { %v4198_v20 = vpop.eup %4197  ;;  %v3051_v23 = vadd.f32 1.0, %v4196_v61  ;;  %4215 = vpow2.f32 %v2959_v14  ;;  %v2865_v36 = vsub.f32 0.0, %v2707_v22  ;;  %v2710_v5 = vadd.f32 %v5409_v45, %v2709_v13 }
 0x46f   : > { %v4200_v8 = vpop.eup %4199  ;;  %v3049_v19 = vadd.f32 1.0, %v4198_v20  ;;  %4217 = vpow2.f32 %v2955_v47  ;;  %v2868_v37 = vsub.f32 0.0, %v2718_v43  ;;  %v2965_v0 = vmul.f32 1.442695, %v2867_v6 }
 0x470   : > { %v4202_v39 = vpop.eup %4201  ;;  %4219 = vrcp.f32 %v3051_v23  ;;  %v3052_v55 = vadd.f32 1.0, %v4200_v8  ;;  %v2866_v7 = vsub.f32 0.0, %v2710_v5  ;;  %v2961_v21 = vmul.f32 1.442695, %v2865_v36 }
 0x471   : > { %4221 = vrcp.f32 %v3049_v19  ;;  %v3050_v16 = vadd.f32 1.0, %v4202_v39  ;;  %v2967_v9 = vmul.f32 1.442695, %v2868_v37 }
 0x472   : > { %v4204_v28 = vpop.eup %4203  ;;  %4223 = vrcp.f32 %v3052_v55  ;;  %v3885_v15 = vpop.f32.mrb[100].mxu1  ;;  %v2963_v12 = vmul.f32 1.442695, %v2866_v7 }
 0x473   : > { %v4206_v33 = vpop.eup %4205  ;;  %3175 = vst [vmem:[%s4758_s29 + $0x160] sm:$0xff] %v4204_v28  ;;  %4225 = vrcp.f32 %v3050_v16  ;;  %v2731_v24 = vadd.f32 %v3885_v15, %v5409_v45  ;;  %v2722_v62 = vpop.f32.mrb[101].mxu1 }
 0x474   : > { %v4208_v11 = vpop.eup %4207  ;;  %3173 = vst [vmem:[%s4758_s29 + $0x140] sm:$0xff] %v4206_v33  ;;  %4227 = vpow2.f32 %v2965_v0  ;;  %v2723_v32 = vadd.f32 %v5409_v45, %v2722_v62  ;;  %v3886_v46 = vpop.f32.mrb[102].mxu1 }
 0x475   : > { %v4210_v40 = vpop.eup %4209  ;;  %3176 = vst [vmem:[%s4758_s29 + $0x170] sm:$0xff] %v4208_v11  ;;  %4229 = vpow2.f32 %v2961_v21  ;;  %v2871_v56 = vsub.f32 0.0, %v2731_v24  ;;  %v2734_v63 = vadd.f32 %v3886_v46, %v5409_v45  ;;  %v2725_v10 = vpop.f32.mrb[103].mxu1 }
 0x476   : > { %v4212_v34 = vpop.eup %4211  ;;  %3174 = vst [vmem:[%s4758_s29 + $0x150] sm:$0xff] %v4210_v40  ;;  %4231 = vpow2.f32 %v2967_v9  ;;  %v2869_v51 = vsub.f32 0.0, %v2723_v32  ;;  %v2726_v4 = vadd.f32 %v5409_v45, %v2725_v10 }
 0x477   : > { %v4214_v44 = vpop.eup %4213  ;;  %v3055_v18 = vadd.f32 1.0, %v4212_v34  ;;  %4233 = vpow2.f32 %v2963_v12  ;;  %v2872_v26 = vsub.f32 0.0, %v2734_v63  ;;  %v2973_v59 = vmul.f32 1.442695, %v2871_v56 }
 0x478   : > { %v4216_v1 = vpop.eup %4215  ;;  %v3053_v60 = vadd.f32 1.0, %v4214_v44  ;;  %v2870_v25 = vsub.f32 0.0, %v2726_v4  ;;  %v2969_v52 = vmul.f32 1.442695, %v2869_v51 }
 0x479   : > { %v4218_v2 = vpop.eup %4217  ;;  %4235 = vrcp.f32 %v3055_v18  ;;  %v3056_v41 = vadd.f32 1.0, %v4216_v1  ;;  %v2975_v30 = vmul.f32 1.442695, %v2872_v26 }
 0x47a   : > { %v4220_v48 = vpop.eup %4219  ;;  %4237 = vrcp.f32 %v3053_v60  ;;  %v3054_v54 = vadd.f32 1.0, %v4218_v2  ;;  %v3889_v53 = vpop.f32.mrb[104].mxu1  ;;  %v2971_v35 = vmul.f32 1.442695, %v2870_v25 }
 0x47b   : > { %v4222_v3 = vpop.eup %4221  ;;  %3179 = vst [vmem:[%s4758_s29 + $0x1a0] sm:$0xff] %v4220_v48  ;;  %4239 = vrcp.f32 %v3056_v41  ;;  %v2747_v38 = vadd.f32 %v3889_v53, %v5409_v45  ;;  %v2738_v31 = vpop.f32.mrb[105].mxu1 }
 0x47c   : > { %v4224_v58 = vpop.eup %4223  ;;  %3177 = vst [vmem:[%s4758_s29 + $0x180] sm:$0xff] %v4222_v3  ;;  %4241 = vrcp.f32 %v3054_v54  ;;  %v2739_v42 = vadd.f32 %v5409_v45, %v2738_v31  ;;  %v3890_v14 = vpop.f32.mrb[106].mxu1 }
 0x47d   : > { %v4226_v27 = vpop.eup %4225  ;;  %3180 = vst [vmem:[%s4758_s29 + $0x1b0] sm:$0xff] %v4224_v58  ;;  %4243 = vpow2.f32 %v2973_v59  ;;  %v2875_v17 = vsub.f32 0.0, %v2747_v38  ;;  %v2750_v47 = vadd.f32 %v3890_v14, %v5409_v45  ;;  %v2741_v57 = vpop.f32.mrb[107].mxu1 }
 0x47e   : > { %v4228_v49 = vpop.eup %4227  ;;  %3178 = vst [vmem:[%s4758_s29 + $0x190] sm:$0xff] %v4226_v27  ;;  %4245 = vpow2.f32 %v2969_v52  ;;  %v2873_v29 = vsub.f32 0.0, %v2739_v42  ;;  %v2742_v22 = vadd.f32 %v5409_v45, %v2741_v57 }
 0x47f   : > { %v4230_v50 = vpop.eup %4229  ;;  %v3059_v61 = vadd.f32 1.0, %v4228_v49  ;;  %4247 = vpow2.f32 %v2975_v30  ;;  %v2876_v6 = vsub.f32 0.0, %v2750_v47  ;;  %v2981_v5 = vmul.f32 1.442695, %v2875_v17 }
 0x480   : > { %v4232_v43 = vpop.eup %4231  ;;  %v3057_v13 = vadd.f32 1.0, %v4230_v50  ;;  %4249 = vpow2.f32 %v2971_v35  ;;  %v2874_v20 = vsub.f32 0.0, %v2742_v22  ;;  %v2977_v19 = vmul.f32 1.442695, %v2873_v29 }
 0x481   : > { %v4234_v23 = vpop.eup %4233  ;;  %4251 = vrcp.f32 %v3059_v61  ;;  %v3060_v36 = vadd.f32 1.0, %v4232_v43  ;;  %v2983_v55 = vmul.f32 1.442695, %v2876_v6 }
 0x482   : > { %4253 = vrcp.f32 %v3057_v13  ;;  %v3058_v8 = vadd.f32 1.0, %v4234_v23  ;;  %v3893_v37 = vpop.f32.mrb[108].mxu1  ;;  %v2979_v21 = vmul.f32 1.442695, %v2874_v20 }
 0x483   : > { %v4236_v39 = vpop.eup %4235  ;;  %4255 = vrcp.f32 %v3060_v36  ;;  %v2763_v0 = vadd.f32 %v3893_v37, %v5409_v45  ;;  %v2754_v7 = vpop.f32.mrb[109].mxu1 }
 0x484   : > { %v4238_v16 = vpop.eup %4237  ;;  %3183 = vst [vmem:[%s4758_s29 + $0x1e0] sm:$0xff] %v4236_v39  ;;  %4257 = vrcp.f32 %v3058_v8  ;;  %v2755_v28 = vadd.f32 %v5409_v45, %v2754_v7  ;;  %v3894_v9 = vpop.f32.mrb[110].mxu1 }
 0x485   : > { %v4240_v15 = vpop.eup %4239  ;;  %3181 = vst [vmem:[%s4758_s29 + $0x1c0] sm:$0xff] %v4238_v16  ;;  %4259 = vpow2.f32 %v2981_v5  ;;  %v2879_v33 = vsub.f32 0.0, %v2763_v0  ;;  %v2766_v12 = vadd.f32 %v3894_v9, %v5409_v45  ;;  %v2757_v24 = vpop.f32.mrb[111].mxu1 }
 0x486   : > { %v4242_v62 = vpop.eup %4241  ;;  %3184 = vst [vmem:[%s4758_s29 + $0x1f0] sm:$0xff] %v4240_v15  ;;  %4261 = vpow2.f32 %v2977_v19  ;;  %v2877_v11 = vsub.f32 0.0, %v2755_v28  ;;  %v2758_v32 = vadd.f32 %v5409_v45, %v2757_v24 }
 0x487   : > { %v4244_v46 = vpop.eup %4243  ;;  %3182 = vst [vmem:[%s4758_s29 + $0x1d0] sm:$0xff] %v4242_v62  ;;  %4263 = vpow2.f32 %v2983_v55  ;;  %v2989_v40 = vmul.f32 1.442695, %v2879_v33  ;;  %v2880_v56 = vsub.f32 0.0, %v2766_v12 }
 0x488   : > { %v4246_v63 = vpop.eup %4245  ;;  %v3063_v10 = vadd.f32 1.0, %v4244_v46  ;;  %4265 = vpow2.f32 %v2979_v21  ;;  %v2878_v34 = vsub.f32 0.0, %v2758_v32  ;;  %v2985_v26 = vmul.f32 1.442695, %v2877_v11 }
 0x489   : > { %v4248_v51 = vpop.eup %4247  ;;  %v3061_v4 = vadd.f32 1.0, %v4246_v63  ;;  %4267 = vpow2.f32 %v2989_v40  ;;  %v2991_v2 = vmul.f32 1.442695, %v2880_v56 }
 0x48a   : > { %v4250_v44 = vpop.eup %4249  ;;  %4269 = vrcp.f32 %v3063_v10  ;;  %v3064_v18 = vadd.f32 1.0, %v4248_v51  ;;  %v3897_v1 = vpop.f32.mrb[112].mxu1  ;;  %v2987_v54 = vmul.f32 1.442695, %v2878_v34 }
 0x48b   : > { %v4252_v60 = vpop.eup %4251  ;;  %4271 = vrcp.f32 %v3061_v4  ;;  %v3062_v25 = vadd.f32 1.0, %v4250_v44  ;;  %v2779_v41 = vadd.f32 %v3897_v1, %v5409_v45  ;;  %v2770_v59 = vpop.f32.mrb[113].mxu1 }
 0x48c   : > { %v4254_v48 = vpop.eup %4253  ;;  %3187 = vst [vmem:[%s4758_s29 + $0x220] sm:$0xff] %v4252_v60  ;;  %4273 = vrcp.f32 %v3064_v18  ;;  %v2771_v52 = vadd.f32 %v5409_v45, %v2770_v59  ;;  %v3898_v53 = vpop.f32.mrb[114].mxu1 }
 0x48d   : > { %v4256_v3 = vpop.eup %4255  ;;  %3185 = vst [vmem:[%s4758_s29 + $0x200] sm:$0xff] %v4254_v48  ;;  %4275 = vrcp.f32 %v3062_v25  ;;  %v2883_v30 = vsub.f32 0.0, %v2779_v41  ;;  %v2782_v38 = vadd.f32 %v3898_v53, %v5409_v45  ;;  %v2773_v31 = vpop.f32.mrb[115].mxu1  ;;  %v4378_v48 = vld [vmem:[%s5597_s9] ss:$0 sm:$0xff] }
 0x48e   : > { %v4258_v58 = vpop.eup %4257  ;;  %3188 = vst [vmem:[%s4758_s29 + $0x230] sm:$0xff] %v4256_v3  ;;  %4277 = vpow2.f32 %v2985_v26  ;;  %v2774_v35 = vadd.f32 %v5409_v45, %v2773_v31  ;;  %v2881_v27 = vsub.f32 0.0, %v2771_v52 }
 0x48f   : > { %v4260_v42 = vpop.eup %4259  ;;  %3186 = vst [vmem:[%s4758_s29 + $0x210] sm:$0xff] %v4258_v58  ;;  %4279 = vpow2.f32 %v2991_v2  ;;  %v2997_v14 = vmul.f32 1.442695, %v2883_v30  ;;  %v2884_v57 = vsub.f32 0.0, %v2782_v38 }
 0x490   : > { %v4262_v17 = vpop.eup %4261  ;;  %v3067_v47 = vadd.f32 1.0, %v4260_v42  ;;  %4281 = vpow2.f32 %v2987_v54  ;;  %v2882_v22 = vsub.f32 0.0, %v2774_v35  ;;  %v2993_v20 = vmul.f32 1.442695, %v2881_v27 }
 0x491   : > { %v4264_v49 = vpop.eup %4263  ;;  %v3065_v29 = vadd.f32 1.0, %v4262_v17  ;;  %4283 = vpow2.f32 %v2997_v14  ;;  %v2999_v19 = vmul.f32 1.442695, %v2884_v57 }
 0x492   : > { %v4266_v50 = vpop.eup %4265  ;;  %4285 = vrcp.f32 %v3067_v47  ;;  %v3068_v61 = vadd.f32 1.0, %v4264_v49  ;;  %v3901_v6 = vpop.f32.mrb[116].mxu1  ;;  %v2995_v0 = vmul.f32 1.442695, %v2882_v22 }
 0x493   : > { %v4268_v43 = vpop.eup %4267  ;;  %4287 = vrcp.f32 %v3065_v29  ;;  %v3066_v13 = vadd.f32 1.0, %v4266_v50  ;;  %v2795_v23 = vadd.f32 %v3901_v6, %v5409_v45  ;;  %v2786_v36 = vpop.f32.mrb[117].mxu1 }
 0x494   : > { %v4270_v5 = vpop.eup %4269  ;;  %4289 = vrcp.f32 %v3068_v61  ;;  %v3071_v8 = vadd.f32 1.0, %v4268_v43  ;;  %v2787_v37 = vadd.f32 %v5409_v45, %v2786_v36  ;;  %v3902_v39 = vpop.f32.mrb[118].mxu1 }
 0x495   : > { %v4272_v55 = vpop.eup %4271  ;;  %3191 = vst [vmem:[%s4758_s29 + $0x260] sm:$0xff] %v4270_v5  ;;  %4291 = vrcp.f32 %v3066_v13  ;;  %v2887_v7 = vsub.f32 0.0, %v2795_v23  ;;  %v2798_v16 = vadd.f32 %v3902_v39, %v5409_v45  ;;  %v2789_v21 = vpop.f32.mrb[119].mxu1 }
 0x496   : > { %v4274_v28 = vpop.eup %4273  ;;  %3189 = vst [vmem:[%s4758_s29 + $0x240] sm:$0xff] %v4272_v55  ;;  %4293 = vrcp.f32 %v3071_v8  ;;  %v2790_v9 = vadd.f32 %v5409_v45, %v2789_v21  ;;  %v2885_v12 = vsub.f32 0.0, %v2787_v37 }
 0x497   : > { %v4276_v15 = vpop.eup %4275  ;;  %3192 = vst [vmem:[%s4758_s29 + $0x270] sm:$0xff] %v4274_v28  ;;  %4295 = vpow2.f32 %v2993_v20  ;;  %v3005_v33 = vmul.f32 1.442695, %v2887_v7  ;;  %v2888_v62 = vsub.f32 0.0, %v2798_v16 }
 0x498   : > { %v4278_v24 = vpop.eup %4277  ;;  %3190 = vst [vmem:[%s4758_s29 + $0x250] sm:$0xff] %v4276_v15  ;;  %4297 = vpow2.f32 %v2999_v19  ;;  %v2886_v46 = vsub.f32 0.0, %v2790_v9  ;;  %v3001_v51 = vmul.f32 1.442695, %v2885_v12 }
 0x499   : > { %v4280_v11 = vpop.eup %4279  ;;  %v3069_v32 = vadd.f32 1.0, %v4278_v24  ;;  %4299 = vpow2.f32 %v2995_v0  ;;  %v3007_v1 = vmul.f32 1.442695, %v2888_v62 }
 0x49a   : > { %v4282_v40 = vpop.eup %4281  ;;  %v3072_v56 = vadd.f32 1.0, %v4280_v11  ;;  %4301 = vpow2.f32 %v3005_v33  ;;  %v3905_v63 = vpop.f32.mrb[120].mxu1  ;;  %v3003_v41 = vmul.f32 1.442695, %v2886_v46 }
 0x49b   : > { %v4284_v10 = vpop.eup %4283  ;;  %4303 = vrcp.f32 %v3069_v32  ;;  %v3070_v34 = vadd.f32 1.0, %v4282_v40  ;;  %v2811_v4 = vadd.f32 %v3905_v63, %v5409_v45  ;;  %v2802_v44 = vpop.f32.mrb[121].mxu1 }
 0x49c   : > { %v4286_v18 = vpop.eup %4285  ;;  %4305 = vrcp.f32 %v3072_v56  ;;  %v3075_v26 = vadd.f32 1.0, %v4284_v10  ;;  %v2803_v60 = vadd.f32 %v5409_v45, %v2802_v44  ;;  %v3906_v25 = vpop.f32.mrb[122].mxu1 }
 0x49d   : > { %v4288_v2 = vpop.eup %4287  ;;  %3195 = vst [vmem:[%s4758_s29 + $0x2a0] sm:$0xff] %v4286_v18  ;;  %4307 = vrcp.f32 %v3070_v34  ;;  %v2891_v59 = vsub.f32 0.0, %v2811_v4  ;;  %v2814_v54 = vadd.f32 %v4378_v48, %v3906_v25  ;;  %v2805_v52 = vpop.f32.mrb[123].mxu1 }
 0x49e   : > { %v4290_v53 = vpop.eup %4289  ;;  %3193 = vst [vmem:[%s4758_s29 + $0x280] sm:$0xff] %v4288_v2  ;;  %4309 = vrcp.f32 %v3075_v26  ;;  %v2889_v3 = vsub.f32 0.0, %v2803_v60  ;;  %v2806_v45 = vadd.f32 %v4378_v48, %v2805_v52 }
 0x49f   : > { %v4292_v30 = vpop.eup %4291  ;;  %3196 = vst [vmem:[%s4758_s29 + $0x2b0] sm:$0xff] %v4290_v53  ;;  %4311 = vpow2.f32 %v3001_v51  ;;  %v3013_v38 = vmul.f32 1.442695, %v2891_v59  ;;  %v2892_v31 = vsub.f32 0.0, %v2814_v54 }
 0x4a0   : > { %v4294_v58 = vpop.eup %4293  ;;  %3194 = vst [vmem:[%s4758_s29 + $0x290] sm:$0xff] %v4292_v30  ;;  %4313 = vpow2.f32 %v3007_v1  ;;  %v3009_v35 = vmul.f32 1.442695, %v2889_v3  ;;  %v2890_v42 = vsub.f32 0.0, %v2806_v45 }
 0x4a1   : > { %v4296_v14 = vpop.eup %4295  ;;  %3199 = vst [vmem:[%s4758_s29 + $0x2e0] sm:$0xff] %v4294_v58  ;;  %4315 = vpow2.f32 %v3003_v41  ;;  %v3015_v29 = vmul.f32 1.442695, %v2892_v31 }
 0x4a2   : > { %v4298_v27 = vpop.eup %4297  ;;  %v3073_v17 = vadd.f32 1.0, %v4296_v14  ;;  %4317 = vpow2.f32 %v3013_v38  ;;  %v3909_v47 = vpop.f32.mrb[124].mxu1  ;;  %v3011_v43 = vmul.f32 1.442695, %v2890_v42 }
 0x4a3   : > { %v4300_v57 = vpop.eup %4299  ;;  %v3076_v49 = vadd.f32 1.0, %v4298_v27  ;;  %4319 = vpow2.f32 %v3009_v35  ;;  %v2827_v22 = vadd.f32 %v4378_v48, %v3909_v47  ;;  %v2818_v50 = vpop.f32.mrb[125].mxu1 }
 0x4a4   : > { %v4302_v61 = vpop.eup %4301  ;;  %4321 = vrcp.f32 %v3073_v17  ;;  %v3074_v6 = vadd.f32 1.0, %v4300_v57  ;;  %v2819_v13 = vadd.f32 %v4378_v48, %v2818_v50  ;;  %v3910_v20 = vpop.f32.mrb[126].mxu1 }
 0x4a5   : > { %v4304_v23 = vpop.eup %4303  ;;  %4323 = vrcp.f32 %v3076_v49  ;;  %v3079_v36 = vadd.f32 1.0, %v4302_v61  ;;  %v2895_v5 = vsub.f32 0.0, %v2827_v22  ;;  %v2830_v8 = vadd.f32 %v4378_v48, %v3910_v20  ;;  %v2821_v19 = vpop.f32.mrb[127].mxu1 }
 0x4a6   : > { %v4306_v37 = vpop.eup %4305  ;;  %3197 = vst [vmem:[%s4758_s29 + $0x2c0] sm:$0xff] %v4304_v23  ;;  %4325 = vrcp.f32 %v3074_v6  ;;  %v2893_v39 = vsub.f32 0.0, %v2819_v13  ;;  %v2822_v55 = vadd.f32 %v4378_v48, %v2821_v19 }
 0x4a7   : > { %v4308_v0 = vpop.eup %4307  ;;  %3200 = vst [vmem:[%s4758_s29 + $0x2f0] sm:$0xff] %v4306_v37  ;;  %4327 = vrcp.f32 %v3079_v36  ;;  %v3021_v7 = vmul.f32 1.442695, %v2895_v5  ;;  %v2896_v9 = vsub.f32 0.0, %v2830_v8 }
 0x4a8   : > { %v4310_v16 = vpop.eup %4309  ;;  %3198 = vst [vmem:[%s4758_s29 + $0x2d0] sm:$0xff] %v4308_v0  ;;  %4329 = vpow2.f32 %v3015_v29  ;;  %v3017_v21 = vmul.f32 1.442695, %v2893_v39  ;;  %v2894_v12 = vsub.f32 0.0, %v2822_v55 }
 0x4a9   : > { %v4312_v28 = vpop.eup %4311  ;;  %3203 = vst [vmem:[%s4758_s29 + $0x320] sm:$0xff] %v4310_v16  ;;  %4331 = vpow2.f32 %v3011_v43  ;;  %v3023_v56 = vmul.f32 1.442695, %v2896_v9 }
 0x4aa   : > { %v4314_v15 = vpop.eup %4313  ;;  %v3077_v33 = vadd.f32 1.0, %v4312_v28  ;;  %4333 = vpow2.f32 %v3021_v7  ;;  %v3019_v34 = vmul.f32 1.442695, %v2894_v12 }
 0x4ab   : > { %v4316_v24 = vpop.eup %4315  ;;  %v3080_v62 = vadd.f32 1.0, %v4314_v15  ;;  %4335 = vpow2.f32 %v3017_v21 }
 0x4ac   : > { %v4318_v11 = vpop.eup %4317  ;;  %4337 = vrcp.f32 %v3077_v33  ;;  %v3078_v32 = vadd.f32 1.0, %v4316_v24 }
 0x4ad   : > { %v4320_v46 = vpop.eup %4319  ;;  %4339 = vrcp.f32 %v3080_v62  ;;  %v3083_v40 = vadd.f32 1.0, %v4318_v11 }
 0x4ae   : > { %v4322_v63 = vpop.eup %4321  ;;  %4341 = vrcp.f32 %v3078_v32  ;;  %v3081_v10 = vadd.f32 1.0, %v4320_v46 }
 0x4af   : > { %v4324_v51 = vpop.eup %4323  ;;  %3201 = vst [vmem:[%s4758_s29 + $0x300] sm:$0xff] %v4322_v63  ;;  %4343 = vrcp.f32 %v3083_v40 }
 0x4b0   : > { %v4326_v4 = vpop.eup %4325  ;;  %3204 = vst [vmem:[%s4758_s29 + $0x330] sm:$0xff] %v4324_v51  ;;  %4345 = vrcp.f32 %v3081_v10 }
 0x4b1   : > { %v4328_v44 = vpop.eup %4327  ;;  %3202 = vst [vmem:[%s4758_s29 + $0x310] sm:$0xff] %v4326_v4  ;;  %4347 = vpow2.f32 %v3023_v56 }
 0x4b2   : > { %v4330_v18 = vpop.eup %4329  ;;  %3207 = vst [vmem:[%s4758_s29 + $0x360] sm:$0xff] %v4328_v44  ;;  %4349 = vpow2.f32 %v3019_v34 }
 0x4b3   : > { %v4332_v26 = vpop.eup %4331  ;;  %v3084_v1 = vadd.f32 1.0, %v4330_v18 }
 0x4b4   : > { %v4334_v60 = vpop.eup %4333  ;;  %v3082_v25 = vadd.f32 1.0, %v4332_v26 }
 0x4b5   : > { %v4336_v2 = vpop.eup %4335  ;;  %4351 = vrcp.f32 %v3084_v1  ;;  %v3087_v41 = vadd.f32 1.0, %v4334_v60 }
 0x4b6   : > { %v4338_v59 = vpop.eup %4337  ;;  %4353 = vrcp.f32 %v3082_v25  ;;  %v3085_v48 = vadd.f32 1.0, %v4336_v2 }
 0x4b7   : > { %v4340_v54 = vpop.eup %4339  ;;  %3205 = vst [vmem:[%s4758_s29 + $0x340] sm:$0xff] %v4338_v59  ;;  %4355 = vrcp.f32 %v3087_v41 }
 0x4b8   : > { %v4342_v52 = vpop.eup %4341  ;;  %3208 = vst [vmem:[%s4758_s29 + $0x370] sm:$0xff] %v4340_v54  ;;  %4357 = vrcp.f32 %v3085_v48 }
 0x4b9   : > { %v4344_v53 = vpop.eup %4343  ;;  %3206 = vst [vmem:[%s4758_s29 + $0x350] sm:$0xff] %v4342_v52 }
 0x4ba   : > { %v4346_v3 = vpop.eup %4345  ;;  %3211 = vst [vmem:[%s4758_s29 + $0x3a0] sm:$0xff] %v4344_v53 }
 0x4bb   : > { %v4348_v45 = vpop.eup %4347  ;;  %3209 = vst [vmem:[%s4758_s29 + $0x380] sm:$0xff] %v4346_v3 }
 0x4bc   : > { %v4350_v30 = vpop.eup %4349  ;;  %v3088_v38 = vadd.f32 1.0, %v4348_v45 }
 0x4bd   : > { %v3086_v31 = vadd.f32 1.0, %v4350_v30 }
 0x4be   : > { %4359 = vrcp.f32 %v3088_v38 }
 0x4bf   : > { %v4352_v58 = vpop.eup %4351  ;;  %4361 = vrcp.f32 %v3086_v31 }
 0x4c0   : > { %v4354_v35 = vpop.eup %4353  ;;  %3212 = vst [vmem:[%s4758_s29 + $0x3b0] sm:$0xff] %v4352_v58 }
 0x4c1   : > { %v4356_v42 = vpop.eup %4355  ;;  %3210 = vst [vmem:[%s4758_s29 + $0x390] sm:$0xff] %v4354_v35 }
 0x4c2   : > { %v4358_v14 = vpop.eup %4357  ;;  %3215 = vst [vmem:[%s4758_s29 + $0x3e0] sm:$0xff] %v4356_v42 }
 0x4c3   : > { %3213 = vst [vmem:[%s4758_s29 + $0x3c0] sm:$0xff] %v4358_v14 }
 0x4c8   : > { %v4360_v27 = vpop.eup %4359 }
 0x4c9   : > { %v4362_v17 = vpop.eup %4361  ;;  %3216 = vst [vmem:[%s4758_s29 + $0x3f0] sm:$0xff] %v4360_v27 }
 0x4ca   : > { %3214 = vst [vmem:[%s4758_s29 + $0x3d0] sm:$0xff] %v4362_v17 }
 0x4cb   : > { %4392 = shalt.err (!%p4389_p3)
}
 0x4cc   : > { %s4393_s20 = scalar_lea.hbm %s5539_s25, 16384  ;;  %s4397_s18 = scalar_lea.hbm %s5598_s10, 32768 }
 0x4cd   : > { %p4394_p4 = scmp.ne.s32.totalorder %s5539_s25, %s4393_s20  ;;  %p4398_p9 = scmp.lt.u32.totalorder %s5539_s25, %s5598_s10 }
 0x4ce   : > { %p4399_p10 = scmp.lt.u32.totalorder %s4397_s18, %s4393_s20  ;;  %p4401_p12 = scmp.lt.u32.totalorder %s4393_s20, %s5539_s25 }
 0x4cf   : > { %p4395_p7 = pnand %p4394_p4, %p4540_p5 }
 0x4d0   : > { %p4400_p11 = por %p4399_p10, %p4398_p9 }
 0x4d1   : > { %p4396_p8 = pneg %p4395_p7 }
 0x4d2   : > { %p4402_p13 = por %p4401_p12, %p4400_p11 }
 0x4d4   : > { %p4403_p0 = pnand %p4402_p13, %p4396_p8 }
 0x4d6   : > { %4406 = shalt.err (!%p4403_p0)
}
 0x4d7   : > { %s4445_s28 = smov 256   ;;  %s4446_s27 = smov 16  }
 0x4d8   : > { %3911 = dma.vmem_to_hbm [thread:$0]  (%p4540_p5), %s5541_s11, 16384, %s5539_s25, %s5547_s26, %s4445_s28, %s4445_s28, %s4446_s27  }
 0x4d9 PF: > { %p3917_p1 = scmp.ge.s32.totalorder %s4441_s16, 2  ;;  %s3311_s21 = sand.u32 1, %s4429_s13  }
 0x4da   : > { %s3312_s20 = scalar_lea.sflag [#allocation3], %s3311_s21 }
 0x4db   : > { %p3914_p2 = pnand %p3917_p1, %p4544_p6 }
 0x4dd   : > { %4424 = dma.done.wait (!%p3914_p2), %s3312_s20, 16384  }
 0x4de   : > { %4426 = vsyncadd (!%p3914_p2), %s3312_s20, 4294950912  ;;  %p20_p3 = scmp.ge.s32.totalorder %s4527_s19, 4   ;;  %s5616_s13 = smov %s4433_s14 }
 0x4df   : > { %s5617_s14 = smov %s4437_s15  ;;  %s5618_s15 = smov %s4538_s22 }
 0x4e0   : > { %s5619_s16 = smov %s4527_s19  ;;  %22 = sbr.rel (!%p20_p3) target bundleno = 3 (0x3), region = 98 }
 0x4e7   :  { %3317 = vsyncpa [#allocation3], 1 }
 0x4e8   :  { %3319 = vsyncpa [#allocation3 + $0x1], 1 }

</bundles_post_ra>
